<compile_context>
chip_gen: v5e
topology: v5e:2x2
jax: 0.10.0
libtpu: 0.0.40
codegen_flags: <defaults>
</compile_context>

<pallas_src>
import numpy as np
import jax
import jax.numpy as jnp
from jax.experimental import pallas as pl
from jax.experimental.pallas import tpu as pltpu

NUM_HEADS = 4
LN_EPS = 1e-5


# ----------------------------- in-kernel math helpers -----------------------------

def _erf(x):
    # Abramowitz & Stegun 7.1.26 polynomial approximation, max abs error ~1.5e-7.
    # Uses only abs / mul / add / div / exp / where so it lowers on every TPU gen.
    ax = jnp.abs(x)
    t = 1.0 / (1.0 + 0.3275911 * ax)
    poly = ((((1.061405429 * t - 1.453152027) * t + 1.421413741) * t
             - 0.284496736) * t + 0.254829592) * t
    y = 1.0 - poly * jnp.exp(-ax * ax)
    return jnp.where(x >= 0.0, y, -y)


def _gelu_exact(x):
    # PyTorch F.gelu default (approximate='none'): erf-based
    return 0.5 * x * (1.0 + _erf(x * (1.0 / np.sqrt(2.0))))


def _layernorm(x, g, b):
    # var = E[x^2] - mu^2 -> the two cross-lane reductions are independent (shorter chain).
    mu = jnp.mean(x, axis=-1, keepdims=True)
    ms = jnp.mean(x * x, axis=-1, keepdims=True)
    var = jnp.maximum(ms - mu * mu, 0.0)
    return (x - mu) * jax.lax.rsqrt(var + LN_EPS) * g + b


# ----------------------------- fused kernel -----------------------------

def _build_fused_kernel(B, S, D, L, has_qe):
    H = NUM_HEADS
    hd = D // H
    scale = 1.0 / np.sqrt(hd)
    BS = B * S

    # lane offsets (units of D) inside the packed per-layer vector buffer (L, 1, 13D):
    #   [0,3)=bqkv  [3,4)=bo  [4,5)=ln1_g  [5,6)=ln1_b  [6,10)=b1  [10,11)=b2
    #   [11,12)=ln2_g  [12,13)=ln2_b

    def body(bs_ref, embpos_ref, qe_ref, wqw_ref, w1_ref, w2_ref, vec_ref, head_ref, o_ref):
        # ---- Linear(1, D) + positional encoding, batch folded into rows ----
        pb = embpos_ref[0:S, :]                     # (S, D) = pos[:S] + embed_b
        ew = embpos_ref[S:S + 1, :]                 # (1, D) = embed_w
        x = (bs_ref[...] * ew + pb).reshape(BS, D)  # (B,S,1)*(1,D)+(S,D) -> (B,S,D) -> (BS,D)

        def encoder_layer(x, l):
            # post-norm TransformerEncoderLayer (batch_first, dropout = identity)
            wqkv = wqw_ref[l, :, 0:3 * D]                              # (D, 3D)
            bqkv = vec_ref[l, :, 0:3 * D]                              # (1, 3D)
            qkv = jnp.dot(x, wqkv, preferred_element_type=jnp.float32) + bqkv  # (BS, 3D)
            q3 = qkv[:, 0:D].reshape(B, S, D)
            k3 = qkv[:, D:2 * D].reshape(B, S, D)
            v3 = qkv[:, 2 * D:3 * D].reshape(B, S, D)

            # accumulate the output projection per head (no head concat -> no XLU shuffle)
            attn = vec_ref[l, :, 3 * D:4 * D]                          # bo, (1, D)
            for h in range(H):                                         # static unrolled
                sl = slice(h * hd, (h + 1) * hd)
                s = jnp.einsum('bik,bjk->bij', q3[..., sl], k3[..., sl],
                               preferred_element_type=jnp.float32) * scale      # (B, S, S)
                s = s - jnp.max(s, axis=-1, keepdims=True)
                p = jnp.exp(s)
                p = p * pl.reciprocal(jnp.sum(p, axis=-1, keepdims=True), approx=True)
                head = jnp.einsum('bij,bjd->bid', p, v3[..., sl],
                                  preferred_element_type=jnp.float32).reshape(BS, hd)
                attn = attn + jnp.dot(head, wqw_ref[l, sl, 3 * D:4 * D],
                                      preferred_element_type=jnp.float32)       # (BS, D)

            x = _layernorm(x + attn,
                           vec_ref[l, :, 4 * D:5 * D], vec_ref[l, :, 5 * D:6 * D])

            # feed-forward (exact GELU) on the (BS, D) slab
            h1 = jnp.dot(x, w1_ref[l], preferred_element_type=jnp.float32) \
                 + vec_ref[l, :, 6 * D:10 * D]
            h1 = _gelu_exact(h1)
            h2 = jnp.dot(h1, w2_ref[l], preferred_element_type=jnp.float32) \
                 + vec_ref[l, :, 10 * D:11 * D]
            return _layernorm(x + h2,
                              vec_ref[l, :, 11 * D:12 * D], vec_ref[l, :, 12 * D:13 * D])

        half = L // 2
        for l in range(half):                       # multi_attention layers
            x = encoder_layer(x, l)
        if has_qe:
            x = x + qe_ref[...]                     # + question_embeddings
        for l in range(half, L):                    # transformer (encoder) layers
            x = encoder_layer(x, l)

        # ---- head: Linear(D, D/2) -> GELU -> Linear(D/2, 1) -> Sigmoid -> *100 ----
        hh = jnp.dot(x, head_ref[0:D, :],
                     preferred_element_type=jnp.float32) + head_ref[D:D + 1, :]   # (BS, D/2)
        hh = _gelu_exact(hh)
        s = jnp.sum(hh * head_ref[D + 1:D + 2, :], axis=-1, keepdims=True) \
            + head_ref[D + 2:D + 3, 0:1]                                           # (BS, 1)
        o_ref[...] = 100.0 / (1.0 + jnp.exp(-s))                                   # sigmoid*100

    if has_qe:
        return body

    def body_noqe(bs_ref, embpos_ref, wqw_ref, w1_ref, w2_ref, vec_ref, head_ref, o_ref):
        return body(bs_ref, embpos_ref, None, wqw_ref, w1_ref, w2_ref, vec_ref, head_ref, o_ref)

    return body_noqe


# ----------------------------- parameters -----------------------------

def positional_encoding(max_len, D):
    pos = np.arange(max_len, dtype=np.float32)[:, None]
    div = np.exp(np.arange(0, D, 2, dtype=np.float32) * (-np.log(10000.0) / D))
    pe = np.zeros((max_len, D), dtype=np.float32)
    pe[:, 0::2] = np.sin(pos * div)
    pe[:, 1::2] = np.cos(pos * div)
    return jnp.asarray(pe)


def init_params(key, D, num_layers=2):
    """Weights are built already packed into the consolidated kernel buffers."""
    L = 2 * num_layers                      # multi_attention layers + transformer layers
    C = D // 2
    std = 0.05
    keys = jax.random.split(key, 4 * L + 4)
    kit = iter(keys)

    def rnd(shape):
        return (jax.random.normal(next(kit), shape) * std).astype(jnp.float32)

    wqw, w1, w2 = [], [], []
    for _ in range(L):
        wqkv = rnd((D, 3 * D))              # (D, 3D)  (torch stores (3D, D) applied as x@W^T)
        wo = rnd((D, D))
        wqw.append(jnp.concatenate([wqkv, wo], axis=-1))    # (D, 4D)
        w1.append(rnd((D, 4 * D)))
        w2.append(rnd((4 * D, D)))

    # per-layer vectors lane-packed: [bqkv | bo | ln1_g | ln1_b | b1 | b2 | ln2_g | ln2_b]
    z = lambda n: jnp.zeros((L, 1, n), jnp.float32)
    o = lambda n: jnp.ones((L, 1, n), jnp.float32)
    vec = jnp.concatenate(
        [z(3 * D), z(D), o(D), z(D), z(4 * D), z(D), o(D), z(D)], axis=-1)  # (L, 1, 13D)

    # MLP head packed along rows: [head_w1 (D,C); head_b1 (1,C); head_w2 (1,C); head_b2 (1,C)]
    head_b2 = jnp.concatenate([jnp.zeros((1, 1), jnp.float32),
                               jnp.zeros((1, C - 1), jnp.float32)], axis=1)
    head = jnp.concatenate(
        [rnd((D, C)), jnp.zeros((1, C), jnp.float32), rnd((1, C)), head_b2], axis=0)  # (D+3, C)

    return {
        "embed_w": rnd((1, D)),
        "embed_b": rnd((1, D)),
        "pos": positional_encoding(1000, D),
        "wqw": jnp.stack(wqw),              # (L, D, 4D)
        "w1": jnp.stack(w1),                # (L, D, 4D)
        "w2": jnp.stack(w2),                # (L, 4D, D)
        "vec": vec,                         # (L, 1, 13D)
        "head": head,                       # (D+3, D/2)
    }


# ----------------------------- forward (jitted wrapper) -----------------------------

def _forward(params, base_scores, similarity_matrix=None, question_embeddings=None):
    # similarity_matrix is accepted but unused, matching the PyTorch forward.
    del similarity_matrix
    B, S = base_scores.shape
    D = params["embed_w"].shape[-1]
    L = params["wqw"].shape[0]
    BS = B * S

    # layout plumbing (traced under jit, effectively free)
    bs3 = base_scores.astype(jnp.float32).reshape(B, S, 1)
    embpos = jnp.concatenate(
        [params["pos"][:S, :] + params["embed_b"], params["embed_w"]], axis=0)   # (S+1, D)

    has_qe = question_embeddings is not None
    kernel = _build_fused_kernel(B, S, D, L, has_qe)
    vmem = pl.BlockSpec(memory_space=pltpu.MemorySpace.VMEM)   # whole array, loaded once

    inputs = [bs3, embpos]
    if has_qe:
        inputs.append(question_embeddings.astype(jnp.float32).reshape(BS, D))
    inputs += [params["wqw"], params["w1"], params["w2"], params["vec"], params["head"]]

    out = pl.pallas_call(
        kernel,
        out_shape=jax.ShapeDtypeStruct((BS, 1), jnp.float32),
        in_specs=[vmem] * len(inputs),
        out_specs=vmem,
    )(*inputs)
    return out.reshape(B, S)


model_forward = jax.jit(_forward)


# ----------------------------- main -----------------------------

if __name__ == "__main__":
    B, S, D = 2, 8, 32   # small shapes; embed_dim=32, num_heads=4, num_layers=2 (+2)

    key = jax.random.PRNGKey(0)
    k_param, k_bs, k_sim, k_qe = jax.random.split(key, 4)

    params = init_params(k_param, D, num_layers=2)

    base_scores = jax.random.uniform(k_bs, (B, S), dtype=jnp.float32)
    similarity_matrix = jax.random.uniform(k_sim, (B, S, S), dtype=jnp.float32)  # unused by forward
    question_embeddings = (jax.random.normal(k_qe, (B, S, D)) * 0.1).astype(jnp.float32)

    # main path: with question_embeddings
    scores = model_forward(params, base_scores, similarity_matrix, question_embeddings)
    scores = jax.block_until_ready(scores)
    assert scores.shape == (B, S), scores.shape
    assert bool(jnp.all(jnp.isfinite(scores)))
    assert bool(jnp.all((scores >= 0.0) & (scores <= 100.0)))   # sigmoid * 100 range

    # specialized path: question_embeddings is None (qe input / add compiled out)
    scores_noqe = model_forward(params, base_scores, similarity_matrix, None)
    scores_noqe = jax.block_until_ready(scores_noqe)
    assert scores_noqe.shape == (B, S)
    assert bool(jnp.all(jnp.isfinite(scores_noqe)))
    assert bool(jnp.all((scores_noqe >= 0.0) & (scores_noqe <= 100.0)))

    print("KERNEL_OK")
</pallas_src>

<mosaic_0001>
module attributes {stable_mosaic.version = 11 : i64} {
  func.func @body(%arg0: memref<2x8x1xf32, #tpu.memory_space<vmem>>, %arg1: memref<9x32xf32, #tpu.memory_space<vmem>>, %arg2: memref<16x32xf32, #tpu.memory_space<vmem>>, %arg3: memref<4x32x128xf32, #tpu.memory_space<vmem>>, %arg4: memref<4x32x128xf32, #tpu.memory_space<vmem>>, %arg5: memref<4x128x32xf32, #tpu.memory_space<vmem>>, %arg6: memref<4x1x416xf32, #tpu.memory_space<vmem>>, %arg7: memref<35x16xf32, #tpu.memory_space<vmem>>, %arg8: memref<16x1xf32, #tpu.memory_space<vmem>>) attributes {dimension_semantics = [], scalar_prefetch = 0 : i64, scratch_operands = 0 : i64, tpu.core_type = #tpu.core_type<tc>} {
    %c0 = arith.constant 0 : index
    %c0_0 = arith.constant 0 : index
    %0 = vector.load %arg1[%c0, %c0_0] : memref<9x32xf32, #tpu.memory_space<vmem>>, vector<8x32xf32>
    %c8 = arith.constant 8 : index
    %c0_1 = arith.constant 0 : index
    %1 = vector.load %arg1[%c8, %c0_1] : memref<9x32xf32, #tpu.memory_space<vmem>>, vector<1x32xf32>
    %c0_2 = arith.constant 0 : index
    %c0_3 = arith.constant 0 : index
    %c0_4 = arith.constant 0 : index
    %2 = vector.load %arg0[%c0_2, %c0_3, %c0_4] : memref<2x8x1xf32, #tpu.memory_space<vmem>>, vector<2x8x1xf32>
    %3 = vector.shape_cast %1 : vector<1x32xf32> to vector<1x1x32xf32>
    %4 = vector.broadcast %2 : vector<2x8x1xf32> to vector<2x8x32xf32>
    %5 = vector.broadcast %3 : vector<1x1x32xf32> to vector<2x8x32xf32>
    %6 = arith.mulf %4, %5 : vector<2x8x32xf32>
    %7 = vector.shape_cast %0 : vector<8x32xf32> to vector<1x8x32xf32>
    %8 = vector.broadcast %7 : vector<1x8x32xf32> to vector<2x8x32xf32>
    %9 = arith.addf %6, %8 : vector<2x8x32xf32>
    %10 = vector.shape_cast %9 : vector<2x8x32xf32> to vector<16x32xf32>
    %c0_5 = arith.constant 0 : index
    %c0_6 = arith.constant 0 : index
    %c0_7 = arith.constant 0 : index
    %11 = vector.load %arg3[%c0_5, %c0_6, %c0_7] : memref<4x32x128xf32, #tpu.memory_space<vmem>>, vector<1x32x96xf32>
    %12 = vector.shape_cast %11 : vector<1x32x96xf32> to vector<32x96xf32>
    %c0_8 = arith.constant 0 : index
    %c0_9 = arith.constant 0 : index
    %c0_10 = arith.constant 0 : index
    %13 = vector.load %arg6[%c0_8, %c0_9, %c0_10] : memref<4x1x416xf32, #tpu.memory_space<vmem>>, vector<1x1x96xf32>
    %14 = vector.shape_cast %13 : vector<1x1x96xf32> to vector<1x96xf32>
    %cst = arith.constant dense<0.000000e+00> : vector<16x96xf32>
    %15 = tpu.matmul %10, %12, %cst {dimension_numbers = #tpu.dot_dimension_numbers<[1], [0], [0], [1], [0, 0, 1, 1], [], []>} : vector<16x32xf32>, vector<32x96xf32>, vector<16x96xf32> -> vector<16x96xf32>
    %16 = vector.broadcast %14 : vector<1x96xf32> to vector<16x96xf32>
    %17 = arith.addf %15, %16 : vector<16x96xf32>
    %18 = vector.extract_strided_slice %17 {offsets = [0, 0], sizes = [16, 32], strides = [1, 1]} : vector<16x96xf32> to vector<16x32xf32>
    %19 = vector.shape_cast %18 : vector<16x32xf32> to vector<2x8x32xf32>
    %20 = vector.extract_strided_slice %17 {offsets = [0, 32], sizes = [16, 32], strides = [1, 1]} : vector<16x96xf32> to vector<16x32xf32>
    %21 = vector.shape_cast %20 : vector<16x32xf32> to vector<2x8x32xf32>
    %22 = vector.extract_strided_slice %17 {offsets = [0, 64], sizes = [16, 32], strides = [1, 1]} : vector<16x96xf32> to vector<16x32xf32>
    %23 = vector.shape_cast %22 : vector<16x32xf32> to vector<2x8x32xf32>
    %c0_11 = arith.constant 0 : index
    %c0_12 = arith.constant 0 : index
    %c96 = arith.constant 96 : index
    %24 = vector.load %arg6[%c0_11, %c0_12, %c96] : memref<4x1x416xf32, #tpu.memory_space<vmem>>, vector<1x1x32xf32>
    %25 = vector.shape_cast %24 : vector<1x1x32xf32> to vector<1x32xf32>
    %26 = vector.extract_strided_slice %19 {offsets = [0, 0, 0], sizes = [2, 8, 8], strides = [1, 1, 1]} : vector<2x8x32xf32> to vector<2x8x8xf32>
    %27 = vector.extract_strided_slice %21 {offsets = [0, 0, 0], sizes = [2, 8, 8], strides = [1, 1, 1]} : vector<2x8x32xf32> to vector<2x8x8xf32>
    "tpu.trace_start"() <{level = 10 : i32, message = "bik,bjk->bij"}> : () -> ()
    %cst_13 = arith.constant dense<0.000000e+00> : vector<2x8x8xf32>
    %28 = tpu.matmul %26, %27, %cst_13 {dimension_numbers = #tpu.dot_dimension_numbers<[2], [2], [1], [1], [0, 0, 0, 1, 1, 1], [0], [0]>} : vector<2x8x8xf32>, vector<2x8x8xf32>, vector<2x8x8xf32> -> vector<2x8x8xf32>
    "tpu.trace_stop"() : () -> ()
    %cst_14 = arith.constant 0.353553385 : f32
    %29 = vector.broadcast %cst_14 : f32 to vector<2x8x8xf32>
    %30 = arith.mulf %28, %29 : vector<2x8x8xf32>
    %cst_15 = arith.constant dense<0xFF800000> : vector<2x8xf32>
    %31 = vector.multi_reduction <maximumf>, %30, %cst_15 [2] : vector<2x8x8xf32> to vector<2x8xf32>
    %32 = vector.shape_cast %31 : vector<2x8xf32> to vector<2x8x1xf32>
    %33 = vector.broadcast %32 : vector<2x8x1xf32> to vector<2x8x8xf32>
    %34 = arith.subf %30, %33 : vector<2x8x8xf32>
    %35 = math.exp %34 : vector<2x8x8xf32>
    %cst_16 = arith.constant dense<0.000000e+00> : vector<2x8xf32>
    %36 = vector.multi_reduction <add>, %35, %cst_16 [2] : vector<2x8x8xf32> to vector<2x8xf32>
    %37 = vector.shape_cast %36 : vector<2x8xf32> to vector<2x8x1xf32>
    %38 = tpu.reciprocal %37 {approx = true} : vector<2x8x1xf32> -> vector<2x8x1xf32>
    %39 = vector.broadcast %38 : vector<2x8x1xf32> to vector<2x8x8xf32>
    %40 = arith.mulf %35, %39 : vector<2x8x8xf32>
    %41 = vector.extract_strided_slice %23 {offsets = [0, 0, 0], sizes = [2, 8, 8], strides = [1, 1, 1]} : vector<2x8x32xf32> to vector<2x8x8xf32>
    "tpu.trace_start"() <{level = 10 : i32, message = "bij,bjd->bid"}> : () -> ()
    %cst_17 = arith.constant dense<0.000000e+00> : vector<2x8x8xf32>
    %42 = tpu.matmul %40, %41, %cst_17 {dimension_numbers = #tpu.dot_dimension_numbers<[2], [1], [1], [2], [0, 0, 0, 1, 1, 2], [0], [0]>} : vector<2x8x8xf32>, vector<2x8x8xf32>, vector<2x8x8xf32> -> vector<2x8x8xf32>
    "tpu.trace_stop"() : () -> ()
    %43 = vector.shape_cast %42 : vector<2x8x8xf32> to vector<16x8xf32>
    %c0_18 = arith.constant 0 : index
    %c0_19 = arith.constant 0 : index
    %c96_20 = arith.constant 96 : index
    %44 = vector.load %arg3[%c0_18, %c0_19, %c96_20] : memref<4x32x128xf32, #tpu.memory_space<vmem>>, vector<1x8x32xf32>
    %45 = vector.shape_cast %44 : vector<1x8x32xf32> to vector<8x32xf32>
    %cst_21 = arith.constant dense<0.000000e+00> : vector<16x32xf32>
    %46 = tpu.matmul %43, %45, %cst_21 {dimension_numbers = #tpu.dot_dimension_numbers<[1], [0], [0], [1], [0, 0, 1, 1], [], []>} : vector<16x8xf32>, vector<8x32xf32>, vector<16x32xf32> -> vector<16x32xf32>
    %47 = vector.broadcast %25 : vector<1x32xf32> to vector<16x32xf32>
    %48 = arith.addf %47, %46 : vector<16x32xf32>
    %49 = vector.extract_strided_slice %19 {offsets = [0, 0, 8], sizes = [2, 8, 8], strides = [1, 1, 1]} : vector<2x8x32xf32> to vector<2x8x8xf32>
    %50 = vector.extract_strided_slice %21 {offsets = [0, 0, 8], sizes = [2, 8, 8], strides = [1, 1, 1]} : vector<2x8x32xf32> to vector<2x8x8xf32>
    "tpu.trace_start"() <{level = 10 : i32, message = "bik,bjk->bij"}> : () -> ()
    %cst_22 = arith.constant dense<0.000000e+00> : vector<2x8x8xf32>
    %51 = tpu.matmul %49, %50, %cst_22 {dimension_numbers = #tpu.dot_dimension_numbers<[2], [2], [1], [1], [0, 0, 0, 1, 1, 1], [0], [0]>} : vector<2x8x8xf32>, vector<2x8x8xf32>, vector<2x8x8xf32> -> vector<2x8x8xf32>
    "tpu.trace_stop"() : () -> ()
    %cst_23 = arith.constant 0.353553385 : f32
    %52 = vector.broadcast %cst_23 : f32 to vector<2x8x8xf32>
    %53 = arith.mulf %51, %52 : vector<2x8x8xf32>
    %cst_24 = arith.constant dense<0xFF800000> : vector<2x8xf32>
    %54 = vector.multi_reduction <maximumf>, %53, %cst_24 [2] : vector<2x8x8xf32> to vector<2x8xf32>
    %55 = vector.shape_cast %54 : vector<2x8xf32> to vector<2x8x1xf32>
    %56 = vector.broadcast %55 : vector<2x8x1xf32> to vector<2x8x8xf32>
    %57 = arith.subf %53, %56 : vector<2x8x8xf32>
    %58 = math.exp %57 : vector<2x8x8xf32>
    %cst_25 = arith.constant dense<0.000000e+00> : vector<2x8xf32>
    %59 = vector.multi_reduction <add>, %58, %cst_25 [2] : vector<2x8x8xf32> to vector<2x8xf32>
    %60 = vector.shape_cast %59 : vector<2x8xf32> to vector<2x8x1xf32>
    %61 = tpu.reciprocal %60 {approx = true} : vector<2x8x1xf32> -> vector<2x8x1xf32>
    %62 = vector.broadcast %61 : vector<2x8x1xf32> to vector<2x8x8xf32>
    %63 = arith.mulf %58, %62 : vector<2x8x8xf32>
    %64 = vector.extract_strided_slice %23 {offsets = [0, 0, 8], sizes = [2, 8, 8], strides = [1, 1, 1]} : vector<2x8x32xf32> to vector<2x8x8xf32>
    "tpu.trace_start"() <{level = 10 : i32, message = "bij,bjd->bid"}> : () -> ()
    %cst_26 = arith.constant dense<0.000000e+00> : vector<2x8x8xf32>
    %65 = tpu.matmul %63, %64, %cst_26 {dimension_numbers = #tpu.dot_dimension_numbers<[2], [1], [1], [2], [0, 0, 0, 1, 1, 2], [0], [0]>} : vector<2x8x8xf32>, vector<2x8x8xf32>, vector<2x8x8xf32> -> vector<2x8x8xf32>
    "tpu.trace_stop"() : () -> ()
    %66 = vector.shape_cast %65 : vector<2x8x8xf32> to vector<16x8xf32>
    %c0_27 = arith.constant 0 : index
    %c8_28 = arith.constant 8 : index
    %c96_29 = arith.constant 96 : index
    %67 = vector.load %arg3[%c0_27, %c8_28, %c96_29] : memref<4x32x128xf32, #tpu.memory_space<vmem>>, vector<1x8x32xf32>
    %68 = vector.shape_cast %67 : vector<1x8x32xf32> to vector<8x32xf32>
    %cst_30 = arith.constant dense<0.000000e+00> : vector<16x32xf32>
    %69 = tpu.matmul %66, %68, %cst_30 {dimension_numbers = #tpu.dot_dimension_numbers<[1], [0], [0], [1], [0, 0, 1, 1], [], []>} : vector<16x8xf32>, vector<8x32xf32>, vector<16x32xf32> -> vector<16x32xf32>
    %70 = arith.addf %48, %69 : vector<16x32xf32>
    %71 = vector.extract_strided_slice %19 {offsets = [0, 0, 16], sizes = [2, 8, 8], strides = [1, 1, 1]} : vector<2x8x32xf32> to vector<2x8x8xf32>
    %72 = vector.extract_strided_slice %21 {offsets = [0, 0, 16], sizes = [2, 8, 8], strides = [1, 1, 1]} : vector<2x8x32xf32> to vector<2x8x8xf32>
    "tpu.trace_start"() <{level = 10 : i32, message = "bik,bjk->bij"}> : () -> ()
    %cst_31 = arith.constant dense<0.000000e+00> : vector<2x8x8xf32>
    %73 = tpu.matmul %71, %72, %cst_31 {dimension_numbers = #tpu.dot_dimension_numbers<[2], [2], [1], [1], [0, 0, 0, 1, 1, 1], [0], [0]>} : vector<2x8x8xf32>, vector<2x8x8xf32>, vector<2x8x8xf32> -> vector<2x8x8xf32>
    "tpu.trace_stop"() : () -> ()
    %cst_32 = arith.constant 0.353553385 : f32
    %74 = vector.broadcast %cst_32 : f32 to vector<2x8x8xf32>
    %75 = arith.mulf %73, %74 : vector<2x8x8xf32>
    %cst_33 = arith.constant dense<0xFF800000> : vector<2x8xf32>
    %76 = vector.multi_reduction <maximumf>, %75, %cst_33 [2] : vector<2x8x8xf32> to vector<2x8xf32>
    %77 = vector.shape_cast %76 : vector<2x8xf32> to vector<2x8x1xf32>
    %78 = vector.broadcast %77 : vector<2x8x1xf32> to vector<2x8x8xf32>
    %79 = arith.subf %75, %78 : vector<2x8x8xf32>
    %80 = math.exp %79 : vector<2x8x8xf32>
    %cst_34 = arith.constant dense<0.000000e+00> : vector<2x8xf32>
    %81 = vector.multi_reduction <add>, %80, %cst_34 [2] : vector<2x8x8xf32> to vector<2x8xf32>
    %82 = vector.shape_cast %81 : vector<2x8xf32> to vector<2x8x1xf32>
    %83 = tpu.reciprocal %82 {approx = true} : vector<2x8x1xf32> -> vector<2x8x1xf32>
    %84 = vector.broadcast %83 : vector<2x8x1xf32> to vector<2x8x8xf32>
    %85 = arith.mulf %80, %84 : vector<2x8x8xf32>
    %86 = vector.extract_strided_slice %23 {offsets = [0, 0, 16], sizes = [2, 8, 8], strides = [1, 1, 1]} : vector<2x8x32xf32> to vector<2x8x8xf32>
    "tpu.trace_start"() <{level = 10 : i32, message = "bij,bjd->bid"}> : () -> ()
    %cst_35 = arith.constant dense<0.000000e+00> : vector<2x8x8xf32>
    %87 = tpu.matmul %85, %86, %cst_35 {dimension_numbers = #tpu.dot_dimension_numbers<[2], [1], [1], [2], [0, 0, 0, 1, 1, 2], [0], [0]>} : vector<2x8x8xf32>, vector<2x8x8xf32>, vector<2x8x8xf32> -> vector<2x8x8xf32>
    "tpu.trace_stop"() : () -> ()
    %88 = vector.shape_cast %87 : vector<2x8x8xf32> to vector<16x8xf32>
    %c0_36 = arith.constant 0 : index
    %c16 = arith.constant 16 : index
    %c96_37 = arith.constant 96 : index
    %89 = vector.load %arg3[%c0_36, %c16, %c96_37] : memref<4x32x128xf32, #tpu.memory_space<vmem>>, vector<1x8x32xf32>
    %90 = vector.shape_cast %89 : vector<1x8x32xf32> to vector<8x32xf32>
    %cst_38 = arith.constant dense<0.000000e+00> : vector<16x32xf32>
    %91 = tpu.matmul %88, %90, %cst_38 {dimension_numbers = #tpu.dot_dimension_numbers<[1], [0], [0], [1], [0, 0, 1, 1], [], []>} : vector<16x8xf32>, vector<8x32xf32>, vector<16x32xf32> -> vector<16x32xf32>
    %92 = arith.addf %70, %91 : vector<16x32xf32>
    %93 = vector.extract_strided_slice %19 {offsets = [0, 0, 24], sizes = [2, 8, 8], strides = [1, 1, 1]} : vector<2x8x32xf32> to vector<2x8x8xf32>
    %94 = vector.extract_strided_slice %21 {offsets = [0, 0, 24], sizes = [2, 8, 8], strides = [1, 1, 1]} : vector<2x8x32xf32> to vector<2x8x8xf32>
    "tpu.trace_start"() <{level = 10 : i32, message = "bik,bjk->bij"}> : () -> ()
    %cst_39 = arith.constant dense<0.000000e+00> : vector<2x8x8xf32>
    %95 = tpu.matmul %93, %94, %cst_39 {dimension_numbers = #tpu.dot_dimension_numbers<[2], [2], [1], [1], [0, 0, 0, 1, 1, 1], [0], [0]>} : vector<2x8x8xf32>, vector<2x8x8xf32>, vector<2x8x8xf32> -> vector<2x8x8xf32>
    "tpu.trace_stop"() : () -> ()
    %cst_40 = arith.constant 0.353553385 : f32
    %96 = vector.broadcast %cst_40 : f32 to vector<2x8x8xf32>
    %97 = arith.mulf %95, %96 : vector<2x8x8xf32>
    %cst_41 = arith.constant dense<0xFF800000> : vector<2x8xf32>
    %98 = vector.multi_reduction <maximumf>, %97, %cst_41 [2] : vector<2x8x8xf32> to vector<2x8xf32>
    %99 = vector.shape_cast %98 : vector<2x8xf32> to vector<2x8x1xf32>
    %100 = vector.broadcast %99 : vector<2x8x1xf32> to vector<2x8x8xf32>
    %101 = arith.subf %97, %100 : vector<2x8x8xf32>
    %102 = math.exp %101 : vector<2x8x8xf32>
    %cst_42 = arith.constant dense<0.000000e+00> : vector<2x8xf32>
    %103 = vector.multi_reduction <add>, %102, %cst_42 [2] : vector<2x8x8xf32> to vector<2x8xf32>
    %104 = vector.shape_cast %103 : vector<2x8xf32> to vector<2x8x1xf32>
    %105 = tpu.reciprocal %104 {approx = true} : vector<2x8x1xf32> -> vector<2x8x1xf32>
    %106 = vector.broadcast %105 : vector<2x8x1xf32> to vector<2x8x8xf32>
    %107 = arith.mulf %102, %106 : vector<2x8x8xf32>
    %108 = vector.extract_strided_slice %23 {offsets = [0, 0, 24], sizes = [2, 8, 8], strides = [1, 1, 1]} : vector<2x8x32xf32> to vector<2x8x8xf32>
    "tpu.trace_start"() <{level = 10 : i32, message = "bij,bjd->bid"}> : () -> ()
    %cst_43 = arith.constant dense<0.000000e+00> : vector<2x8x8xf32>
    %109 = tpu.matmul %107, %108, %cst_43 {dimension_numbers = #tpu.dot_dimension_numbers<[2], [1], [1], [2], [0, 0, 0, 1, 1, 2], [0], [0]>} : vector<2x8x8xf32>, vector<2x8x8xf32>, vector<2x8x8xf32> -> vector<2x8x8xf32>
    "tpu.trace_stop"() : () -> ()
    %110 = vector.shape_cast %109 : vector<2x8x8xf32> to vector<16x8xf32>
    %c0_44 = arith.constant 0 : index
    %c24 = arith.constant 24 : index
    %c96_45 = arith.constant 96 : index
    %111 = vector.load %arg3[%c0_44, %c24, %c96_45] : memref<4x32x128xf32, #tpu.memory_space<vmem>>, vector<1x8x32xf32>
    %112 = vector.shape_cast %111 : vector<1x8x32xf32> to vector<8x32xf32>
    %cst_46 = arith.constant dense<0.000000e+00> : vector<16x32xf32>
    %113 = tpu.matmul %110, %112, %cst_46 {dimension_numbers = #tpu.dot_dimension_numbers<[1], [0], [0], [1], [0, 0, 1, 1], [], []>} : vector<16x8xf32>, vector<8x32xf32>, vector<16x32xf32> -> vector<16x32xf32>
    %114 = arith.addf %92, %113 : vector<16x32xf32>
    %115 = arith.addf %10, %114 : vector<16x32xf32>
    %c0_47 = arith.constant 0 : index
    %c0_48 = arith.constant 0 : index
    %c128 = arith.constant 128 : index
    %116 = vector.load %arg6[%c0_47, %c0_48, %c128] : memref<4x1x416xf32, #tpu.memory_space<vmem>>, vector<1x1x32xf32>
    %117 = vector.shape_cast %116 : vector<1x1x32xf32> to vector<1x32xf32>
    %c0_49 = arith.constant 0 : index
    %c0_50 = arith.constant 0 : index
    %c160 = arith.constant 160 : index
    %118 = vector.load %arg6[%c0_49, %c0_50, %c160] : memref<4x1x416xf32, #tpu.memory_space<vmem>>, vector<1x1x32xf32>
    %119 = vector.shape_cast %118 : vector<1x1x32xf32> to vector<1x32xf32>
    %cst_51 = arith.constant dense<0.000000e+00> : vector<16xf32>
    %120 = vector.multi_reduction <add>, %115, %cst_51 [1] : vector<16x32xf32> to vector<16xf32>
    %121 = vector.shape_cast %120 : vector<16xf32> to vector<16x1xf32>
    %cst_52 = arith.constant 3.200000e+01 : f32
    %122 = vector.broadcast %cst_52 : f32 to vector<16x1xf32>
    %123 = arith.divf %121, %122 : vector<16x1xf32>
    %124 = arith.mulf %115, %115 : vector<16x32xf32>
    %cst_53 = arith.constant dense<0.000000e+00> : vector<16xf32>
    %125 = vector.multi_reduction <add>, %124, %cst_53 [1] : vector<16x32xf32> to vector<16xf32>
    %126 = vector.shape_cast %125 : vector<16xf32> to vector<16x1xf32>
    %cst_54 = arith.constant 3.200000e+01 : f32
    %127 = vector.broadcast %cst_54 : f32 to vector<16x1xf32>
    %128 = arith.divf %126, %127 : vector<16x1xf32>
    %129 = arith.mulf %123, %123 : vector<16x1xf32>
    %130 = arith.subf %128, %129 : vector<16x1xf32>
    %cst_55 = arith.constant 0.000000e+00 : f32
    %131 = vector.broadcast %cst_55 : f32 to vector<16x1xf32>
    %132 = arith.maximumf %130, %131 : vector<16x1xf32>
    %133 = vector.broadcast %123 : vector<16x1xf32> to vector<16x32xf32>
    %134 = arith.subf %115, %133 : vector<16x32xf32>
    %cst_56 = arith.constant 9.99999974E-6 : f32
    %135 = vector.broadcast %cst_56 : f32 to vector<16x1xf32>
    %136 = arith.addf %132, %135 : vector<16x1xf32>
    %137 = math.rsqrt %136 : vector<16x1xf32>
    %138 = vector.broadcast %137 : vector<16x1xf32> to vector<16x32xf32>
    %139 = arith.mulf %134, %138 : vector<16x32xf32>
    %140 = vector.broadcast %117 : vector<1x32xf32> to vector<16x32xf32>
    %141 = arith.mulf %139, %140 : vector<16x32xf32>
    %142 = vector.broadcast %119 : vector<1x32xf32> to vector<16x32xf32>
    %143 = arith.addf %141, %142 : vector<16x32xf32>
    %c0_57 = arith.constant 0 : index
    %c0_58 = arith.constant 0 : index
    %c0_59 = arith.constant 0 : index
    %144 = vector.load %arg4[%c0_57, %c0_58, %c0_59] : memref<4x32x128xf32, #tpu.memory_space<vmem>>, vector<1x32x128xf32>
    %145 = vector.shape_cast %144 : vector<1x32x128xf32> to vector<32x128xf32>
    %cst_60 = arith.constant dense<0.000000e+00> : vector<16x128xf32>
    %146 = tpu.matmul %143, %145, %cst_60 {dimension_numbers = #tpu.dot_dimension_numbers<[1], [0], [0], [1], [0, 0, 1, 1], [], []>} : vector<16x32xf32>, vector<32x128xf32>, vector<16x128xf32> -> vector<16x128xf32>
    %c0_61 = arith.constant 0 : index
    %c0_62 = arith.constant 0 : index
    %c192 = arith.constant 192 : index
    %147 = vector.load %arg6[%c0_61, %c0_62, %c192] : memref<4x1x416xf32, #tpu.memory_space<vmem>>, vector<1x1x128xf32>
    %148 = vector.shape_cast %147 : vector<1x1x128xf32> to vector<1x128xf32>
    %149 = vector.broadcast %148 : vector<1x128xf32> to vector<16x128xf32>
    %150 = arith.addf %146, %149 : vector<16x128xf32>
    %cst_63 = arith.constant 5.000000e-01 : f32
    %151 = vector.broadcast %cst_63 : f32 to vector<16x128xf32>
    %152 = arith.mulf %151, %150 : vector<16x128xf32>
    %cst_64 = arith.constant 0.707106769 : f32
    %153 = vector.broadcast %cst_64 : f32 to vector<16x128xf32>
    %154 = arith.mulf %150, %153 : vector<16x128xf32>
    %155 = math.absf %154 : vector<16x128xf32>
    %cst_65 = arith.constant 0.327591091 : f32
    %156 = vector.broadcast %cst_65 : f32 to vector<16x128xf32>
    %157 = arith.mulf %156, %155 : vector<16x128xf32>
    %cst_66 = arith.constant 1.000000e+00 : f32
    %158 = vector.broadcast %cst_66 : f32 to vector<16x128xf32>
    %159 = arith.addf %158, %157 : vector<16x128xf32>
    %cst_67 = arith.constant 1.000000e+00 : f32
    %160 = vector.broadcast %cst_67 : f32 to vector<16x128xf32>
    %161 = arith.divf %160, %159 : vector<16x128xf32>
    %cst_68 = arith.constant 1.06140542 : f32
    %162 = vector.broadcast %cst_68 : f32 to vector<16x128xf32>
    %163 = arith.mulf %162, %161 : vector<16x128xf32>
    %cst_69 = arith.constant 1.45315206 : f32
    %164 = vector.broadcast %cst_69 : f32 to vector<16x128xf32>
    %165 = arith.subf %163, %164 : vector<16x128xf32>
    %166 = arith.mulf %165, %161 : vector<16x128xf32>
    %cst_70 = arith.constant 1.42141378 : f32
    %167 = vector.broadcast %cst_70 : f32 to vector<16x128xf32>
    %168 = arith.addf %166, %167 : vector<16x128xf32>
    %169 = arith.mulf %168, %161 : vector<16x128xf32>
    %cst_71 = arith.constant 0.284496725 : f32
    %170 = vector.broadcast %cst_71 : f32 to vector<16x128xf32>
    %171 = arith.subf %169, %170 : vector<16x128xf32>
    %172 = arith.mulf %171, %161 : vector<16x128xf32>
    %cst_72 = arith.constant 0.254829586 : f32
    %173 = vector.broadcast %cst_72 : f32 to vector<16x128xf32>
    %174 = arith.addf %172, %173 : vector<16x128xf32>
    %175 = arith.mulf %174, %161 : vector<16x128xf32>
    %cst_73 = arith.constant 0.000000e+00 : f32
    %176 = vector.broadcast %cst_73 : f32 to vector<16x128xf32>
    %177 = arith.subf %176, %155 : vector<16x128xf32>
    %178 = arith.mulf %177, %155 : vector<16x128xf32>
    %179 = math.exp %178 : vector<16x128xf32>
    %180 = arith.mulf %175, %179 : vector<16x128xf32>
    %cst_74 = arith.constant 1.000000e+00 : f32
    %181 = vector.broadcast %cst_74 : f32 to vector<16x128xf32>
    %182 = arith.subf %181, %180 : vector<16x128xf32>
    %cst_75 = arith.constant 0.000000e+00 : f32
    %183 = vector.broadcast %cst_75 : f32 to vector<16x128xf32>
    %184 = arith.cmpf oge, %154, %183 : vector<16x128xf32>
    %cst_76 = arith.constant 0.000000e+00 : f32
    %185 = vector.broadcast %cst_76 : f32 to vector<16x128xf32>
    %186 = arith.subf %185, %182 : vector<16x128xf32>
    %187 = arith.select %184, %182, %186 : vector<16x128xi1>, vector<16x128xf32>
    %cst_77 = arith.constant 1.000000e+00 : f32
    %188 = vector.broadcast %cst_77 : f32 to vector<16x128xf32>
    %189 = arith.addf %188, %187 : vector<16x128xf32>
    %190 = arith.mulf %152, %189 : vector<16x128xf32>
    %c0_78 = arith.constant 0 : index
    %c0_79 = arith.constant 0 : index
    %c0_80 = arith.constant 0 : index
    %191 = vector.load %arg5[%c0_78, %c0_79, %c0_80] : memref<4x128x32xf32, #tpu.memory_space<vmem>>, vector<1x128x32xf32>
    %192 = vector.shape_cast %191 : vector<1x128x32xf32> to vector<128x32xf32>
    %cst_81 = arith.constant dense<0.000000e+00> : vector<16x32xf32>
    %193 = tpu.matmul %190, %192, %cst_81 {dimension_numbers = #tpu.dot_dimension_numbers<[1], [0], [0], [1], [0, 0, 1, 1], [], []>} : vector<16x128xf32>, vector<128x32xf32>, vector<16x32xf32> -> vector<16x32xf32>
    %c0_82 = arith.constant 0 : index
    %c0_83 = arith.constant 0 : index
    %c320 = arith.constant 320 : index
    %194 = vector.load %arg6[%c0_82, %c0_83, %c320] : memref<4x1x416xf32, #tpu.memory_space<vmem>>, vector<1x1x32xf32>
    %195 = vector.shape_cast %194 : vector<1x1x32xf32> to vector<1x32xf32>
    %196 = vector.broadcast %195 : vector<1x32xf32> to vector<16x32xf32>
    %197 = arith.addf %193, %196 : vector<16x32xf32>
    %198 = arith.addf %143, %197 : vector<16x32xf32>
    %c0_84 = arith.constant 0 : index
    %c0_85 = arith.constant 0 : index
    %c352 = arith.constant 352 : index
    %199 = vector.load %arg6[%c0_84, %c0_85, %c352] : memref<4x1x416xf32, #tpu.memory_space<vmem>>, vector<1x1x32xf32>
    %200 = vector.shape_cast %199 : vector<1x1x32xf32> to vector<1x32xf32>
    %c0_86 = arith.constant 0 : index
    %c0_87 = arith.constant 0 : index
    %c384 = arith.constant 384 : index
    %201 = vector.load %arg6[%c0_86, %c0_87, %c384] : memref<4x1x416xf32, #tpu.memory_space<vmem>>, vector<1x1x32xf32>
    %202 = vector.shape_cast %201 : vector<1x1x32xf32> to vector<1x32xf32>
    %cst_88 = arith.constant dense<0.000000e+00> : vector<16xf32>
    %203 = vector.multi_reduction <add>, %198, %cst_88 [1] : vector<16x32xf32> to vector<16xf32>
    %204 = vector.shape_cast %203 : vector<16xf32> to vector<16x1xf32>
    %cst_89 = arith.constant 3.200000e+01 : f32
    %205 = vector.broadcast %cst_89 : f32 to vector<16x1xf32>
    %206 = arith.divf %204, %205 : vector<16x1xf32>
    %207 = arith.mulf %198, %198 : vector<16x32xf32>
    %cst_90 = arith.constant dense<0.000000e+00> : vector<16xf32>
    %208 = vector.multi_reduction <add>, %207, %cst_90 [1] : vector<16x32xf32> to vector<16xf32>
    %209 = vector.shape_cast %208 : vector<16xf32> to vector<16x1xf32>
    %cst_91 = arith.constant 3.200000e+01 : f32
    %210 = vector.broadcast %cst_91 : f32 to vector<16x1xf32>
    %211 = arith.divf %209, %210 : vector<16x1xf32>
    %212 = arith.mulf %206, %206 : vector<16x1xf32>
    %213 = arith.subf %211, %212 : vector<16x1xf32>
    %cst_92 = arith.constant 0.000000e+00 : f32
    %214 = vector.broadcast %cst_92 : f32 to vector<16x1xf32>
    %215 = arith.maximumf %213, %214 : vector<16x1xf32>
    %216 = vector.broadcast %206 : vector<16x1xf32> to vector<16x32xf32>
    %217 = arith.subf %198, %216 : vector<16x32xf32>
    %cst_93 = arith.constant 9.99999974E-6 : f32
    %218 = vector.broadcast %cst_93 : f32 to vector<16x1xf32>
    %219 = arith.addf %215, %218 : vector<16x1xf32>
    %220 = math.rsqrt %219 : vector<16x1xf32>
    %221 = vector.broadcast %220 : vector<16x1xf32> to vector<16x32xf32>
    %222 = arith.mulf %217, %221 : vector<16x32xf32>
    %223 = vector.broadcast %200 : vector<1x32xf32> to vector<16x32xf32>
    %224 = arith.mulf %222, %223 : vector<16x32xf32>
    %225 = vector.broadcast %202 : vector<1x32xf32> to vector<16x32xf32>
    %226 = arith.addf %224, %225 : vector<16x32xf32>
    %c1 = arith.constant 1 : index
    %c0_94 = arith.constant 0 : index
    %c0_95 = arith.constant 0 : index
    %227 = vector.load %arg3[%c1, %c0_94, %c0_95] : memref<4x32x128xf32, #tpu.memory_space<vmem>>, vector<1x32x96xf32>
    %228 = vector.shape_cast %227 : vector<1x32x96xf32> to vector<32x96xf32>
    %c1_96 = arith.constant 1 : index
    %c0_97 = arith.constant 0 : index
    %c0_98 = arith.constant 0 : index
    %229 = vector.load %arg6[%c1_96, %c0_97, %c0_98] : memref<4x1x416xf32, #tpu.memory_space<vmem>>, vector<1x1x96xf32>
    %230 = vector.shape_cast %229 : vector<1x1x96xf32> to vector<1x96xf32>
    %cst_99 = arith.constant dense<0.000000e+00> : vector<16x96xf32>
    %231 = tpu.matmul %226, %228, %cst_99 {dimension_numbers = #tpu.dot_dimension_numbers<[1], [0], [0], [1], [0, 0, 1, 1], [], []>} : vector<16x32xf32>, vector<32x96xf32>, vector<16x96xf32> -> vector<16x96xf32>
    %232 = vector.broadcast %230 : vector<1x96xf32> to vector<16x96xf32>
    %233 = arith.addf %231, %232 : vector<16x96xf32>
    %234 = vector.extract_strided_slice %233 {offsets = [0, 0], sizes = [16, 32], strides = [1, 1]} : vector<16x96xf32> to vector<16x32xf32>
    %235 = vector.shape_cast %234 : vector<16x32xf32> to vector<2x8x32xf32>
    %236 = vector.extract_strided_slice %233 {offsets = [0, 32], sizes = [16, 32], strides = [1, 1]} : vector<16x96xf32> to vector<16x32xf32>
    %237 = vector.shape_cast %236 : vector<16x32xf32> to vector<2x8x32xf32>
    %238 = vector.extract_strided_slice %233 {offsets = [0, 64], sizes = [16, 32], strides = [1, 1]} : vector<16x96xf32> to vector<16x32xf32>
    %239 = vector.shape_cast %238 : vector<16x32xf32> to vector<2x8x32xf32>
    %c1_100 = arith.constant 1 : index
    %c0_101 = arith.constant 0 : index
    %c96_102 = arith.constant 96 : index
    %240 = vector.load %arg6[%c1_100, %c0_101, %c96_102] : memref<4x1x416xf32, #tpu.memory_space<vmem>>, vector<1x1x32xf32>
    %241 = vector.shape_cast %240 : vector<1x1x32xf32> to vector<1x32xf32>
    %242 = vector.extract_strided_slice %235 {offsets = [0, 0, 0], sizes = [2, 8, 8], strides = [1, 1, 1]} : vector<2x8x32xf32> to vector<2x8x8xf32>
    %243 = vector.extract_strided_slice %237 {offsets = [0, 0, 0], sizes = [2, 8, 8], strides = [1, 1, 1]} : vector<2x8x32xf32> to vector<2x8x8xf32>
    "tpu.trace_start"() <{level = 10 : i32, message = "bik,bjk->bij"}> : () -> ()
    %cst_103 = arith.constant dense<0.000000e+00> : vector<2x8x8xf32>
    %244 = tpu.matmul %242, %243, %cst_103 {dimension_numbers = #tpu.dot_dimension_numbers<[2], [2], [1], [1], [0, 0, 0, 1, 1, 1], [0], [0]>} : vector<2x8x8xf32>, vector<2x8x8xf32>, vector<2x8x8xf32> -> vector<2x8x8xf32>
    "tpu.trace_stop"() : () -> ()
    %cst_104 = arith.constant 0.353553385 : f32
    %245 = vector.broadcast %cst_104 : f32 to vector<2x8x8xf32>
    %246 = arith.mulf %244, %245 : vector<2x8x8xf32>
    %cst_105 = arith.constant dense<0xFF800000> : vector<2x8xf32>
    %247 = vector.multi_reduction <maximumf>, %246, %cst_105 [2] : vector<2x8x8xf32> to vector<2x8xf32>
    %248 = vector.shape_cast %247 : vector<2x8xf32> to vector<2x8x1xf32>
    %249 = vector.broadcast %248 : vector<2x8x1xf32> to vector<2x8x8xf32>
    %250 = arith.subf %246, %249 : vector<2x8x8xf32>
    %251 = math.exp %250 : vector<2x8x8xf32>
    %cst_106 = arith.constant dense<0.000000e+00> : vector<2x8xf32>
    %252 = vector.multi_reduction <add>, %251, %cst_106 [2] : vector<2x8x8xf32> to vector<2x8xf32>
    %253 = vector.shape_cast %252 : vector<2x8xf32> to vector<2x8x1xf32>
    %254 = tpu.reciprocal %253 {approx = true} : vector<2x8x1xf32> -> vector<2x8x1xf32>
    %255 = vector.broadcast %254 : vector<2x8x1xf32> to vector<2x8x8xf32>
    %256 = arith.mulf %251, %255 : vector<2x8x8xf32>
    %257 = vector.extract_strided_slice %239 {offsets = [0, 0, 0], sizes = [2, 8, 8], strides = [1, 1, 1]} : vector<2x8x32xf32> to vector<2x8x8xf32>
    "tpu.trace_start"() <{level = 10 : i32, message = "bij,bjd->bid"}> : () -> ()
    %cst_107 = arith.constant dense<0.000000e+00> : vector<2x8x8xf32>
    %258 = tpu.matmul %256, %257, %cst_107 {dimension_numbers = #tpu.dot_dimension_numbers<[2], [1], [1], [2], [0, 0, 0, 1, 1, 2], [0], [0]>} : vector<2x8x8xf32>, vector<2x8x8xf32>, vector<2x8x8xf32> -> vector<2x8x8xf32>
    "tpu.trace_stop"() : () -> ()
    %259 = vector.shape_cast %258 : vector<2x8x8xf32> to vector<16x8xf32>
    %c1_108 = arith.constant 1 : index
    %c0_109 = arith.constant 0 : index
    %c96_110 = arith.constant 96 : index
    %260 = vector.load %arg3[%c1_108, %c0_109, %c96_110] : memref<4x32x128xf32, #tpu.memory_space<vmem>>, vector<1x8x32xf32>
    %261 = vector.shape_cast %260 : vector<1x8x32xf32> to vector<8x32xf32>
    %cst_111 = arith.constant dense<0.000000e+00> : vector<16x32xf32>
    %262 = tpu.matmul %259, %261, %cst_111 {dimension_numbers = #tpu.dot_dimension_numbers<[1], [0], [0], [1], [0, 0, 1, 1], [], []>} : vector<16x8xf32>, vector<8x32xf32>, vector<16x32xf32> -> vector<16x32xf32>
    %263 = vector.broadcast %241 : vector<1x32xf32> to vector<16x32xf32>
    %264 = arith.addf %263, %262 : vector<16x32xf32>
    %265 = vector.extract_strided_slice %235 {offsets = [0, 0, 8], sizes = [2, 8, 8], strides = [1, 1, 1]} : vector<2x8x32xf32> to vector<2x8x8xf32>
    %266 = vector.extract_strided_slice %237 {offsets = [0, 0, 8], sizes = [2, 8, 8], strides = [1, 1, 1]} : vector<2x8x32xf32> to vector<2x8x8xf32>
    "tpu.trace_start"() <{level = 10 : i32, message = "bik,bjk->bij"}> : () -> ()
    %cst_112 = arith.constant dense<0.000000e+00> : vector<2x8x8xf32>
    %267 = tpu.matmul %265, %266, %cst_112 {dimension_numbers = #tpu.dot_dimension_numbers<[2], [2], [1], [1], [0, 0, 0, 1, 1, 1], [0], [0]>} : vector<2x8x8xf32>, vector<2x8x8xf32>, vector<2x8x8xf32> -> vector<2x8x8xf32>
    "tpu.trace_stop"() : () -> ()
    %cst_113 = arith.constant 0.353553385 : f32
    %268 = vector.broadcast %cst_113 : f32 to vector<2x8x8xf32>
    %269 = arith.mulf %267, %268 : vector<2x8x8xf32>
    %cst_114 = arith.constant dense<0xFF800000> : vector<2x8xf32>
    %270 = vector.multi_reduction <maximumf>, %269, %cst_114 [2] : vector<2x8x8xf32> to vector<2x8xf32>
    %271 = vector.shape_cast %270 : vector<2x8xf32> to vector<2x8x1xf32>
    %272 = vector.broadcast %271 : vector<2x8x1xf32> to vector<2x8x8xf32>
    %273 = arith.subf %269, %272 : vector<2x8x8xf32>
    %274 = math.exp %273 : vector<2x8x8xf32>
    %cst_115 = arith.constant dense<0.000000e+00> : vector<2x8xf32>
    %275 = vector.multi_reduction <add>, %274, %cst_115 [2] : vector<2x8x8xf32> to vector<2x8xf32>
    %276 = vector.shape_cast %275 : vector<2x8xf32> to vector<2x8x1xf32>
    %277 = tpu.reciprocal %276 {approx = true} : vector<2x8x1xf32> -> vector<2x8x1xf32>
    %278 = vector.broadcast %277 : vector<2x8x1xf32> to vector<2x8x8xf32>
    %279 = arith.mulf %274, %278 : vector<2x8x8xf32>
    %280 = vector.extract_strided_slice %239 {offsets = [0, 0, 8], sizes = [2, 8, 8], strides = [1, 1, 1]} : vector<2x8x32xf32> to vector<2x8x8xf32>
    "tpu.trace_start"() <{level = 10 : i32, message = "bij,bjd->bid"}> : () -> ()
    %cst_116 = arith.constant dense<0.000000e+00> : vector<2x8x8xf32>
    %281 = tpu.matmul %279, %280, %cst_116 {dimension_numbers = #tpu.dot_dimension_numbers<[2], [1], [1], [2], [0, 0, 0, 1, 1, 2], [0], [0]>} : vector<2x8x8xf32>, vector<2x8x8xf32>, vector<2x8x8xf32> -> vector<2x8x8xf32>
    "tpu.trace_stop"() : () -> ()
    %282 = vector.shape_cast %281 : vector<2x8x8xf32> to vector<16x8xf32>
    %c1_117 = arith.constant 1 : index
    %c8_118 = arith.constant 8 : index
    %c96_119 = arith.constant 96 : index
    %283 = vector.load %arg3[%c1_117, %c8_118, %c96_119] : memref<4x32x128xf32, #tpu.memory_space<vmem>>, vector<1x8x32xf32>
    %284 = vector.shape_cast %283 : vector<1x8x32xf32> to vector<8x32xf32>
    %cst_120 = arith.constant dense<0.000000e+00> : vector<16x32xf32>
    %285 = tpu.matmul %282, %284, %cst_120 {dimension_numbers = #tpu.dot_dimension_numbers<[1], [0], [0], [1], [0, 0, 1, 1], [], []>} : vector<16x8xf32>, vector<8x32xf32>, vector<16x32xf32> -> vector<16x32xf32>
    %286 = arith.addf %264, %285 : vector<16x32xf32>
    %287 = vector.extract_strided_slice %235 {offsets = [0, 0, 16], sizes = [2, 8, 8], strides = [1, 1, 1]} : vector<2x8x32xf32> to vector<2x8x8xf32>
    %288 = vector.extract_strided_slice %237 {offsets = [0, 0, 16], sizes = [2, 8, 8], strides = [1, 1, 1]} : vector<2x8x32xf32> to vector<2x8x8xf32>
    "tpu.trace_start"() <{level = 10 : i32, message = "bik,bjk->bij"}> : () -> ()
    %cst_121 = arith.constant dense<0.000000e+00> : vector<2x8x8xf32>
    %289 = tpu.matmul %287, %288, %cst_121 {dimension_numbers = #tpu.dot_dimension_numbers<[2], [2], [1], [1], [0, 0, 0, 1, 1, 1], [0], [0]>} : vector<2x8x8xf32>, vector<2x8x8xf32>, vector<2x8x8xf32> -> vector<2x8x8xf32>
    "tpu.trace_stop"() : () -> ()
    %cst_122 = arith.constant 0.353553385 : f32
    %290 = vector.broadcast %cst_122 : f32 to vector<2x8x8xf32>
    %291 = arith.mulf %289, %290 : vector<2x8x8xf32>
    %cst_123 = arith.constant dense<0xFF800000> : vector<2x8xf32>
    %292 = vector.multi_reduction <maximumf>, %291, %cst_123 [2] : vector<2x8x8xf32> to vector<2x8xf32>
    %293 = vector.shape_cast %292 : vector<2x8xf32> to vector<2x8x1xf32>
    %294 = vector.broadcast %293 : vector<2x8x1xf32> to vector<2x8x8xf32>
    %295 = arith.subf %291, %294 : vector<2x8x8xf32>
    %296 = math.exp %295 : vector<2x8x8xf32>
    %cst_124 = arith.constant dense<0.000000e+00> : vector<2x8xf32>
    %297 = vector.multi_reduction <add>, %296, %cst_124 [2] : vector<2x8x8xf32> to vector<2x8xf32>
    %298 = vector.shape_cast %297 : vector<2x8xf32> to vector<2x8x1xf32>
    %299 = tpu.reciprocal %298 {approx = true} : vector<2x8x1xf32> -> vector<2x8x1xf32>
    %300 = vector.broadcast %299 : vector<2x8x1xf32> to vector<2x8x8xf32>
    %301 = arith.mulf %296, %300 : vector<2x8x8xf32>
    %302 = vector.extract_strided_slice %239 {offsets = [0, 0, 16], sizes = [2, 8, 8], strides = [1, 1, 1]} : vector<2x8x32xf32> to vector<2x8x8xf32>
    "tpu.trace_start"() <{level = 10 : i32, message = "bij,bjd->bid"}> : () -> ()
    %cst_125 = arith.constant dense<0.000000e+00> : vector<2x8x8xf32>
    %303 = tpu.matmul %301, %302, %cst_125 {dimension_numbers = #tpu.dot_dimension_numbers<[2], [1], [1], [2], [0, 0, 0, 1, 1, 2], [0], [0]>} : vector<2x8x8xf32>, vector<2x8x8xf32>, vector<2x8x8xf32> -> vector<2x8x8xf32>
    "tpu.trace_stop"() : () -> ()
    %304 = vector.shape_cast %303 : vector<2x8x8xf32> to vector<16x8xf32>
    %c1_126 = arith.constant 1 : index
    %c16_127 = arith.constant 16 : index
    %c96_128 = arith.constant 96 : index
    %305 = vector.load %arg3[%c1_126, %c16_127, %c96_128] : memref<4x32x128xf32, #tpu.memory_space<vmem>>, vector<1x8x32xf32>
    %306 = vector.shape_cast %305 : vector<1x8x32xf32> to vector<8x32xf32>
    %cst_129 = arith.constant dense<0.000000e+00> : vector<16x32xf32>
    %307 = tpu.matmul %304, %306, %cst_129 {dimension_numbers = #tpu.dot_dimension_numbers<[1], [0], [0], [1], [0, 0, 1, 1], [], []>} : vector<16x8xf32>, vector<8x32xf32>, vector<16x32xf32> -> vector<16x32xf32>
    %308 = arith.addf %286, %307 : vector<16x32xf32>
    %309 = vector.extract_strided_slice %235 {offsets = [0, 0, 24], sizes = [2, 8, 8], strides = [1, 1, 1]} : vector<2x8x32xf32> to vector<2x8x8xf32>
    %310 = vector.extract_strided_slice %237 {offsets = [0, 0, 24], sizes = [2, 8, 8], strides = [1, 1, 1]} : vector<2x8x32xf32> to vector<2x8x8xf32>
    "tpu.trace_start"() <{level = 10 : i32, message = "bik,bjk->bij"}> : () -> ()
    %cst_130 = arith.constant dense<0.000000e+00> : vector<2x8x8xf32>
    %311 = tpu.matmul %309, %310, %cst_130 {dimension_numbers = #tpu.dot_dimension_numbers<[2], [2], [1], [1], [0, 0, 0, 1, 1, 1], [0], [0]>} : vector<2x8x8xf32>, vector<2x8x8xf32>, vector<2x8x8xf32> -> vector<2x8x8xf32>
    "tpu.trace_stop"() : () -> ()
    %cst_131 = arith.constant 0.353553385 : f32
    %312 = vector.broadcast %cst_131 : f32 to vector<2x8x8xf32>
    %313 = arith.mulf %311, %312 : vector<2x8x8xf32>
    %cst_132 = arith.constant dense<0xFF800000> : vector<2x8xf32>
    %314 = vector.multi_reduction <maximumf>, %313, %cst_132 [2] : vector<2x8x8xf32> to vector<2x8xf32>
    %315 = vector.shape_cast %314 : vector<2x8xf32> to vector<2x8x1xf32>
    %316 = vector.broadcast %315 : vector<2x8x1xf32> to vector<2x8x8xf32>
    %317 = arith.subf %313, %316 : vector<2x8x8xf32>
    %318 = math.exp %317 : vector<2x8x8xf32>
    %cst_133 = arith.constant dense<0.000000e+00> : vector<2x8xf32>
    %319 = vector.multi_reduction <add>, %318, %cst_133 [2] : vector<2x8x8xf32> to vector<2x8xf32>
    %320 = vector.shape_cast %319 : vector<2x8xf32> to vector<2x8x1xf32>
    %321 = tpu.reciprocal %320 {approx = true} : vector<2x8x1xf32> -> vector<2x8x1xf32>
    %322 = vector.broadcast %321 : vector<2x8x1xf32> to vector<2x8x8xf32>
    %323 = arith.mulf %318, %322 : vector<2x8x8xf32>
    %324 = vector.extract_strided_slice %239 {offsets = [0, 0, 24], sizes = [2, 8, 8], strides = [1, 1, 1]} : vector<2x8x32xf32> to vector<2x8x8xf32>
    "tpu.trace_start"() <{level = 10 : i32, message = "bij,bjd->bid"}> : () -> ()
    %cst_134 = arith.constant dense<0.000000e+00> : vector<2x8x8xf32>
    %325 = tpu.matmul %323, %324, %cst_134 {dimension_numbers = #tpu.dot_dimension_numbers<[2], [1], [1], [2], [0, 0, 0, 1, 1, 2], [0], [0]>} : vector<2x8x8xf32>, vector<2x8x8xf32>, vector<2x8x8xf32> -> vector<2x8x8xf32>
    "tpu.trace_stop"() : () -> ()
    %326 = vector.shape_cast %325 : vector<2x8x8xf32> to vector<16x8xf32>
    %c1_135 = arith.constant 1 : index
    %c24_136 = arith.constant 24 : index
    %c96_137 = arith.constant 96 : index
    %327 = vector.load %arg3[%c1_135, %c24_136, %c96_137] : memref<4x32x128xf32, #tpu.memory_space<vmem>>, vector<1x8x32xf32>
    %328 = vector.shape_cast %327 : vector<1x8x32xf32> to vector<8x32xf32>
    %cst_138 = arith.constant dense<0.000000e+00> : vector<16x32xf32>
    %329 = tpu.matmul %326, %328, %cst_138 {dimension_numbers = #tpu.dot_dimension_numbers<[1], [0], [0], [1], [0, 0, 1, 1], [], []>} : vector<16x8xf32>, vector<8x32xf32>, vector<16x32xf32> -> vector<16x32xf32>
    %330 = arith.addf %308, %329 : vector<16x32xf32>
    %331 = arith.addf %226, %330 : vector<16x32xf32>
    %c1_139 = arith.constant 1 : index
    %c0_140 = arith.constant 0 : index
    %c128_141 = arith.constant 128 : index
    %332 = vector.load %arg6[%c1_139, %c0_140, %c128_141] : memref<4x1x416xf32, #tpu.memory_space<vmem>>, vector<1x1x32xf32>
    %333 = vector.shape_cast %332 : vector<1x1x32xf32> to vector<1x32xf32>
    %c1_142 = arith.constant 1 : index
    %c0_143 = arith.constant 0 : index
    %c160_144 = arith.constant 160 : index
    %334 = vector.load %arg6[%c1_142, %c0_143, %c160_144] : memref<4x1x416xf32, #tpu.memory_space<vmem>>, vector<1x1x32xf32>
    %335 = vector.shape_cast %334 : vector<1x1x32xf32> to vector<1x32xf32>
    %cst_145 = arith.constant dense<0.000000e+00> : vector<16xf32>
    %336 = vector.multi_reduction <add>, %331, %cst_145 [1] : vector<16x32xf32> to vector<16xf32>
    %337 = vector.shape_cast %336 : vector<16xf32> to vector<16x1xf32>
    %cst_146 = arith.constant 3.200000e+01 : f32
    %338 = vector.broadcast %cst_146 : f32 to vector<16x1xf32>
    %339 = arith.divf %337, %338 : vector<16x1xf32>
    %340 = arith.mulf %331, %331 : vector<16x32xf32>
    %cst_147 = arith.constant dense<0.000000e+00> : vector<16xf32>
    %341 = vector.multi_reduction <add>, %340, %cst_147 [1] : vector<16x32xf32> to vector<16xf32>
    %342 = vector.shape_cast %341 : vector<16xf32> to vector<16x1xf32>
    %cst_148 = arith.constant 3.200000e+01 : f32
    %343 = vector.broadcast %cst_148 : f32 to vector<16x1xf32>
    %344 = arith.divf %342, %343 : vector<16x1xf32>
    %345 = arith.mulf %339, %339 : vector<16x1xf32>
    %346 = arith.subf %344, %345 : vector<16x1xf32>
    %cst_149 = arith.constant 0.000000e+00 : f32
    %347 = vector.broadcast %cst_149 : f32 to vector<16x1xf32>
    %348 = arith.maximumf %346, %347 : vector<16x1xf32>
    %349 = vector.broadcast %339 : vector<16x1xf32> to vector<16x32xf32>
    %350 = arith.subf %331, %349 : vector<16x32xf32>
    %cst_150 = arith.constant 9.99999974E-6 : f32
    %351 = vector.broadcast %cst_150 : f32 to vector<16x1xf32>
    %352 = arith.addf %348, %351 : vector<16x1xf32>
    %353 = math.rsqrt %352 : vector<16x1xf32>
    %354 = vector.broadcast %353 : vector<16x1xf32> to vector<16x32xf32>
    %355 = arith.mulf %350, %354 : vector<16x32xf32>
    %356 = vector.broadcast %333 : vector<1x32xf32> to vector<16x32xf32>
    %357 = arith.mulf %355, %356 : vector<16x32xf32>
    %358 = vector.broadcast %335 : vector<1x32xf32> to vector<16x32xf32>
    %359 = arith.addf %357, %358 : vector<16x32xf32>
    %c1_151 = arith.constant 1 : index
    %c0_152 = arith.constant 0 : index
    %c0_153 = arith.constant 0 : index
    %360 = vector.load %arg4[%c1_151, %c0_152, %c0_153] : memref<4x32x128xf32, #tpu.memory_space<vmem>>, vector<1x32x128xf32>
    %361 = vector.shape_cast %360 : vector<1x32x128xf32> to vector<32x128xf32>
    %cst_154 = arith.constant dense<0.000000e+00> : vector<16x128xf32>
    %362 = tpu.matmul %359, %361, %cst_154 {dimension_numbers = #tpu.dot_dimension_numbers<[1], [0], [0], [1], [0, 0, 1, 1], [], []>} : vector<16x32xf32>, vector<32x128xf32>, vector<16x128xf32> -> vector<16x128xf32>
    %c1_155 = arith.constant 1 : index
    %c0_156 = arith.constant 0 : index
    %c192_157 = arith.constant 192 : index
    %363 = vector.load %arg6[%c1_155, %c0_156, %c192_157] : memref<4x1x416xf32, #tpu.memory_space<vmem>>, vector<1x1x128xf32>
    %364 = vector.shape_cast %363 : vector<1x1x128xf32> to vector<1x128xf32>
    %365 = vector.broadcast %364 : vector<1x128xf32> to vector<16x128xf32>
    %366 = arith.addf %362, %365 : vector<16x128xf32>
    %cst_158 = arith.constant 5.000000e-01 : f32
    %367 = vector.broadcast %cst_158 : f32 to vector<16x128xf32>
    %368 = arith.mulf %367, %366 : vector<16x128xf32>
    %cst_159 = arith.constant 0.707106769 : f32
    %369 = vector.broadcast %cst_159 : f32 to vector<16x128xf32>
    %370 = arith.mulf %366, %369 : vector<16x128xf32>
    %371 = math.absf %370 : vector<16x128xf32>
    %cst_160 = arith.constant 0.327591091 : f32
    %372 = vector.broadcast %cst_160 : f32 to vector<16x128xf32>
    %373 = arith.mulf %372, %371 : vector<16x128xf32>
    %cst_161 = arith.constant 1.000000e+00 : f32
    %374 = vector.broadcast %cst_161 : f32 to vector<16x128xf32>
    %375 = arith.addf %374, %373 : vector<16x128xf32>
    %cst_162 = arith.constant 1.000000e+00 : f32
    %376 = vector.broadcast %cst_162 : f32 to vector<16x128xf32>
    %377 = arith.divf %376, %375 : vector<16x128xf32>
    %cst_163 = arith.constant 1.06140542 : f32
    %378 = vector.broadcast %cst_163 : f32 to vector<16x128xf32>
    %379 = arith.mulf %378, %377 : vector<16x128xf32>
    %cst_164 = arith.constant 1.45315206 : f32
    %380 = vector.broadcast %cst_164 : f32 to vector<16x128xf32>
    %381 = arith.subf %379, %380 : vector<16x128xf32>
    %382 = arith.mulf %381, %377 : vector<16x128xf32>
    %cst_165 = arith.constant 1.42141378 : f32
    %383 = vector.broadcast %cst_165 : f32 to vector<16x128xf32>
    %384 = arith.addf %382, %383 : vector<16x128xf32>
    %385 = arith.mulf %384, %377 : vector<16x128xf32>
    %cst_166 = arith.constant 0.284496725 : f32
    %386 = vector.broadcast %cst_166 : f32 to vector<16x128xf32>
    %387 = arith.subf %385, %386 : vector<16x128xf32>
    %388 = arith.mulf %387, %377 : vector<16x128xf32>
    %cst_167 = arith.constant 0.254829586 : f32
    %389 = vector.broadcast %cst_167 : f32 to vector<16x128xf32>
    %390 = arith.addf %388, %389 : vector<16x128xf32>
    %391 = arith.mulf %390, %377 : vector<16x128xf32>
    %cst_168 = arith.constant 0.000000e+00 : f32
    %392 = vector.broadcast %cst_168 : f32 to vector<16x128xf32>
    %393 = arith.subf %392, %371 : vector<16x128xf32>
    %394 = arith.mulf %393, %371 : vector<16x128xf32>
    %395 = math.exp %394 : vector<16x128xf32>
    %396 = arith.mulf %391, %395 : vector<16x128xf32>
    %cst_169 = arith.constant 1.000000e+00 : f32
    %397 = vector.broadcast %cst_169 : f32 to vector<16x128xf32>
    %398 = arith.subf %397, %396 : vector<16x128xf32>
    %cst_170 = arith.constant 0.000000e+00 : f32
    %399 = vector.broadcast %cst_170 : f32 to vector<16x128xf32>
    %400 = arith.cmpf oge, %370, %399 : vector<16x128xf32>
    %cst_171 = arith.constant 0.000000e+00 : f32
    %401 = vector.broadcast %cst_171 : f32 to vector<16x128xf32>
    %402 = arith.subf %401, %398 : vector<16x128xf32>
    %403 = arith.select %400, %398, %402 : vector<16x128xi1>, vector<16x128xf32>
    %cst_172 = arith.constant 1.000000e+00 : f32
    %404 = vector.broadcast %cst_172 : f32 to vector<16x128xf32>
    %405 = arith.addf %404, %403 : vector<16x128xf32>
    %406 = arith.mulf %368, %405 : vector<16x128xf32>
    %c1_173 = arith.constant 1 : index
    %c0_174 = arith.constant 0 : index
    %c0_175 = arith.constant 0 : index
    %407 = vector.load %arg5[%c1_173, %c0_174, %c0_175] : memref<4x128x32xf32, #tpu.memory_space<vmem>>, vector<1x128x32xf32>
    %408 = vector.shape_cast %407 : vector<1x128x32xf32> to vector<128x32xf32>
    %cst_176 = arith.constant dense<0.000000e+00> : vector<16x32xf32>
    %409 = tpu.matmul %406, %408, %cst_176 {dimension_numbers = #tpu.dot_dimension_numbers<[1], [0], [0], [1], [0, 0, 1, 1], [], []>} : vector<16x128xf32>, vector<128x32xf32>, vector<16x32xf32> -> vector<16x32xf32>
    %c1_177 = arith.constant 1 : index
    %c0_178 = arith.constant 0 : index
    %c320_179 = arith.constant 320 : index
    %410 = vector.load %arg6[%c1_177, %c0_178, %c320_179] : memref<4x1x416xf32, #tpu.memory_space<vmem>>, vector<1x1x32xf32>
    %411 = vector.shape_cast %410 : vector<1x1x32xf32> to vector<1x32xf32>
    %412 = vector.broadcast %411 : vector<1x32xf32> to vector<16x32xf32>
    %413 = arith.addf %409, %412 : vector<16x32xf32>
    %414 = arith.addf %359, %413 : vector<16x32xf32>
    %c1_180 = arith.constant 1 : index
    %c0_181 = arith.constant 0 : index
    %c352_182 = arith.constant 352 : index
    %415 = vector.load %arg6[%c1_180, %c0_181, %c352_182] : memref<4x1x416xf32, #tpu.memory_space<vmem>>, vector<1x1x32xf32>
    %416 = vector.shape_cast %415 : vector<1x1x32xf32> to vector<1x32xf32>
    %c1_183 = arith.constant 1 : index
    %c0_184 = arith.constant 0 : index
    %c384_185 = arith.constant 384 : index
    %417 = vector.load %arg6[%c1_183, %c0_184, %c384_185] : memref<4x1x416xf32, #tpu.memory_space<vmem>>, vector<1x1x32xf32>
    %418 = vector.shape_cast %417 : vector<1x1x32xf32> to vector<1x32xf32>
    %cst_186 = arith.constant dense<0.000000e+00> : vector<16xf32>
    %419 = vector.multi_reduction <add>, %414, %cst_186 [1] : vector<16x32xf32> to vector<16xf32>
    %420 = vector.shape_cast %419 : vector<16xf32> to vector<16x1xf32>
    %cst_187 = arith.constant 3.200000e+01 : f32
    %421 = vector.broadcast %cst_187 : f32 to vector<16x1xf32>
    %422 = arith.divf %420, %421 : vector<16x1xf32>
    %423 = arith.mulf %414, %414 : vector<16x32xf32>
    %cst_188 = arith.constant dense<0.000000e+00> : vector<16xf32>
    %424 = vector.multi_reduction <add>, %423, %cst_188 [1] : vector<16x32xf32> to vector<16xf32>
    %425 = vector.shape_cast %424 : vector<16xf32> to vector<16x1xf32>
    %cst_189 = arith.constant 3.200000e+01 : f32
    %426 = vector.broadcast %cst_189 : f32 to vector<16x1xf32>
    %427 = arith.divf %425, %426 : vector<16x1xf32>
    %428 = arith.mulf %422, %422 : vector<16x1xf32>
    %429 = arith.subf %427, %428 : vector<16x1xf32>
    %cst_190 = arith.constant 0.000000e+00 : f32
    %430 = vector.broadcast %cst_190 : f32 to vector<16x1xf32>
    %431 = arith.maximumf %429, %430 : vector<16x1xf32>
    %432 = vector.broadcast %422 : vector<16x1xf32> to vector<16x32xf32>
    %433 = arith.subf %414, %432 : vector<16x32xf32>
    %cst_191 = arith.constant 9.99999974E-6 : f32
    %434 = vector.broadcast %cst_191 : f32 to vector<16x1xf32>
    %435 = arith.addf %431, %434 : vector<16x1xf32>
    %436 = math.rsqrt %435 : vector<16x1xf32>
    %437 = vector.broadcast %436 : vector<16x1xf32> to vector<16x32xf32>
    %438 = arith.mulf %433, %437 : vector<16x32xf32>
    %439 = vector.broadcast %416 : vector<1x32xf32> to vector<16x32xf32>
    %440 = arith.mulf %438, %439 : vector<16x32xf32>
    %441 = vector.broadcast %418 : vector<1x32xf32> to vector<16x32xf32>
    %442 = arith.addf %440, %441 : vector<16x32xf32>
    %c0_192 = arith.constant 0 : index
    %c0_193 = arith.constant 0 : index
    %443 = vector.load %arg2[%c0_192, %c0_193] : memref<16x32xf32, #tpu.memory_space<vmem>>, vector<16x32xf32>
    %444 = arith.addf %442, %443 : vector<16x32xf32>
    %c2 = arith.constant 2 : index
    %c0_194 = arith.constant 0 : index
    %c0_195 = arith.constant 0 : index
    %445 = vector.load %arg3[%c2, %c0_194, %c0_195] : memref<4x32x128xf32, #tpu.memory_space<vmem>>, vector<1x32x96xf32>
    %446 = vector.shape_cast %445 : vector<1x32x96xf32> to vector<32x96xf32>
    %c2_196 = arith.constant 2 : index
    %c0_197 = arith.constant 0 : index
    %c0_198 = arith.constant 0 : index
    %447 = vector.load %arg6[%c2_196, %c0_197, %c0_198] : memref<4x1x416xf32, #tpu.memory_space<vmem>>, vector<1x1x96xf32>
    %448 = vector.shape_cast %447 : vector<1x1x96xf32> to vector<1x96xf32>
    %cst_199 = arith.constant dense<0.000000e+00> : vector<16x96xf32>
    %449 = tpu.matmul %444, %446, %cst_199 {dimension_numbers = #tpu.dot_dimension_numbers<[1], [0], [0], [1], [0, 0, 1, 1], [], []>} : vector<16x32xf32>, vector<32x96xf32>, vector<16x96xf32> -> vector<16x96xf32>
    %450 = vector.broadcast %448 : vector<1x96xf32> to vector<16x96xf32>
    %451 = arith.addf %449, %450 : vector<16x96xf32>
    %452 = vector.extract_strided_slice %451 {offsets = [0, 0], sizes = [16, 32], strides = [1, 1]} : vector<16x96xf32> to vector<16x32xf32>
    %453 = vector.shape_cast %452 : vector<16x32xf32> to vector<2x8x32xf32>
    %454 = vector.extract_strided_slice %451 {offsets = [0, 32], sizes = [16, 32], strides = [1, 1]} : vector<16x96xf32> to vector<16x32xf32>
    %455 = vector.shape_cast %454 : vector<16x32xf32> to vector<2x8x32xf32>
    %456 = vector.extract_strided_slice %451 {offsets = [0, 64], sizes = [16, 32], strides = [1, 1]} : vector<16x96xf32> to vector<16x32xf32>
    %457 = vector.shape_cast %456 : vector<16x32xf32> to vector<2x8x32xf32>
    %c2_200 = arith.constant 2 : index
    %c0_201 = arith.constant 0 : index
    %c96_202 = arith.constant 96 : index
    %458 = vector.load %arg6[%c2_200, %c0_201, %c96_202] : memref<4x1x416xf32, #tpu.memory_space<vmem>>, vector<1x1x32xf32>
    %459 = vector.shape_cast %458 : vector<1x1x32xf32> to vector<1x32xf32>
    %460 = vector.extract_strided_slice %453 {offsets = [0, 0, 0], sizes = [2, 8, 8], strides = [1, 1, 1]} : vector<2x8x32xf32> to vector<2x8x8xf32>
    %461 = vector.extract_strided_slice %455 {offsets = [0, 0, 0], sizes = [2, 8, 8], strides = [1, 1, 1]} : vector<2x8x32xf32> to vector<2x8x8xf32>
    "tpu.trace_start"() <{level = 10 : i32, message = "bik,bjk->bij"}> : () -> ()
    %cst_203 = arith.constant dense<0.000000e+00> : vector<2x8x8xf32>
    %462 = tpu.matmul %460, %461, %cst_203 {dimension_numbers = #tpu.dot_dimension_numbers<[2], [2], [1], [1], [0, 0, 0, 1, 1, 1], [0], [0]>} : vector<2x8x8xf32>, vector<2x8x8xf32>, vector<2x8x8xf32> -> vector<2x8x8xf32>
    "tpu.trace_stop"() : () -> ()
    %cst_204 = arith.constant 0.353553385 : f32
    %463 = vector.broadcast %cst_204 : f32 to vector<2x8x8xf32>
    %464 = arith.mulf %462, %463 : vector<2x8x8xf32>
    %cst_205 = arith.constant dense<0xFF800000> : vector<2x8xf32>
    %465 = vector.multi_reduction <maximumf>, %464, %cst_205 [2] : vector<2x8x8xf32> to vector<2x8xf32>
    %466 = vector.shape_cast %465 : vector<2x8xf32> to vector<2x8x1xf32>
    %467 = vector.broadcast %466 : vector<2x8x1xf32> to vector<2x8x8xf32>
    %468 = arith.subf %464, %467 : vector<2x8x8xf32>
    %469 = math.exp %468 : vector<2x8x8xf32>
    %cst_206 = arith.constant dense<0.000000e+00> : vector<2x8xf32>
    %470 = vector.multi_reduction <add>, %469, %cst_206 [2] : vector<2x8x8xf32> to vector<2x8xf32>
    %471 = vector.shape_cast %470 : vector<2x8xf32> to vector<2x8x1xf32>
    %472 = tpu.reciprocal %471 {approx = true} : vector<2x8x1xf32> -> vector<2x8x1xf32>
    %473 = vector.broadcast %472 : vector<2x8x1xf32> to vector<2x8x8xf32>
    %474 = arith.mulf %469, %473 : vector<2x8x8xf32>
    %475 = vector.extract_strided_slice %457 {offsets = [0, 0, 0], sizes = [2, 8, 8], strides = [1, 1, 1]} : vector<2x8x32xf32> to vector<2x8x8xf32>
    "tpu.trace_start"() <{level = 10 : i32, message = "bij,bjd->bid"}> : () -> ()
    %cst_207 = arith.constant dense<0.000000e+00> : vector<2x8x8xf32>
    %476 = tpu.matmul %474, %475, %cst_207 {dimension_numbers = #tpu.dot_dimension_numbers<[2], [1], [1], [2], [0, 0, 0, 1, 1, 2], [0], [0]>} : vector<2x8x8xf32>, vector<2x8x8xf32>, vector<2x8x8xf32> -> vector<2x8x8xf32>
    "tpu.trace_stop"() : () -> ()
    %477 = vector.shape_cast %476 : vector<2x8x8xf32> to vector<16x8xf32>
    %c2_208 = arith.constant 2 : index
    %c0_209 = arith.constant 0 : index
    %c96_210 = arith.constant 96 : index
    %478 = vector.load %arg3[%c2_208, %c0_209, %c96_210] : memref<4x32x128xf32, #tpu.memory_space<vmem>>, vector<1x8x32xf32>
    %479 = vector.shape_cast %478 : vector<1x8x32xf32> to vector<8x32xf32>
    %cst_211 = arith.constant dense<0.000000e+00> : vector<16x32xf32>
    %480 = tpu.matmul %477, %479, %cst_211 {dimension_numbers = #tpu.dot_dimension_numbers<[1], [0], [0], [1], [0, 0, 1, 1], [], []>} : vector<16x8xf32>, vector<8x32xf32>, vector<16x32xf32> -> vector<16x32xf32>
    %481 = vector.broadcast %459 : vector<1x32xf32> to vector<16x32xf32>
    %482 = arith.addf %481, %480 : vector<16x32xf32>
    %483 = vector.extract_strided_slice %453 {offsets = [0, 0, 8], sizes = [2, 8, 8], strides = [1, 1, 1]} : vector<2x8x32xf32> to vector<2x8x8xf32>
    %484 = vector.extract_strided_slice %455 {offsets = [0, 0, 8], sizes = [2, 8, 8], strides = [1, 1, 1]} : vector<2x8x32xf32> to vector<2x8x8xf32>
    "tpu.trace_start"() <{level = 10 : i32, message = "bik,bjk->bij"}> : () -> ()
    %cst_212 = arith.constant dense<0.000000e+00> : vector<2x8x8xf32>
    %485 = tpu.matmul %483, %484, %cst_212 {dimension_numbers = #tpu.dot_dimension_numbers<[2], [2], [1], [1], [0, 0, 0, 1, 1, 1], [0], [0]>} : vector<2x8x8xf32>, vector<2x8x8xf32>, vector<2x8x8xf32> -> vector<2x8x8xf32>
    "tpu.trace_stop"() : () -> ()
    %cst_213 = arith.constant 0.353553385 : f32
    %486 = vector.broadcast %cst_213 : f32 to vector<2x8x8xf32>
    %487 = arith.mulf %485, %486 : vector<2x8x8xf32>
    %cst_214 = arith.constant dense<0xFF800000> : vector<2x8xf32>
    %488 = vector.multi_reduction <maximumf>, %487, %cst_214 [2] : vector<2x8x8xf32> to vector<2x8xf32>
    %489 = vector.shape_cast %488 : vector<2x8xf32> to vector<2x8x1xf32>
    %490 = vector.broadcast %489 : vector<2x8x1xf32> to vector<2x8x8xf32>
    %491 = arith.subf %487, %490 : vector<2x8x8xf32>
    %492 = math.exp %491 : vector<2x8x8xf32>
    %cst_215 = arith.constant dense<0.000000e+00> : vector<2x8xf32>
    %493 = vector.multi_reduction <add>, %492, %cst_215 [2] : vector<2x8x8xf32> to vector<2x8xf32>
    %494 = vector.shape_cast %493 : vector<2x8xf32> to vector<2x8x1xf32>
    %495 = tpu.reciprocal %494 {approx = true} : vector<2x8x1xf32> -> vector<2x8x1xf32>
    %496 = vector.broadcast %495 : vector<2x8x1xf32> to vector<2x8x8xf32>
    %497 = arith.mulf %492, %496 : vector<2x8x8xf32>
    %498 = vector.extract_strided_slice %457 {offsets = [0, 0, 8], sizes = [2, 8, 8], strides = [1, 1, 1]} : vector<2x8x32xf32> to vector<2x8x8xf32>
    "tpu.trace_start"() <{level = 10 : i32, message = "bij,bjd->bid"}> : () -> ()
    %cst_216 = arith.constant dense<0.000000e+00> : vector<2x8x8xf32>
    %499 = tpu.matmul %497, %498, %cst_216 {dimension_numbers = #tpu.dot_dimension_numbers<[2], [1], [1], [2], [0, 0, 0, 1, 1, 2], [0], [0]>} : vector<2x8x8xf32>, vector<2x8x8xf32>, vector<2x8x8xf32> -> vector<2x8x8xf32>
    "tpu.trace_stop"() : () -> ()
    %500 = vector.shape_cast %499 : vector<2x8x8xf32> to vector<16x8xf32>
    %c2_217 = arith.constant 2 : index
    %c8_218 = arith.constant 8 : index
    %c96_219 = arith.constant 96 : index
    %501 = vector.load %arg3[%c2_217, %c8_218, %c96_219] : memref<4x32x128xf32, #tpu.memory_space<vmem>>, vector<1x8x32xf32>
    %502 = vector.shape_cast %501 : vector<1x8x32xf32> to vector<8x32xf32>
    %cst_220 = arith.constant dense<0.000000e+00> : vector<16x32xf32>
    %503 = tpu.matmul %500, %502, %cst_220 {dimension_numbers = #tpu.dot_dimension_numbers<[1], [0], [0], [1], [0, 0, 1, 1], [], []>} : vector<16x8xf32>, vector<8x32xf32>, vector<16x32xf32> -> vector<16x32xf32>
    %504 = arith.addf %482, %503 : vector<16x32xf32>
    %505 = vector.extract_strided_slice %453 {offsets = [0, 0, 16], sizes = [2, 8, 8], strides = [1, 1, 1]} : vector<2x8x32xf32> to vector<2x8x8xf32>
    %506 = vector.extract_strided_slice %455 {offsets = [0, 0, 16], sizes = [2, 8, 8], strides = [1, 1, 1]} : vector<2x8x32xf32> to vector<2x8x8xf32>
    "tpu.trace_start"() <{level = 10 : i32, message = "bik,bjk->bij"}> : () -> ()
    %cst_221 = arith.constant dense<0.000000e+00> : vector<2x8x8xf32>
    %507 = tpu.matmul %505, %506, %cst_221 {dimension_numbers = #tpu.dot_dimension_numbers<[2], [2], [1], [1], [0, 0, 0, 1, 1, 1], [0], [0]>} : vector<2x8x8xf32>, vector<2x8x8xf32>, vector<2x8x8xf32> -> vector<2x8x8xf32>
    "tpu.trace_stop"() : () -> ()
    %cst_222 = arith.constant 0.353553385 : f32
    %508 = vector.broadcast %cst_222 : f32 to vector<2x8x8xf32>
    %509 = arith.mulf %507, %508 : vector<2x8x8xf32>
    %cst_223 = arith.constant dense<0xFF800000> : vector<2x8xf32>
    %510 = vector.multi_reduction <maximumf>, %509, %cst_223 [2] : vector<2x8x8xf32> to vector<2x8xf32>
    %511 = vector.shape_cast %510 : vector<2x8xf32> to vector<2x8x1xf32>
    %512 = vector.broadcast %511 : vector<2x8x1xf32> to vector<2x8x8xf32>
    %513 = arith.subf %509, %512 : vector<2x8x8xf32>
    %514 = math.exp %513 : vector<2x8x8xf32>
    %cst_224 = arith.constant dense<0.000000e+00> : vector<2x8xf32>
    %515 = vector.multi_reduction <add>, %514, %cst_224 [2] : vector<2x8x8xf32> to vector<2x8xf32>
    %516 = vector.shape_cast %515 : vector<2x8xf32> to vector<2x8x1xf32>
    %517 = tpu.reciprocal %516 {approx = true} : vector<2x8x1xf32> -> vector<2x8x1xf32>
    %518 = vector.broadcast %517 : vector<2x8x1xf32> to vector<2x8x8xf32>
    %519 = arith.mulf %514, %518 : vector<2x8x8xf32>
    %520 = vector.extract_strided_slice %457 {offsets = [0, 0, 16], sizes = [2, 8, 8], strides = [1, 1, 1]} : vector<2x8x32xf32> to vector<2x8x8xf32>
    "tpu.trace_start"() <{level = 10 : i32, message = "bij,bjd->bid"}> : () -> ()
    %cst_225 = arith.constant dense<0.000000e+00> : vector<2x8x8xf32>
    %521 = tpu.matmul %519, %520, %cst_225 {dimension_numbers = #tpu.dot_dimension_numbers<[2], [1], [1], [2], [0, 0, 0, 1, 1, 2], [0], [0]>} : vector<2x8x8xf32>, vector<2x8x8xf32>, vector<2x8x8xf32> -> vector<2x8x8xf32>
    "tpu.trace_stop"() : () -> ()
    %522 = vector.shape_cast %521 : vector<2x8x8xf32> to vector<16x8xf32>
    %c2_226 = arith.constant 2 : index
    %c16_227 = arith.constant 16 : index
    %c96_228 = arith.constant 96 : index
    %523 = vector.load %arg3[%c2_226, %c16_227, %c96_228] : memref<4x32x128xf32, #tpu.memory_space<vmem>>, vector<1x8x32xf32>
    %524 = vector.shape_cast %523 : vector<1x8x32xf32> to vector<8x32xf32>
    %cst_229 = arith.constant dense<0.000000e+00> : vector<16x32xf32>
    %525 = tpu.matmul %522, %524, %cst_229 {dimension_numbers = #tpu.dot_dimension_numbers<[1], [0], [0], [1], [0, 0, 1, 1], [], []>} : vector<16x8xf32>, vector<8x32xf32>, vector<16x32xf32> -> vector<16x32xf32>
    %526 = arith.addf %504, %525 : vector<16x32xf32>
    %527 = vector.extract_strided_slice %453 {offsets = [0, 0, 24], sizes = [2, 8, 8], strides = [1, 1, 1]} : vector<2x8x32xf32> to vector<2x8x8xf32>
    %528 = vector.extract_strided_slice %455 {offsets = [0, 0, 24], sizes = [2, 8, 8], strides = [1, 1, 1]} : vector<2x8x32xf32> to vector<2x8x8xf32>
    "tpu.trace_start"() <{level = 10 : i32, message = "bik,bjk->bij"}> : () -> ()
    %cst_230 = arith.constant dense<0.000000e+00> : vector<2x8x8xf32>
    %529 = tpu.matmul %527, %528, %cst_230 {dimension_numbers = #tpu.dot_dimension_numbers<[2], [2], [1], [1], [0, 0, 0, 1, 1, 1], [0], [0]>} : vector<2x8x8xf32>, vector<2x8x8xf32>, vector<2x8x8xf32> -> vector<2x8x8xf32>
    "tpu.trace_stop"() : () -> ()
    %cst_231 = arith.constant 0.353553385 : f32
    %530 = vector.broadcast %cst_231 : f32 to vector<2x8x8xf32>
    %531 = arith.mulf %529, %530 : vector<2x8x8xf32>
    %cst_232 = arith.constant dense<0xFF800000> : vector<2x8xf32>
    %532 = vector.multi_reduction <maximumf>, %531, %cst_232 [2] : vector<2x8x8xf32> to vector<2x8xf32>
    %533 = vector.shape_cast %532 : vector<2x8xf32> to vector<2x8x1xf32>
    %534 = vector.broadcast %533 : vector<2x8x1xf32> to vector<2x8x8xf32>
    %535 = arith.subf %531, %534 : vector<2x8x8xf32>
    %536 = math.exp %535 : vector<2x8x8xf32>
    %cst_233 = arith.constant dense<0.000000e+00> : vector<2x8xf32>
    %537 = vector.multi_reduction <add>, %536, %cst_233 [2] : vector<2x8x8xf32> to vector<2x8xf32>
    %538 = vector.shape_cast %537 : vector<2x8xf32> to vector<2x8x1xf32>
    %539 = tpu.reciprocal %538 {approx = true} : vector<2x8x1xf32> -> vector<2x8x1xf32>
    %540 = vector.broadcast %539 : vector<2x8x1xf32> to vector<2x8x8xf32>
    %541 = arith.mulf %536, %540 : vector<2x8x8xf32>
    %542 = vector.extract_strided_slice %457 {offsets = [0, 0, 24], sizes = [2, 8, 8], strides = [1, 1, 1]} : vector<2x8x32xf32> to vector<2x8x8xf32>
    "tpu.trace_start"() <{level = 10 : i32, message = "bij,bjd->bid"}> : () -> ()
    %cst_234 = arith.constant dense<0.000000e+00> : vector<2x8x8xf32>
    %543 = tpu.matmul %541, %542, %cst_234 {dimension_numbers = #tpu.dot_dimension_numbers<[2], [1], [1], [2], [0, 0, 0, 1, 1, 2], [0], [0]>} : vector<2x8x8xf32>, vector<2x8x8xf32>, vector<2x8x8xf32> -> vector<2x8x8xf32>
    "tpu.trace_stop"() : () -> ()
    %544 = vector.shape_cast %543 : vector<2x8x8xf32> to vector<16x8xf32>
    %c2_235 = arith.constant 2 : index
    %c24_236 = arith.constant 24 : index
    %c96_237 = arith.constant 96 : index
    %545 = vector.load %arg3[%c2_235, %c24_236, %c96_237] : memref<4x32x128xf32, #tpu.memory_space<vmem>>, vector<1x8x32xf32>
    %546 = vector.shape_cast %545 : vector<1x8x32xf32> to vector<8x32xf32>
    %cst_238 = arith.constant dense<0.000000e+00> : vector<16x32xf32>
    %547 = tpu.matmul %544, %546, %cst_238 {dimension_numbers = #tpu.dot_dimension_numbers<[1], [0], [0], [1], [0, 0, 1, 1], [], []>} : vector<16x8xf32>, vector<8x32xf32>, vector<16x32xf32> -> vector<16x32xf32>
    %548 = arith.addf %526, %547 : vector<16x32xf32>
    %549 = arith.addf %444, %548 : vector<16x32xf32>
    %c2_239 = arith.constant 2 : index
    %c0_240 = arith.constant 0 : index
    %c128_241 = arith.constant 128 : index
    %550 = vector.load %arg6[%c2_239, %c0_240, %c128_241] : memref<4x1x416xf32, #tpu.memory_space<vmem>>, vector<1x1x32xf32>
    %551 = vector.shape_cast %550 : vector<1x1x32xf32> to vector<1x32xf32>
    %c2_242 = arith.constant 2 : index
    %c0_243 = arith.constant 0 : index
    %c160_244 = arith.constant 160 : index
    %552 = vector.load %arg6[%c2_242, %c0_243, %c160_244] : memref<4x1x416xf32, #tpu.memory_space<vmem>>, vector<1x1x32xf32>
    %553 = vector.shape_cast %552 : vector<1x1x32xf32> to vector<1x32xf32>
    %cst_245 = arith.constant dense<0.000000e+00> : vector<16xf32>
    %554 = vector.multi_reduction <add>, %549, %cst_245 [1] : vector<16x32xf32> to vector<16xf32>
    %555 = vector.shape_cast %554 : vector<16xf32> to vector<16x1xf32>
    %cst_246 = arith.constant 3.200000e+01 : f32
    %556 = vector.broadcast %cst_246 : f32 to vector<16x1xf32>
    %557 = arith.divf %555, %556 : vector<16x1xf32>
    %558 = arith.mulf %549, %549 : vector<16x32xf32>
    %cst_247 = arith.constant dense<0.000000e+00> : vector<16xf32>
    %559 = vector.multi_reduction <add>, %558, %cst_247 [1] : vector<16x32xf32> to vector<16xf32>
    %560 = vector.shape_cast %559 : vector<16xf32> to vector<16x1xf32>
    %cst_248 = arith.constant 3.200000e+01 : f32
    %561 = vector.broadcast %cst_248 : f32 to vector<16x1xf32>
    %562 = arith.divf %560, %561 : vector<16x1xf32>
    %563 = arith.mulf %557, %557 : vector<16x1xf32>
    %564 = arith.subf %562, %563 : vector<16x1xf32>
    %cst_249 = arith.constant 0.000000e+00 : f32
    %565 = vector.broadcast %cst_249 : f32 to vector<16x1xf32>
    %566 = arith.maximumf %564, %565 : vector<16x1xf32>
    %567 = vector.broadcast %557 : vector<16x1xf32> to vector<16x32xf32>
    %568 = arith.subf %549, %567 : vector<16x32xf32>
    %cst_250 = arith.constant 9.99999974E-6 : f32
    %569 = vector.broadcast %cst_250 : f32 to vector<16x1xf32>
    %570 = arith.addf %566, %569 : vector<16x1xf32>
    %571 = math.rsqrt %570 : vector<16x1xf32>
    %572 = vector.broadcast %571 : vector<16x1xf32> to vector<16x32xf32>
    %573 = arith.mulf %568, %572 : vector<16x32xf32>
    %574 = vector.broadcast %551 : vector<1x32xf32> to vector<16x32xf32>
    %575 = arith.mulf %573, %574 : vector<16x32xf32>
    %576 = vector.broadcast %553 : vector<1x32xf32> to vector<16x32xf32>
    %577 = arith.addf %575, %576 : vector<16x32xf32>
    %c2_251 = arith.constant 2 : index
    %c0_252 = arith.constant 0 : index
    %c0_253 = arith.constant 0 : index
    %578 = vector.load %arg4[%c2_251, %c0_252, %c0_253] : memref<4x32x128xf32, #tpu.memory_space<vmem>>, vector<1x32x128xf32>
    %579 = vector.shape_cast %578 : vector<1x32x128xf32> to vector<32x128xf32>
    %cst_254 = arith.constant dense<0.000000e+00> : vector<16x128xf32>
    %580 = tpu.matmul %577, %579, %cst_254 {dimension_numbers = #tpu.dot_dimension_numbers<[1], [0], [0], [1], [0, 0, 1, 1], [], []>} : vector<16x32xf32>, vector<32x128xf32>, vector<16x128xf32> -> vector<16x128xf32>
    %c2_255 = arith.constant 2 : index
    %c0_256 = arith.constant 0 : index
    %c192_257 = arith.constant 192 : index
    %581 = vector.load %arg6[%c2_255, %c0_256, %c192_257] : memref<4x1x416xf32, #tpu.memory_space<vmem>>, vector<1x1x128xf32>
    %582 = vector.shape_cast %581 : vector<1x1x128xf32> to vector<1x128xf32>
    %583 = vector.broadcast %582 : vector<1x128xf32> to vector<16x128xf32>
    %584 = arith.addf %580, %583 : vector<16x128xf32>
    %cst_258 = arith.constant 5.000000e-01 : f32
    %585 = vector.broadcast %cst_258 : f32 to vector<16x128xf32>
    %586 = arith.mulf %585, %584 : vector<16x128xf32>
    %cst_259 = arith.constant 0.707106769 : f32
    %587 = vector.broadcast %cst_259 : f32 to vector<16x128xf32>
    %588 = arith.mulf %584, %587 : vector<16x128xf32>
    %589 = math.absf %588 : vector<16x128xf32>
    %cst_260 = arith.constant 0.327591091 : f32
    %590 = vector.broadcast %cst_260 : f32 to vector<16x128xf32>
    %591 = arith.mulf %590, %589 : vector<16x128xf32>
    %cst_261 = arith.constant 1.000000e+00 : f32
    %592 = vector.broadcast %cst_261 : f32 to vector<16x128xf32>
    %593 = arith.addf %592, %591 : vector<16x128xf32>
    %cst_262 = arith.constant 1.000000e+00 : f32
    %594 = vector.broadcast %cst_262 : f32 to vector<16x128xf32>
    %595 = arith.divf %594, %593 : vector<16x128xf32>
    %cst_263 = arith.constant 1.06140542 : f32
    %596 = vector.broadcast %cst_263 : f32 to vector<16x128xf32>
    %597 = arith.mulf %596, %595 : vector<16x128xf32>
    %cst_264 = arith.constant 1.45315206 : f32
    %598 = vector.broadcast %cst_264 : f32 to vector<16x128xf32>
    %599 = arith.subf %597, %598 : vector<16x128xf32>
    %600 = arith.mulf %599, %595 : vector<16x128xf32>
    %cst_265 = arith.constant 1.42141378 : f32
    %601 = vector.broadcast %cst_265 : f32 to vector<16x128xf32>
    %602 = arith.addf %600, %601 : vector<16x128xf32>
    %603 = arith.mulf %602, %595 : vector<16x128xf32>
    %cst_266 = arith.constant 0.284496725 : f32
    %604 = vector.broadcast %cst_266 : f32 to vector<16x128xf32>
    %605 = arith.subf %603, %604 : vector<16x128xf32>
    %606 = arith.mulf %605, %595 : vector<16x128xf32>
    %cst_267 = arith.constant 0.254829586 : f32
    %607 = vector.broadcast %cst_267 : f32 to vector<16x128xf32>
    %608 = arith.addf %606, %607 : vector<16x128xf32>
    %609 = arith.mulf %608, %595 : vector<16x128xf32>
    %cst_268 = arith.constant 0.000000e+00 : f32
    %610 = vector.broadcast %cst_268 : f32 to vector<16x128xf32>
    %611 = arith.subf %610, %589 : vector<16x128xf32>
    %612 = arith.mulf %611, %589 : vector<16x128xf32>
    %613 = math.exp %612 : vector<16x128xf32>
    %614 = arith.mulf %609, %613 : vector<16x128xf32>
    %cst_269 = arith.constant 1.000000e+00 : f32
    %615 = vector.broadcast %cst_269 : f32 to vector<16x128xf32>
    %616 = arith.subf %615, %614 : vector<16x128xf32>
    %cst_270 = arith.constant 0.000000e+00 : f32
    %617 = vector.broadcast %cst_270 : f32 to vector<16x128xf32>
    %618 = arith.cmpf oge, %588, %617 : vector<16x128xf32>
    %cst_271 = arith.constant 0.000000e+00 : f32
    %619 = vector.broadcast %cst_271 : f32 to vector<16x128xf32>
    %620 = arith.subf %619, %616 : vector<16x128xf32>
    %621 = arith.select %618, %616, %620 : vector<16x128xi1>, vector<16x128xf32>
    %cst_272 = arith.constant 1.000000e+00 : f32
    %622 = vector.broadcast %cst_272 : f32 to vector<16x128xf32>
    %623 = arith.addf %622, %621 : vector<16x128xf32>
    %624 = arith.mulf %586, %623 : vector<16x128xf32>
    %c2_273 = arith.constant 2 : index
    %c0_274 = arith.constant 0 : index
    %c0_275 = arith.constant 0 : index
    %625 = vector.load %arg5[%c2_273, %c0_274, %c0_275] : memref<4x128x32xf32, #tpu.memory_space<vmem>>, vector<1x128x32xf32>
    %626 = vector.shape_cast %625 : vector<1x128x32xf32> to vector<128x32xf32>
    %cst_276 = arith.constant dense<0.000000e+00> : vector<16x32xf32>
    %627 = tpu.matmul %624, %626, %cst_276 {dimension_numbers = #tpu.dot_dimension_numbers<[1], [0], [0], [1], [0, 0, 1, 1], [], []>} : vector<16x128xf32>, vector<128x32xf32>, vector<16x32xf32> -> vector<16x32xf32>
    %c2_277 = arith.constant 2 : index
    %c0_278 = arith.constant 0 : index
    %c320_279 = arith.constant 320 : index
    %628 = vector.load %arg6[%c2_277, %c0_278, %c320_279] : memref<4x1x416xf32, #tpu.memory_space<vmem>>, vector<1x1x32xf32>
    %629 = vector.shape_cast %628 : vector<1x1x32xf32> to vector<1x32xf32>
    %630 = vector.broadcast %629 : vector<1x32xf32> to vector<16x32xf32>
    %631 = arith.addf %627, %630 : vector<16x32xf32>
    %632 = arith.addf %577, %631 : vector<16x32xf32>
    %c2_280 = arith.constant 2 : index
    %c0_281 = arith.constant 0 : index
    %c352_282 = arith.constant 352 : index
    %633 = vector.load %arg6[%c2_280, %c0_281, %c352_282] : memref<4x1x416xf32, #tpu.memory_space<vmem>>, vector<1x1x32xf32>
    %634 = vector.shape_cast %633 : vector<1x1x32xf32> to vector<1x32xf32>
    %c2_283 = arith.constant 2 : index
    %c0_284 = arith.constant 0 : index
    %c384_285 = arith.constant 384 : index
    %635 = vector.load %arg6[%c2_283, %c0_284, %c384_285] : memref<4x1x416xf32, #tpu.memory_space<vmem>>, vector<1x1x32xf32>
    %636 = vector.shape_cast %635 : vector<1x1x32xf32> to vector<1x32xf32>
    %cst_286 = arith.constant dense<0.000000e+00> : vector<16xf32>
    %637 = vector.multi_reduction <add>, %632, %cst_286 [1] : vector<16x32xf32> to vector<16xf32>
    %638 = vector.shape_cast %637 : vector<16xf32> to vector<16x1xf32>
    %cst_287 = arith.constant 3.200000e+01 : f32
    %639 = vector.broadcast %cst_287 : f32 to vector<16x1xf32>
    %640 = arith.divf %638, %639 : vector<16x1xf32>
    %641 = arith.mulf %632, %632 : vector<16x32xf32>
    %cst_288 = arith.constant dense<0.000000e+00> : vector<16xf32>
    %642 = vector.multi_reduction <add>, %641, %cst_288 [1] : vector<16x32xf32> to vector<16xf32>
    %643 = vector.shape_cast %642 : vector<16xf32> to vector<16x1xf32>
    %cst_289 = arith.constant 3.200000e+01 : f32
    %644 = vector.broadcast %cst_289 : f32 to vector<16x1xf32>
    %645 = arith.divf %643, %644 : vector<16x1xf32>
    %646 = arith.mulf %640, %640 : vector<16x1xf32>
    %647 = arith.subf %645, %646 : vector<16x1xf32>
    %cst_290 = arith.constant 0.000000e+00 : f32
    %648 = vector.broadcast %cst_290 : f32 to vector<16x1xf32>
    %649 = arith.maximumf %647, %648 : vector<16x1xf32>
    %650 = vector.broadcast %640 : vector<16x1xf32> to vector<16x32xf32>
    %651 = arith.subf %632, %650 : vector<16x32xf32>
    %cst_291 = arith.constant 9.99999974E-6 : f32
    %652 = vector.broadcast %cst_291 : f32 to vector<16x1xf32>
    %653 = arith.addf %649, %652 : vector<16x1xf32>
    %654 = math.rsqrt %653 : vector<16x1xf32>
    %655 = vector.broadcast %654 : vector<16x1xf32> to vector<16x32xf32>
    %656 = arith.mulf %651, %655 : vector<16x32xf32>
    %657 = vector.broadcast %634 : vector<1x32xf32> to vector<16x32xf32>
    %658 = arith.mulf %656, %657 : vector<16x32xf32>
    %659 = vector.broadcast %636 : vector<1x32xf32> to vector<16x32xf32>
    %660 = arith.addf %658, %659 : vector<16x32xf32>
    %c3 = arith.constant 3 : index
    %c0_292 = arith.constant 0 : index
    %c0_293 = arith.constant 0 : index
    %661 = vector.load %arg3[%c3, %c0_292, %c0_293] : memref<4x32x128xf32, #tpu.memory_space<vmem>>, vector<1x32x96xf32>
    %662 = vector.shape_cast %661 : vector<1x32x96xf32> to vector<32x96xf32>
    %c3_294 = arith.constant 3 : index
    %c0_295 = arith.constant 0 : index
    %c0_296 = arith.constant 0 : index
    %663 = vector.load %arg6[%c3_294, %c0_295, %c0_296] : memref<4x1x416xf32, #tpu.memory_space<vmem>>, vector<1x1x96xf32>
    %664 = vector.shape_cast %663 : vector<1x1x96xf32> to vector<1x96xf32>
    %cst_297 = arith.constant dense<0.000000e+00> : vector<16x96xf32>
    %665 = tpu.matmul %660, %662, %cst_297 {dimension_numbers = #tpu.dot_dimension_numbers<[1], [0], [0], [1], [0, 0, 1, 1], [], []>} : vector<16x32xf32>, vector<32x96xf32>, vector<16x96xf32> -> vector<16x96xf32>
    %666 = vector.broadcast %664 : vector<1x96xf32> to vector<16x96xf32>
    %667 = arith.addf %665, %666 : vector<16x96xf32>
    %668 = vector.extract_strided_slice %667 {offsets = [0, 0], sizes = [16, 32], strides = [1, 1]} : vector<16x96xf32> to vector<16x32xf32>
    %669 = vector.shape_cast %668 : vector<16x32xf32> to vector<2x8x32xf32>
    %670 = vector.extract_strided_slice %667 {offsets = [0, 32], sizes = [16, 32], strides = [1, 1]} : vector<16x96xf32> to vector<16x32xf32>
    %671 = vector.shape_cast %670 : vector<16x32xf32> to vector<2x8x32xf32>
    %672 = vector.extract_strided_slice %667 {offsets = [0, 64], sizes = [16, 32], strides = [1, 1]} : vector<16x96xf32> to vector<16x32xf32>
    %673 = vector.shape_cast %672 : vector<16x32xf32> to vector<2x8x32xf32>
    %c3_298 = arith.constant 3 : index
    %c0_299 = arith.constant 0 : index
    %c96_300 = arith.constant 96 : index
    %674 = vector.load %arg6[%c3_298, %c0_299, %c96_300] : memref<4x1x416xf32, #tpu.memory_space<vmem>>, vector<1x1x32xf32>
    %675 = vector.shape_cast %674 : vector<1x1x32xf32> to vector<1x32xf32>
    %676 = vector.extract_strided_slice %669 {offsets = [0, 0, 0], sizes = [2, 8, 8], strides = [1, 1, 1]} : vector<2x8x32xf32> to vector<2x8x8xf32>
    %677 = vector.extract_strided_slice %671 {offsets = [0, 0, 0], sizes = [2, 8, 8], strides = [1, 1, 1]} : vector<2x8x32xf32> to vector<2x8x8xf32>
    "tpu.trace_start"() <{level = 10 : i32, message = "bik,bjk->bij"}> : () -> ()
    %cst_301 = arith.constant dense<0.000000e+00> : vector<2x8x8xf32>
    %678 = tpu.matmul %676, %677, %cst_301 {dimension_numbers = #tpu.dot_dimension_numbers<[2], [2], [1], [1], [0, 0, 0, 1, 1, 1], [0], [0]>} : vector<2x8x8xf32>, vector<2x8x8xf32>, vector<2x8x8xf32> -> vector<2x8x8xf32>
    "tpu.trace_stop"() : () -> ()
    %cst_302 = arith.constant 0.353553385 : f32
    %679 = vector.broadcast %cst_302 : f32 to vector<2x8x8xf32>
    %680 = arith.mulf %678, %679 : vector<2x8x8xf32>
    %cst_303 = arith.constant dense<0xFF800000> : vector<2x8xf32>
    %681 = vector.multi_reduction <maximumf>, %680, %cst_303 [2] : vector<2x8x8xf32> to vector<2x8xf32>
    %682 = vector.shape_cast %681 : vector<2x8xf32> to vector<2x8x1xf32>
    %683 = vector.broadcast %682 : vector<2x8x1xf32> to vector<2x8x8xf32>
    %684 = arith.subf %680, %683 : vector<2x8x8xf32>
    %685 = math.exp %684 : vector<2x8x8xf32>
    %cst_304 = arith.constant dense<0.000000e+00> : vector<2x8xf32>
    %686 = vector.multi_reduction <add>, %685, %cst_304 [2] : vector<2x8x8xf32> to vector<2x8xf32>
    %687 = vector.shape_cast %686 : vector<2x8xf32> to vector<2x8x1xf32>
    %688 = tpu.reciprocal %687 {approx = true} : vector<2x8x1xf32> -> vector<2x8x1xf32>
    %689 = vector.broadcast %688 : vector<2x8x1xf32> to vector<2x8x8xf32>
    %690 = arith.mulf %685, %689 : vector<2x8x8xf32>
    %691 = vector.extract_strided_slice %673 {offsets = [0, 0, 0], sizes = [2, 8, 8], strides = [1, 1, 1]} : vector<2x8x32xf32> to vector<2x8x8xf32>
    "tpu.trace_start"() <{level = 10 : i32, message = "bij,bjd->bid"}> : () -> ()
    %cst_305 = arith.constant dense<0.000000e+00> : vector<2x8x8xf32>
    %692 = tpu.matmul %690, %691, %cst_305 {dimension_numbers = #tpu.dot_dimension_numbers<[2], [1], [1], [2], [0, 0, 0, 1, 1, 2], [0], [0]>} : vector<2x8x8xf32>, vector<2x8x8xf32>, vector<2x8x8xf32> -> vector<2x8x8xf32>
    "tpu.trace_stop"() : () -> ()
    %693 = vector.shape_cast %692 : vector<2x8x8xf32> to vector<16x8xf32>
    %c3_306 = arith.constant 3 : index
    %c0_307 = arith.constant 0 : index
    %c96_308 = arith.constant 96 : index
    %694 = vector.load %arg3[%c3_306, %c0_307, %c96_308] : memref<4x32x128xf32, #tpu.memory_space<vmem>>, vector<1x8x32xf32>
    %695 = vector.shape_cast %694 : vector<1x8x32xf32> to vector<8x32xf32>
    %cst_309 = arith.constant dense<0.000000e+00> : vector<16x32xf32>
    %696 = tpu.matmul %693, %695, %cst_309 {dimension_numbers = #tpu.dot_dimension_numbers<[1], [0], [0], [1], [0, 0, 1, 1], [], []>} : vector<16x8xf32>, vector<8x32xf32>, vector<16x32xf32> -> vector<16x32xf32>
    %697 = vector.broadcast %675 : vector<1x32xf32> to vector<16x32xf32>
    %698 = arith.addf %697, %696 : vector<16x32xf32>
    %699 = vector.extract_strided_slice %669 {offsets = [0, 0, 8], sizes = [2, 8, 8], strides = [1, 1, 1]} : vector<2x8x32xf32> to vector<2x8x8xf32>
    %700 = vector.extract_strided_slice %671 {offsets = [0, 0, 8], sizes = [2, 8, 8], strides = [1, 1, 1]} : vector<2x8x32xf32> to vector<2x8x8xf32>
    "tpu.trace_start"() <{level = 10 : i32, message = "bik,bjk->bij"}> : () -> ()
    %cst_310 = arith.constant dense<0.000000e+00> : vector<2x8x8xf32>
    %701 = tpu.matmul %699, %700, %cst_310 {dimension_numbers = #tpu.dot_dimension_numbers<[2], [2], [1], [1], [0, 0, 0, 1, 1, 1], [0], [0]>} : vector<2x8x8xf32>, vector<2x8x8xf32>, vector<2x8x8xf32> -> vector<2x8x8xf32>
    "tpu.trace_stop"() : () -> ()
    %cst_311 = arith.constant 0.353553385 : f32
    %702 = vector.broadcast %cst_311 : f32 to vector<2x8x8xf32>
    %703 = arith.mulf %701, %702 : vector<2x8x8xf32>
    %cst_312 = arith.constant dense<0xFF800000> : vector<2x8xf32>
    %704 = vector.multi_reduction <maximumf>, %703, %cst_312 [2] : vector<2x8x8xf32> to vector<2x8xf32>
    %705 = vector.shape_cast %704 : vector<2x8xf32> to vector<2x8x1xf32>
    %706 = vector.broadcast %705 : vector<2x8x1xf32> to vector<2x8x8xf32>
    %707 = arith.subf %703, %706 : vector<2x8x8xf32>
    %708 = math.exp %707 : vector<2x8x8xf32>
    %cst_313 = arith.constant dense<0.000000e+00> : vector<2x8xf32>
    %709 = vector.multi_reduction <add>, %708, %cst_313 [2] : vector<2x8x8xf32> to vector<2x8xf32>
    %710 = vector.shape_cast %709 : vector<2x8xf32> to vector<2x8x1xf32>
    %711 = tpu.reciprocal %710 {approx = true} : vector<2x8x1xf32> -> vector<2x8x1xf32>
    %712 = vector.broadcast %711 : vector<2x8x1xf32> to vector<2x8x8xf32>
    %713 = arith.mulf %708, %712 : vector<2x8x8xf32>
    %714 = vector.extract_strided_slice %673 {offsets = [0, 0, 8], sizes = [2, 8, 8], strides = [1, 1, 1]} : vector<2x8x32xf32> to vector<2x8x8xf32>
    "tpu.trace_start"() <{level = 10 : i32, message = "bij,bjd->bid"}> : () -> ()
    %cst_314 = arith.constant dense<0.000000e+00> : vector<2x8x8xf32>
    %715 = tpu.matmul %713, %714, %cst_314 {dimension_numbers = #tpu.dot_dimension_numbers<[2], [1], [1], [2], [0, 0, 0, 1, 1, 2], [0], [0]>} : vector<2x8x8xf32>, vector<2x8x8xf32>, vector<2x8x8xf32> -> vector<2x8x8xf32>
    "tpu.trace_stop"() : () -> ()
    %716 = vector.shape_cast %715 : vector<2x8x8xf32> to vector<16x8xf32>
    %c3_315 = arith.constant 3 : index
    %c8_316 = arith.constant 8 : index
    %c96_317 = arith.constant 96 : index
    %717 = vector.load %arg3[%c3_315, %c8_316, %c96_317] : memref<4x32x128xf32, #tpu.memory_space<vmem>>, vector<1x8x32xf32>
    %718 = vector.shape_cast %717 : vector<1x8x32xf32> to vector<8x32xf32>
    %cst_318 = arith.constant dense<0.000000e+00> : vector<16x32xf32>
    %719 = tpu.matmul %716, %718, %cst_318 {dimension_numbers = #tpu.dot_dimension_numbers<[1], [0], [0], [1], [0, 0, 1, 1], [], []>} : vector<16x8xf32>, vector<8x32xf32>, vector<16x32xf32> -> vector<16x32xf32>
    %720 = arith.addf %698, %719 : vector<16x32xf32>
    %721 = vector.extract_strided_slice %669 {offsets = [0, 0, 16], sizes = [2, 8, 8], strides = [1, 1, 1]} : vector<2x8x32xf32> to vector<2x8x8xf32>
    %722 = vector.extract_strided_slice %671 {offsets = [0, 0, 16], sizes = [2, 8, 8], strides = [1, 1, 1]} : vector<2x8x32xf32> to vector<2x8x8xf32>
    "tpu.trace_start"() <{level = 10 : i32, message = "bik,bjk->bij"}> : () -> ()
    %cst_319 = arith.constant dense<0.000000e+00> : vector<2x8x8xf32>
    %723 = tpu.matmul %721, %722, %cst_319 {dimension_numbers = #tpu.dot_dimension_numbers<[2], [2], [1], [1], [0, 0, 0, 1, 1, 1], [0], [0]>} : vector<2x8x8xf32>, vector<2x8x8xf32>, vector<2x8x8xf32> -> vector<2x8x8xf32>
    "tpu.trace_stop"() : () -> ()
    %cst_320 = arith.constant 0.353553385 : f32
    %724 = vector.broadcast %cst_320 : f32 to vector<2x8x8xf32>
    %725 = arith.mulf %723, %724 : vector<2x8x8xf32>
    %cst_321 = arith.constant dense<0xFF800000> : vector<2x8xf32>
    %726 = vector.multi_reduction <maximumf>, %725, %cst_321 [2] : vector<2x8x8xf32> to vector<2x8xf32>
    %727 = vector.shape_cast %726 : vector<2x8xf32> to vector<2x8x1xf32>
    %728 = vector.broadcast %727 : vector<2x8x1xf32> to vector<2x8x8xf32>
    %729 = arith.subf %725, %728 : vector<2x8x8xf32>
    %730 = math.exp %729 : vector<2x8x8xf32>
    %cst_322 = arith.constant dense<0.000000e+00> : vector<2x8xf32>
    %731 = vector.multi_reduction <add>, %730, %cst_322 [2] : vector<2x8x8xf32> to vector<2x8xf32>
    %732 = vector.shape_cast %731 : vector<2x8xf32> to vector<2x8x1xf32>
    %733 = tpu.reciprocal %732 {approx = true} : vector<2x8x1xf32> -> vector<2x8x1xf32>
    %734 = vector.broadcast %733 : vector<2x8x1xf32> to vector<2x8x8xf32>
    %735 = arith.mulf %730, %734 : vector<2x8x8xf32>
    %736 = vector.extract_strided_slice %673 {offsets = [0, 0, 16], sizes = [2, 8, 8], strides = [1, 1, 1]} : vector<2x8x32xf32> to vector<2x8x8xf32>
    "tpu.trace_start"() <{level = 10 : i32, message = "bij,bjd->bid"}> : () -> ()
    %cst_323 = arith.constant dense<0.000000e+00> : vector<2x8x8xf32>
    %737 = tpu.matmul %735, %736, %cst_323 {dimension_numbers = #tpu.dot_dimension_numbers<[2], [1], [1], [2], [0, 0, 0, 1, 1, 2], [0], [0]>} : vector<2x8x8xf32>, vector<2x8x8xf32>, vector<2x8x8xf32> -> vector<2x8x8xf32>
    "tpu.trace_stop"() : () -> ()
    %738 = vector.shape_cast %737 : vector<2x8x8xf32> to vector<16x8xf32>
    %c3_324 = arith.constant 3 : index
    %c16_325 = arith.constant 16 : index
    %c96_326 = arith.constant 96 : index
    %739 = vector.load %arg3[%c3_324, %c16_325, %c96_326] : memref<4x32x128xf32, #tpu.memory_space<vmem>>, vector<1x8x32xf32>
    %740 = vector.shape_cast %739 : vector<1x8x32xf32> to vector<8x32xf32>
    %cst_327 = arith.constant dense<0.000000e+00> : vector<16x32xf32>
    %741 = tpu.matmul %738, %740, %cst_327 {dimension_numbers = #tpu.dot_dimension_numbers<[1], [0], [0], [1], [0, 0, 1, 1], [], []>} : vector<16x8xf32>, vector<8x32xf32>, vector<16x32xf32> -> vector<16x32xf32>
    %742 = arith.addf %720, %741 : vector<16x32xf32>
    %743 = vector.extract_strided_slice %669 {offsets = [0, 0, 24], sizes = [2, 8, 8], strides = [1, 1, 1]} : vector<2x8x32xf32> to vector<2x8x8xf32>
    %744 = vector.extract_strided_slice %671 {offsets = [0, 0, 24], sizes = [2, 8, 8], strides = [1, 1, 1]} : vector<2x8x32xf32> to vector<2x8x8xf32>
    "tpu.trace_start"() <{level = 10 : i32, message = "bik,bjk->bij"}> : () -> ()
    %cst_328 = arith.constant dense<0.000000e+00> : vector<2x8x8xf32>
    %745 = tpu.matmul %743, %744, %cst_328 {dimension_numbers = #tpu.dot_dimension_numbers<[2], [2], [1], [1], [0, 0, 0, 1, 1, 1], [0], [0]>} : vector<2x8x8xf32>, vector<2x8x8xf32>, vector<2x8x8xf32> -> vector<2x8x8xf32>
    "tpu.trace_stop"() : () -> ()
    %cst_329 = arith.constant 0.353553385 : f32
    %746 = vector.broadcast %cst_329 : f32 to vector<2x8x8xf32>
    %747 = arith.mulf %745, %746 : vector<2x8x8xf32>
    %cst_330 = arith.constant dense<0xFF800000> : vector<2x8xf32>
    %748 = vector.multi_reduction <maximumf>, %747, %cst_330 [2] : vector<2x8x8xf32> to vector<2x8xf32>
    %749 = vector.shape_cast %748 : vector<2x8xf32> to vector<2x8x1xf32>
    %750 = vector.broadcast %749 : vector<2x8x1xf32> to vector<2x8x8xf32>
    %751 = arith.subf %747, %750 : vector<2x8x8xf32>
    %752 = math.exp %751 : vector<2x8x8xf32>
    %cst_331 = arith.constant dense<0.000000e+00> : vector<2x8xf32>
    %753 = vector.multi_reduction <add>, %752, %cst_331 [2] : vector<2x8x8xf32> to vector<2x8xf32>
    %754 = vector.shape_cast %753 : vector<2x8xf32> to vector<2x8x1xf32>
    %755 = tpu.reciprocal %754 {approx = true} : vector<2x8x1xf32> -> vector<2x8x1xf32>
    %756 = vector.broadcast %755 : vector<2x8x1xf32> to vector<2x8x8xf32>
    %757 = arith.mulf %752, %756 : vector<2x8x8xf32>
    %758 = vector.extract_strided_slice %673 {offsets = [0, 0, 24], sizes = [2, 8, 8], strides = [1, 1, 1]} : vector<2x8x32xf32> to vector<2x8x8xf32>
    "tpu.trace_start"() <{level = 10 : i32, message = "bij,bjd->bid"}> : () -> ()
    %cst_332 = arith.constant dense<0.000000e+00> : vector<2x8x8xf32>
    %759 = tpu.matmul %757, %758, %cst_332 {dimension_numbers = #tpu.dot_dimension_numbers<[2], [1], [1], [2], [0, 0, 0, 1, 1, 2], [0], [0]>} : vector<2x8x8xf32>, vector<2x8x8xf32>, vector<2x8x8xf32> -> vector<2x8x8xf32>
    "tpu.trace_stop"() : () -> ()
    %760 = vector.shape_cast %759 : vector<2x8x8xf32> to vector<16x8xf32>
    %c3_333 = arith.constant 3 : index
    %c24_334 = arith.constant 24 : index
    %c96_335 = arith.constant 96 : index
    %761 = vector.load %arg3[%c3_333, %c24_334, %c96_335] : memref<4x32x128xf32, #tpu.memory_space<vmem>>, vector<1x8x32xf32>
    %762 = vector.shape_cast %761 : vector<1x8x32xf32> to vector<8x32xf32>
    %cst_336 = arith.constant dense<0.000000e+00> : vector<16x32xf32>
    %763 = tpu.matmul %760, %762, %cst_336 {dimension_numbers = #tpu.dot_dimension_numbers<[1], [0], [0], [1], [0, 0, 1, 1], [], []>} : vector<16x8xf32>, vector<8x32xf32>, vector<16x32xf32> -> vector<16x32xf32>
    %764 = arith.addf %742, %763 : vector<16x32xf32>
    %765 = arith.addf %660, %764 : vector<16x32xf32>
    %c3_337 = arith.constant 3 : index
    %c0_338 = arith.constant 0 : index
    %c128_339 = arith.constant 128 : index
    %766 = vector.load %arg6[%c3_337, %c0_338, %c128_339] : memref<4x1x416xf32, #tpu.memory_space<vmem>>, vector<1x1x32xf32>
    %767 = vector.shape_cast %766 : vector<1x1x32xf32> to vector<1x32xf32>
    %c3_340 = arith.constant 3 : index
    %c0_341 = arith.constant 0 : index
    %c160_342 = arith.constant 160 : index
    %768 = vector.load %arg6[%c3_340, %c0_341, %c160_342] : memref<4x1x416xf32, #tpu.memory_space<vmem>>, vector<1x1x32xf32>
    %769 = vector.shape_cast %768 : vector<1x1x32xf32> to vector<1x32xf32>
    %cst_343 = arith.constant dense<0.000000e+00> : vector<16xf32>
    %770 = vector.multi_reduction <add>, %765, %cst_343 [1] : vector<16x32xf32> to vector<16xf32>
    %771 = vector.shape_cast %770 : vector<16xf32> to vector<16x1xf32>
    %cst_344 = arith.constant 3.200000e+01 : f32
    %772 = vector.broadcast %cst_344 : f32 to vector<16x1xf32>
    %773 = arith.divf %771, %772 : vector<16x1xf32>
    %774 = arith.mulf %765, %765 : vector<16x32xf32>
    %cst_345 = arith.constant dense<0.000000e+00> : vector<16xf32>
    %775 = vector.multi_reduction <add>, %774, %cst_345 [1] : vector<16x32xf32> to vector<16xf32>
    %776 = vector.shape_cast %775 : vector<16xf32> to vector<16x1xf32>
    %cst_346 = arith.constant 3.200000e+01 : f32
    %777 = vector.broadcast %cst_346 : f32 to vector<16x1xf32>
    %778 = arith.divf %776, %777 : vector<16x1xf32>
    %779 = arith.mulf %773, %773 : vector<16x1xf32>
    %780 = arith.subf %778, %779 : vector<16x1xf32>
    %cst_347 = arith.constant 0.000000e+00 : f32
    %781 = vector.broadcast %cst_347 : f32 to vector<16x1xf32>
    %782 = arith.maximumf %780, %781 : vector<16x1xf32>
    %783 = vector.broadcast %773 : vector<16x1xf32> to vector<16x32xf32>
    %784 = arith.subf %765, %783 : vector<16x32xf32>
    %cst_348 = arith.constant 9.99999974E-6 : f32
    %785 = vector.broadcast %cst_348 : f32 to vector<16x1xf32>
    %786 = arith.addf %782, %785 : vector<16x1xf32>
    %787 = math.rsqrt %786 : vector<16x1xf32>
    %788 = vector.broadcast %787 : vector<16x1xf32> to vector<16x32xf32>
    %789 = arith.mulf %784, %788 : vector<16x32xf32>
    %790 = vector.broadcast %767 : vector<1x32xf32> to vector<16x32xf32>
    %791 = arith.mulf %789, %790 : vector<16x32xf32>
    %792 = vector.broadcast %769 : vector<1x32xf32> to vector<16x32xf32>
    %793 = arith.addf %791, %792 : vector<16x32xf32>
    %c3_349 = arith.constant 3 : index
    %c0_350 = arith.constant 0 : index
    %c0_351 = arith.constant 0 : index
    %794 = vector.load %arg4[%c3_349, %c0_350, %c0_351] : memref<4x32x128xf32, #tpu.memory_space<vmem>>, vector<1x32x128xf32>
    %795 = vector.shape_cast %794 : vector<1x32x128xf32> to vector<32x128xf32>
    %cst_352 = arith.constant dense<0.000000e+00> : vector<16x128xf32>
    %796 = tpu.matmul %793, %795, %cst_352 {dimension_numbers = #tpu.dot_dimension_numbers<[1], [0], [0], [1], [0, 0, 1, 1], [], []>} : vector<16x32xf32>, vector<32x128xf32>, vector<16x128xf32> -> vector<16x128xf32>
    %c3_353 = arith.constant 3 : index
    %c0_354 = arith.constant 0 : index
    %c192_355 = arith.constant 192 : index
    %797 = vector.load %arg6[%c3_353, %c0_354, %c192_355] : memref<4x1x416xf32, #tpu.memory_space<vmem>>, vector<1x1x128xf32>
    %798 = vector.shape_cast %797 : vector<1x1x128xf32> to vector<1x128xf32>
    %799 = vector.broadcast %798 : vector<1x128xf32> to vector<16x128xf32>
    %800 = arith.addf %796, %799 : vector<16x128xf32>
    %cst_356 = arith.constant 5.000000e-01 : f32
    %801 = vector.broadcast %cst_356 : f32 to vector<16x128xf32>
    %802 = arith.mulf %801, %800 : vector<16x128xf32>
    %cst_357 = arith.constant 0.707106769 : f32
    %803 = vector.broadcast %cst_357 : f32 to vector<16x128xf32>
    %804 = arith.mulf %800, %803 : vector<16x128xf32>
    %805 = math.absf %804 : vector<16x128xf32>
    %cst_358 = arith.constant 0.327591091 : f32
    %806 = vector.broadcast %cst_358 : f32 to vector<16x128xf32>
    %807 = arith.mulf %806, %805 : vector<16x128xf32>
    %cst_359 = arith.constant 1.000000e+00 : f32
    %808 = vector.broadcast %cst_359 : f32 to vector<16x128xf32>
    %809 = arith.addf %808, %807 : vector<16x128xf32>
    %cst_360 = arith.constant 1.000000e+00 : f32
    %810 = vector.broadcast %cst_360 : f32 to vector<16x128xf32>
    %811 = arith.divf %810, %809 : vector<16x128xf32>
    %cst_361 = arith.constant 1.06140542 : f32
    %812 = vector.broadcast %cst_361 : f32 to vector<16x128xf32>
    %813 = arith.mulf %812, %811 : vector<16x128xf32>
    %cst_362 = arith.constant 1.45315206 : f32
    %814 = vector.broadcast %cst_362 : f32 to vector<16x128xf32>
    %815 = arith.subf %813, %814 : vector<16x128xf32>
    %816 = arith.mulf %815, %811 : vector<16x128xf32>
    %cst_363 = arith.constant 1.42141378 : f32
    %817 = vector.broadcast %cst_363 : f32 to vector<16x128xf32>
    %818 = arith.addf %816, %817 : vector<16x128xf32>
    %819 = arith.mulf %818, %811 : vector<16x128xf32>
    %cst_364 = arith.constant 0.284496725 : f32
    %820 = vector.broadcast %cst_364 : f32 to vector<16x128xf32>
    %821 = arith.subf %819, %820 : vector<16x128xf32>
    %822 = arith.mulf %821, %811 : vector<16x128xf32>
    %cst_365 = arith.constant 0.254829586 : f32
    %823 = vector.broadcast %cst_365 : f32 to vector<16x128xf32>
    %824 = arith.addf %822, %823 : vector<16x128xf32>
    %825 = arith.mulf %824, %811 : vector<16x128xf32>
    %cst_366 = arith.constant 0.000000e+00 : f32
    %826 = vector.broadcast %cst_366 : f32 to vector<16x128xf32>
    %827 = arith.subf %826, %805 : vector<16x128xf32>
    %828 = arith.mulf %827, %805 : vector<16x128xf32>
    %829 = math.exp %828 : vector<16x128xf32>
    %830 = arith.mulf %825, %829 : vector<16x128xf32>
    %cst_367 = arith.constant 1.000000e+00 : f32
    %831 = vector.broadcast %cst_367 : f32 to vector<16x128xf32>
    %832 = arith.subf %831, %830 : vector<16x128xf32>
    %cst_368 = arith.constant 0.000000e+00 : f32
    %833 = vector.broadcast %cst_368 : f32 to vector<16x128xf32>
    %834 = arith.cmpf oge, %804, %833 : vector<16x128xf32>
    %cst_369 = arith.constant 0.000000e+00 : f32
    %835 = vector.broadcast %cst_369 : f32 to vector<16x128xf32>
    %836 = arith.subf %835, %832 : vector<16x128xf32>
    %837 = arith.select %834, %832, %836 : vector<16x128xi1>, vector<16x128xf32>
    %cst_370 = arith.constant 1.000000e+00 : f32
    %838 = vector.broadcast %cst_370 : f32 to vector<16x128xf32>
    %839 = arith.addf %838, %837 : vector<16x128xf32>
    %840 = arith.mulf %802, %839 : vector<16x128xf32>
    %c3_371 = arith.constant 3 : index
    %c0_372 = arith.constant 0 : index
    %c0_373 = arith.constant 0 : index
    %841 = vector.load %arg5[%c3_371, %c0_372, %c0_373] : memref<4x128x32xf32, #tpu.memory_space<vmem>>, vector<1x128x32xf32>
    %842 = vector.shape_cast %841 : vector<1x128x32xf32> to vector<128x32xf32>
    %cst_374 = arith.constant dense<0.000000e+00> : vector<16x32xf32>
    %843 = tpu.matmul %840, %842, %cst_374 {dimension_numbers = #tpu.dot_dimension_numbers<[1], [0], [0], [1], [0, 0, 1, 1], [], []>} : vector<16x128xf32>, vector<128x32xf32>, vector<16x32xf32> -> vector<16x32xf32>
    %c3_375 = arith.constant 3 : index
    %c0_376 = arith.constant 0 : index
    %c320_377 = arith.constant 320 : index
    %844 = vector.load %arg6[%c3_375, %c0_376, %c320_377] : memref<4x1x416xf32, #tpu.memory_space<vmem>>, vector<1x1x32xf32>
    %845 = vector.shape_cast %844 : vector<1x1x32xf32> to vector<1x32xf32>
    %846 = vector.broadcast %845 : vector<1x32xf32> to vector<16x32xf32>
    %847 = arith.addf %843, %846 : vector<16x32xf32>
    %848 = arith.addf %793, %847 : vector<16x32xf32>
    %c3_378 = arith.constant 3 : index
    %c0_379 = arith.constant 0 : index
    %c352_380 = arith.constant 352 : index
    %849 = vector.load %arg6[%c3_378, %c0_379, %c352_380] : memref<4x1x416xf32, #tpu.memory_space<vmem>>, vector<1x1x32xf32>
    %850 = vector.shape_cast %849 : vector<1x1x32xf32> to vector<1x32xf32>
    %c3_381 = arith.constant 3 : index
    %c0_382 = arith.constant 0 : index
    %c384_383 = arith.constant 384 : index
    %851 = vector.load %arg6[%c3_381, %c0_382, %c384_383] : memref<4x1x416xf32, #tpu.memory_space<vmem>>, vector<1x1x32xf32>
    %852 = vector.shape_cast %851 : vector<1x1x32xf32> to vector<1x32xf32>
    %cst_384 = arith.constant dense<0.000000e+00> : vector<16xf32>
    %853 = vector.multi_reduction <add>, %848, %cst_384 [1] : vector<16x32xf32> to vector<16xf32>
    %854 = vector.shape_cast %853 : vector<16xf32> to vector<16x1xf32>
    %cst_385 = arith.constant 3.200000e+01 : f32
    %855 = vector.broadcast %cst_385 : f32 to vector<16x1xf32>
    %856 = arith.divf %854, %855 : vector<16x1xf32>
    %857 = arith.mulf %848, %848 : vector<16x32xf32>
    %cst_386 = arith.constant dense<0.000000e+00> : vector<16xf32>
    %858 = vector.multi_reduction <add>, %857, %cst_386 [1] : vector<16x32xf32> to vector<16xf32>
    %859 = vector.shape_cast %858 : vector<16xf32> to vector<16x1xf32>
    %cst_387 = arith.constant 3.200000e+01 : f32
    %860 = vector.broadcast %cst_387 : f32 to vector<16x1xf32>
    %861 = arith.divf %859, %860 : vector<16x1xf32>
    %862 = arith.mulf %856, %856 : vector<16x1xf32>
    %863 = arith.subf %861, %862 : vector<16x1xf32>
    %cst_388 = arith.constant 0.000000e+00 : f32
    %864 = vector.broadcast %cst_388 : f32 to vector<16x1xf32>
    %865 = arith.maximumf %863, %864 : vector<16x1xf32>
    %866 = vector.broadcast %856 : vector<16x1xf32> to vector<16x32xf32>
    %867 = arith.subf %848, %866 : vector<16x32xf32>
    %cst_389 = arith.constant 9.99999974E-6 : f32
    %868 = vector.broadcast %cst_389 : f32 to vector<16x1xf32>
    %869 = arith.addf %865, %868 : vector<16x1xf32>
    %870 = math.rsqrt %869 : vector<16x1xf32>
    %871 = vector.broadcast %870 : vector<16x1xf32> to vector<16x32xf32>
    %872 = arith.mulf %867, %871 : vector<16x32xf32>
    %873 = vector.broadcast %850 : vector<1x32xf32> to vector<16x32xf32>
    %874 = arith.mulf %872, %873 : vector<16x32xf32>
    %875 = vector.broadcast %852 : vector<1x32xf32> to vector<16x32xf32>
    %876 = arith.addf %874, %875 : vector<16x32xf32>
    %c0_390 = arith.constant 0 : index
    %c0_391 = arith.constant 0 : index
    %877 = vector.load %arg7[%c0_390, %c0_391] : memref<35x16xf32, #tpu.memory_space<vmem>>, vector<32x16xf32>
    %cst_392 = arith.constant dense<0.000000e+00> : vector<16x16xf32>
    %878 = tpu.matmul %876, %877, %cst_392 {dimension_numbers = #tpu.dot_dimension_numbers<[1], [0], [0], [1], [0, 0, 1, 1], [], []>} : vector<16x32xf32>, vector<32x16xf32>, vector<16x16xf32> -> vector<16x16xf32>
    %c32 = arith.constant 32 : index
    %c0_393 = arith.constant 0 : index
    %879 = vector.load %arg7[%c32, %c0_393] : memref<35x16xf32, #tpu.memory_space<vmem>>, vector<1x16xf32>
    %880 = vector.broadcast %879 : vector<1x16xf32> to vector<16x16xf32>
    %881 = arith.addf %878, %880 : vector<16x16xf32>
    %cst_394 = arith.constant 5.000000e-01 : f32
    %882 = vector.broadcast %cst_394 : f32 to vector<16x16xf32>
    %883 = arith.mulf %882, %881 : vector<16x16xf32>
    %cst_395 = arith.constant 0.707106769 : f32
    %884 = vector.broadcast %cst_395 : f32 to vector<16x16xf32>
    %885 = arith.mulf %881, %884 : vector<16x16xf32>
    %886 = math.absf %885 : vector<16x16xf32>
    %cst_396 = arith.constant 0.327591091 : f32
    %887 = vector.broadcast %cst_396 : f32 to vector<16x16xf32>
    %888 = arith.mulf %887, %886 : vector<16x16xf32>
    %cst_397 = arith.constant 1.000000e+00 : f32
    %889 = vector.broadcast %cst_397 : f32 to vector<16x16xf32>
    %890 = arith.addf %889, %888 : vector<16x16xf32>
    %cst_398 = arith.constant 1.000000e+00 : f32
    %891 = vector.broadcast %cst_398 : f32 to vector<16x16xf32>
    %892 = arith.divf %891, %890 : vector<16x16xf32>
    %cst_399 = arith.constant 1.06140542 : f32
    %893 = vector.broadcast %cst_399 : f32 to vector<16x16xf32>
    %894 = arith.mulf %893, %892 : vector<16x16xf32>
    %cst_400 = arith.constant 1.45315206 : f32
    %895 = vector.broadcast %cst_400 : f32 to vector<16x16xf32>
    %896 = arith.subf %894, %895 : vector<16x16xf32>
    %897 = arith.mulf %896, %892 : vector<16x16xf32>
    %cst_401 = arith.constant 1.42141378 : f32
    %898 = vector.broadcast %cst_401 : f32 to vector<16x16xf32>
    %899 = arith.addf %897, %898 : vector<16x16xf32>
    %900 = arith.mulf %899, %892 : vector<16x16xf32>
    %cst_402 = arith.constant 0.284496725 : f32
    %901 = vector.broadcast %cst_402 : f32 to vector<16x16xf32>
    %902 = arith.subf %900, %901 : vector<16x16xf32>
    %903 = arith.mulf %902, %892 : vector<16x16xf32>
    %cst_403 = arith.constant 0.254829586 : f32
    %904 = vector.broadcast %cst_403 : f32 to vector<16x16xf32>
    %905 = arith.addf %903, %904 : vector<16x16xf32>
    %906 = arith.mulf %905, %892 : vector<16x16xf32>
    %cst_404 = arith.constant 0.000000e+00 : f32
    %907 = vector.broadcast %cst_404 : f32 to vector<16x16xf32>
    %908 = arith.subf %907, %886 : vector<16x16xf32>
    %909 = arith.mulf %908, %886 : vector<16x16xf32>
    %910 = math.exp %909 : vector<16x16xf32>
    %911 = arith.mulf %906, %910 : vector<16x16xf32>
    %cst_405 = arith.constant 1.000000e+00 : f32
    %912 = vector.broadcast %cst_405 : f32 to vector<16x16xf32>
    %913 = arith.subf %912, %911 : vector<16x16xf32>
    %cst_406 = arith.constant 0.000000e+00 : f32
    %914 = vector.broadcast %cst_406 : f32 to vector<16x16xf32>
    %915 = arith.cmpf oge, %885, %914 : vector<16x16xf32>
    %cst_407 = arith.constant 0.000000e+00 : f32
    %916 = vector.broadcast %cst_407 : f32 to vector<16x16xf32>
    %917 = arith.subf %916, %913 : vector<16x16xf32>
    %918 = arith.select %915, %913, %917 : vector<16x16xi1>, vector<16x16xf32>
    %cst_408 = arith.constant 1.000000e+00 : f32
    %919 = vector.broadcast %cst_408 : f32 to vector<16x16xf32>
    %920 = arith.addf %919, %918 : vector<16x16xf32>
    %921 = arith.mulf %883, %920 : vector<16x16xf32>
    %c33 = arith.constant 33 : index
    %c0_409 = arith.constant 0 : index
    %922 = vector.load %arg7[%c33, %c0_409] : memref<35x16xf32, #tpu.memory_space<vmem>>, vector<1x16xf32>
    %923 = vector.broadcast %922 : vector<1x16xf32> to vector<16x16xf32>
    %924 = arith.mulf %921, %923 : vector<16x16xf32>
    %cst_410 = arith.constant dense<0.000000e+00> : vector<16xf32>
    %925 = vector.multi_reduction <add>, %924, %cst_410 [1] : vector<16x16xf32> to vector<16xf32>
    %926 = vector.shape_cast %925 : vector<16xf32> to vector<16x1xf32>
    %c34 = arith.constant 34 : index
    %c0_411 = arith.constant 0 : index
    %927 = vector.load %arg7[%c34, %c0_411] : memref<35x16xf32, #tpu.memory_space<vmem>>, vector<1x1xf32>
    %928 = vector.broadcast %927 : vector<1x1xf32> to vector<16x1xf32>
    %929 = arith.addf %926, %928 : vector<16x1xf32>
    %cst_412 = arith.constant 0.000000e+00 : f32
    %930 = vector.broadcast %cst_412 : f32 to vector<16x1xf32>
    %931 = arith.subf %930, %929 : vector<16x1xf32>
    %932 = math.exp %931 : vector<16x1xf32>
    %cst_413 = arith.constant 1.000000e+00 : f32
    %933 = vector.broadcast %cst_413 : f32 to vector<16x1xf32>
    %934 = arith.addf %933, %932 : vector<16x1xf32>
    %cst_414 = arith.constant 1.000000e+02 : f32
    %935 = vector.broadcast %cst_414 : f32 to vector<16x1xf32>
    %936 = arith.divf %935, %934 : vector<16x1xf32>
    %c0_415 = arith.constant 0 : index
    %c0_416 = arith.constant 0 : index
    %937 = vector.load %arg8[%c0_415, %c0_416] : memref<16x1xf32, #tpu.memory_space<vmem>>, vector<16x1xf32>
    tpu.vector_store %arg8[%c0_415, %c0_416], %936 {strides = array<i32>} : memref<16x1xf32, #tpu.memory_space<vmem>>, vector<16x1xf32>,
    return
  }
}

</mosaic_0001>

<bundles_post_ra>
// kernel: _forward.1
= control target key start
LH: loop header
LB: loop body
LE: loop exit
PB: predicated region body
PF: predicated region fallthrough
CT: control target
= control target key end

     0   :  { %v4948_v0 = vmov 0   ;;  %vm56_vm0 = vcmask 261120   ;;  %vm89_vm1 = vcmask 64512   ;;  %s4950_s22 = smov 64   ;;  %s4951_s23 = smov 88   ;;  %vm879_vm9 = vcmask 523264   ;;  %s6252_s0 = inlined_call_operand.vmem [shape: f32[2,8,1], index: 0, kind: input, shape index: {}]   ;;  %s6253_s3 = inlined_call_operand.vmem [shape: f32[4,32,128], index: 3, kind: input, shape index: {}]   ;;  %s6254_s1 = inlined_call_operand.vmem [shape: f32[9,32], index: 1, kind: input, shape index: {}]   ;;  %s6255_s6 = inlined_call_operand.vmem [shape: f32[4,1,416], index: 6, kind: input, shape index: {}]   ;;  %s6256_s4 = inlined_call_operand.vmem [shape: f32[4,32,128], index: 4, kind: input, shape index: {}]   ;;  %s6257_s5 = inlined_call_operand.vmem [shape: f32[4,128,32], index: 5, kind: input, shape index: {}]   ;;  %s6258_s2 = inlined_call_operand.vmem [shape: f32[16,32], index: 2, kind: input, shape index: {}]   ;;  %s6259_s7 = inlined_call_operand.vmem [shape: f32[35,16], index: 7, kind: input, shape index: {}]   ;;  %s6260_s8 = inlined_call_operand.vmem [shape: f32[16,1], index: 8, kind: output, shape index: {}]  }
   0x1   :  { %4692 = vset.pattern.permute.xlu0 %v4948_v0  ;;  %v31_v1 = vld [vmem:[%s6252_s0] sm:$0xff]  ;;  %v5013_v2 = vld [vmem:[%s6253_s3 + $0x18] sm:$0xff]  ;;  %v5019_v3 = vld [vmem:[%s6253_s3 + $0x10] sm:$0xff]  ;;  %s4952_s24 = smov 120   ;;  %s4953_s25 = smov 32  }
   0x2   :  { %35 = vperm.xlu0 %4692, %v31_v1   ;;  %75 = vmatpush.msra.mxu0 %v5013_v2  ;;  %v32_v4 = vld [vmem:[%s6252_s0 + $0x8] sm:$0xff]  ;;  %v48_v6 = vld [vmem:[%s6253_s3] sm:$0xff]  ;;  %s4954_s26 = smov 80   ;;  %s4955_s27 = smov 112  }
   0x3   :  { %v5028_v5 = vld [vmem:[%s6253_s3 + $0x8] sm:$0xff]  ;;  %v29_v8 = vld [vmem:[%s6254_s1] sm:$0xff]  ;;  %s4956_s28 = smov 56   ;;  %s4957_s29 = smov 48  }
   0x4   :  { %76 = vmatpush.msra.mxu0 %v5019_v3  ;;  %v4718_v7 = vld [vmem:[%s6254_s1 + $0x8] ss:$0 sm:$0xff]  ;;  %v5051_v15 = vld [vmem:[%s6255_s6] ss:$0 sm:$0xff]  ;;  %s4949_s1 = smov 96   ;;  %s4958_s30 = smov 104  }
   0x5   :  { %s4959_s9 = smov 72   ;;  %s4960_s10 = smov 40  }
   0x6   :  { %77 = vmatpush.msra.mxu0 %v5028_v5 }
   0x8   :  { %78 = vmatpush.msra.mxu0 %v48_v6 }
   0xa   :  { %40 = vperm.xlu0 %4692, %v32_v4  }
  0x74   :  { %v36_v9 = vpop.permute.xlu0 %35 }
  0x75   :  { %v44_v10 = vmul.f32 %v4718_v7, %v36_v9 }
  0x77   :  { %v5040_v11 = vadd.f32 %v44_v10, %v29_v8 }
  0x79   :  { %4413 = vmatmul.msk.f32.vlgmr.msra.gmra.mxu0 %vm56_vm0, %v5040_v11 }
  0x7c   :  { %v41_v12 = vpop.permute.xlu0 %40 }
  0x7d   :  { %v45_v13 = vmul.f32 %v4718_v7, %v41_v12 }
  0x7f   :  { %v5044_v14 = vadd.f32 %v45_v13, %v29_v8 }
  0x81   :  { %4414 = vmatmul.msk.f32.gmra.mxu0 %vm56_vm0, %v5044_v14 }
  0xf6   :  { %v80_v16 = vpop.f32.mrf.mxu0 }
  0xf7   :  { %v5054_v17 = vadd.f32 %v5051_v15, %v80_v16 }
  0xf9   :  { %87 = vrot.lane.b32.xlu1 %v5054_v17, %s4949_s1 }
  0xfe   :  { %v83_v18 = vpop.f32.mrf.mxu0 }
  0xff   :  { %v5059_v19 = vadd.f32 %v5051_v15, %v83_v18 }
 0x101   :  { %115 = vrot.lane.b32.xlu1 %v5059_v19, %s4949_s1 }
 0x16b   :  { %v88_v20 = vpop.permute.xlu1 %87 }
 0x16c   :  { %4415 = vmatpush.xpose.msk.msra.mxu1 %vm89_vm1, %v88_v20 }
 0x16f   :  { %4416 = vmatmul.msk.f32.vlgmr.msra.gmra.mxu1 %vm89_vm1, %v5054_v17 }
 0x173   :  { %v116_v21 = vpop.permute.xlu1 %115 }
 0x174   :  { %4417 = vmatpush.xpose.msk.msra.mxu3 %vm89_vm1, %v116_v21 }
 0x177   :  { %4418 = vmatmul.msk.f32.vlgmr.msra.gmra.mxu3 %vm89_vm1, %v5059_v19 }
 0x1ec   :  { %v111_v22 = vpop.f32.mrf.mxu1 }
 0x1ed   :  { %v141_v23 = vmul.f32 0.35355338, %v111_v22 }
 0x1ef   :  { %v143_v24 = vsel %vm89_vm1, %v141_v23, -inf }
 0x1f0   :  { %144 = vmax.xlane.f32.xlu2 %v143_v24 }
 0x1fa   :  { %v138_v25 = vpop.f32.mrf.mxu3 }
 0x1fb   :  { %v142_v26 = vmul.f32 0.35355338, %v138_v25 }
 0x1fd   :  { %v146_v27 = vsel %vm89_vm1, %v142_v26, -inf }
 0x1fe   :  { %147 = vmax.xlane.f32.xlu2 %v146_v27 }
 0x216   :  { %165 = vrot.lane.b32.xlu2 %v5054_v17, %s4950_s22 }
 0x21e   :  { %263 = vrot.lane.b32.xlu2 %v5054_v17, %s4951_s23 }
 0x226   :  { %191 = vrot.lane.b32.xlu2 %v5059_v19, %s4950_s22 }
 0x22e   :  { %261 = vrot.lane.b32.xlu2 %v5054_v17, %s4952_s24 }
 0x236   :  { %219 = vrot.lane.b32.xlu2 %v48_v6, %s4953_s25 }
 0x23e   :  { %439 = vrot.lane.b32.xlu2 %v5054_v17, %s4954_s26 }
 0x263   :  { %v145_v28 = vpop.xlane.xlu2 %144 }
 0x264   :  { %v149_v29 = vsub.f32 %v141_v23, %v145_v28 }
 0x266   :  { %v151_v30 = vmul.f32 1.442695, %v149_v29 }
 0x268   :  { %4738 = vpow2.f32 %v151_v30 }
 0x26e   :  { %v4739_v31 = vpop.eup %4738 }
 0x26f   :  { %v155_v32 = vsel %vm89_vm1, %v4739_v31, 0.0 }
 0x270   :  { %156 = vadd.xlane.f32.xlu0 %v155_v32 }
 0x271   :  { %v148_v33 = vpop.xlane.xlu2 %147 }
 0x272   :  { %v150_v34 = vsub.f32 %v142_v26, %v148_v33 }
 0x274   :  { %v153_v35 = vmul.f32 1.442695, %v150_v34 }
 0x276   :  { %4740 = vpow2.f32 %v153_v35 }
 0x279   :  { %v166_v36 = vpop.permute.xlu2 %165 }
 0x27a   :  { %186 = vmatpush.msrb.mxu3 %v166_v36 }
 0x27c   :  { %v4741_v37 = vpop.eup %4740 }
 0x27d   :  { %v158_v38 = vsel %vm89_vm1, %v4741_v37, 0.0 }
 0x27e   :  { %159 = vadd.xlane.f32.xlu1 %v158_v38 }
 0x281   :  { %v264_v39 = vpop.permute.xlu2 %263 }
 0x282   :  { %4423 = vmatpush.xpose.msk.msra.mxu2 %vm89_vm1, %v264_v39 }
 0x284   :  { %291 = vrot.lane.b32.xlu0 %v5059_v19, %s4951_s23 }
 0x289   :  { %v192_v40 = vpop.permute.xlu2 %191 }
 0x28a   :  { %212 = vmatpush.msra.mxu3 %v192_v40 }
 0x28c   :  { %437 = vrot.lane.b32.xlu0 %v5054_v17, %s4955_s27 }
 0x291   :  { %v262_v41 = vpop.permute.xlu2 %261 }
 0x292   :  { %4424 = vmatmul.msk.f32.vlgmr.msra.gmra.mxu2 %vm89_vm1, %v262_v41 }
 0x297   :  { %289 = vrot.lane.b32.xlu1 %v5059_v19, %s4952_s24 }
 0x299   :  { %v220_v42 = vpop.permute.xlu2 %219 }
 0x29a   :  { %243 = vmatpush.msrb.mxu1 %v220_v42 }
 0x2a1   :  { %v440_v43 = vpop.permute.xlu2 %439 }
 0x2a2   :  { %4431 = vmatpush.xpose.msk.msra.mxu1 %vm89_vm1, %v440_v43 }
 0x2e3   :  { %v157_v44 = vpop.xlane.xlu0 %156 }
 0x2e4   :  { %4742 = vrcp.f32 %v157_v44 }
 0x2ea   :  { %v4743_v45 = vpop.eup %4742 }
 0x2eb   :  { %v163_v46 = vmul.f32 %v4743_v45, %v4739_v31 }
 0x2ed   :  { %4419 = vmatmul.msk.f32.vlgmr.msrb.gmra.mxu3 %vm89_vm1, %v163_v46 }
 0x2f1   :  { %v160_v47 = vpop.xlane.xlu1 %159 }
 0x2f2   :  { %4744 = vrcp.f32 %v160_v47 }
 0x2f6   :  { %v292_v48 = vpop.permute.xlu0 %291 }
 0x2f7   :  { %4425 = vmatpush.xpose.msk.msrb.mxu3 %vm89_vm1, %v292_v48 }
 0x2f8   :  { %v4745_v49 = vpop.eup %4744 }
 0x2f9   :  { %v164_v50 = vmul.f32 %v4745_v49, %v4741_v37 }
 0x2fb   :  { %4420 = vmatmul.msk.f32.vlgmr.msra.gmra.mxu3 %vm89_vm1, %v164_v50 }
 0x2fe   :  { %v438_v57 = vpop.permute.xlu0 %437 }
 0x309   :  { %v290_v51 = vpop.permute.xlu1 %289 }
 0x30a   :  { %4426 = vmatmul.msk.f32.vlgmr.msrb.gmra.mxu3 %vm89_vm1, %v290_v51 }
 0x315   :  { %v286_v52 = vpop.f32.mrf.mxu2 }
 0x316   :  { %v317_v53 = vmul.f32 0.35355338, %v286_v52 }
 0x318   :  { %v319_v54 = vsel %vm89_vm1, %v317_v53, -inf }
 0x319   :  { %320 = vmax.xlane.f32.xlu2 %v319_v54 }
 0x331   :  { %341 = vrot.lane.b32.xlu2 %v5054_v17, %s4956_s28 }
 0x339   :  { %467 = vrot.lane.b32.xlu2 %v5059_v19, %s4954_s26 }
 0x341   :  { %517 = vrot.lane.b32.xlu2 %v5054_v17, %s4957_s29 }
 0x349   :  { %613 = vrot.lane.b32.xlu2 %v5054_v17, %s4958_s30 }
 0x351   :  { %641 = vrot.lane.b32.xlu2 %v5059_v19, %s4958_s30 }
 0x370   :  { %v188_v55 = vpop.f32.mrf.mxu3 }
 0x371   :  { %4421 = vmatmul.msk.f32.vlgmr.msrb.gmra.mxu1 %vm89_vm1, %v188_v55 }
 0x37e   :  { %v214_v56 = vpop.f32.mrf.mxu3 }
 0x37f   :  { %4422 = vmatmul.msk.f32.gmra.mxu1 %vm89_vm1, %v214_v56 }
 0x387   :  { %4432 = vmatmul.msk.f32.vlgmr.msra.gmra.mxu1 %vm89_vm1, %v438_v57 }
 0x38c   :  { %v321_v58 = vpop.xlane.xlu2 %320 }
 0x38d   :  { %v325_v59 = vsub.f32 %v317_v53, %v321_v58  ;;  %v314_v60 = vpop.f32.mrf.mxu3  ;;  %v4693_v53 = vpack.i.bf16 %v5013_v2, %v5019_v3 }
 0x38e   :  { %v318_v61 = vmul.f32 0.35355338, %v314_v60 }
 0x38f   :  { %v327_v62 = vmul.f32 1.442695, %v325_v59 }
 0x390   :  { %v322_v63 = vsel %vm89_vm1, %v318_v61, -inf }
 0x391   :  { %4746 = vpow2.f32 %v327_v62  ;;  %323 = vmax.xlane.f32.xlu1 %v322_v63 }
 0x394   :  { %v342_v0 = vpop.permute.xlu2 %341 }
 0x395   :  { %362 = vmatpush.msrb.mxu2 %v342_v0 }
 0x397   :  { %v4747_v1 = vpop.eup %4746 }
 0x398   :  { %v331_v4 = vsel %vm89_vm1, %v4747_v1, 0.0 }
 0x399   :  { %332 = vadd.xlane.f32.xlu0 %v331_v4 }
 0x39c   :  { %v468_v6 = vpop.permute.xlu2 %467 }
 0x39d   :  { %4433 = vmatpush.xpose.msk.msra.mxu2 %vm89_vm1, %v468_v6 }
 0x3a4   :  { %v518_v26 = vpop.permute.xlu2 %517 }
 0x3ac   :  { %v614_v45 = vpop.permute.xlu2 %613 }
 0x3ad   :  { %367 = vrot.lane.b32.xlu0 %v5059_v19, %s4956_s28 }
 0x3b4   :  { %v642_v52 = vpop.permute.xlu2 %641 }
 0x3b5   :  { %465 = vrot.lane.b32.xlu0 %v5059_v19, %s4955_s27 }
 0x3bd   :  { %615 = vrot.lane.b32.xlu0 %v5054_v17, %s4959_s9 }
 0x3c5   :  { %643 = vrot.lane.b32.xlu0 %v5059_v19, %s4959_s9 }
 0x3ee   :  { %v5122_v7 = vpop.f32.mrf.mxu1 }
 0x3fc   :  { %v5124_v10 = vpop.f32.mrf.mxu1 }
 0x404   :  { %v324_v8 = vpop.xlane.xlu1 %323  ;;  %v462_v20 = vpop.f32.mrf.mxu1 }
 0x405   :  { %v326_v9 = vsub.f32 %v318_v61, %v324_v8  ;;  %v493_v22 = vmul.f32 0.35355338, %v462_v20 }
 0x407   :  { %v329_v12 = vmul.f32 1.442695, %v326_v9  ;;  %v495_v24 = vsel %vm89_vm1, %v493_v22, -inf }
 0x409   :  { %4748 = vpow2.f32 %v329_v12 }
 0x40c   :  { %v333_v13 = vpop.xlane.xlu0 %332 }
 0x40d   :  { %4750 = vrcp.f32 %v333_v13 }
 0x40f   :  { %v4749_v16 = vpop.eup %4748 }
 0x410   :  { %v334_v18 = vsel %vm89_vm1, %v4749_v16, 0.0 }
 0x411   :  { %335 = vadd.xlane.f32.xlu1 %v334_v18 }
 0x413   :  { %v4751_v21 = vpop.eup %4750 }
 0x414   :  { %v339_v23 = vmul.f32 %v4751_v21, %v4747_v1 }
 0x416   :  { %4427 = vmatmul.msk.f32.vlgmr.msrb.gmra.mxu2 %vm89_vm1, %v339_v23 }
 0x419   :  { %496 = vmax.xlane.f32.xlu1 %v495_v24 }
 0x41f   :  { %v368_v25 = vpop.permute.xlu0 %367 }
 0x420   :  { %388 = vmatpush.msrb.mxu0 %v368_v25 }
 0x422   :  { %538 = vmatpush.msra.mxu0 %v518_v26 }
 0x427   :  { %v466_v27 = vpop.permute.xlu0 %465 }
 0x428   :  { %4434 = vmatmul.msk.f32.vlgmr.msra.gmra.mxu2 %vm89_vm1, %v466_v27 }
 0x42f   :  { %v616_v33 = vpop.permute.xlu0 %615 }
 0x437   :  { %v644_v44 = vpop.permute.xlu0 %643 }
 0x484   :  { %v336_v28 = vpop.xlane.xlu1 %335 }
 0x485   :  { %4752 = vrcp.f32 %v336_v28 }
 0x48b   :  { %v4753_v29 = vpop.eup %4752 }
 0x48c   :  { %v497_v30 = vpop.xlane.xlu1 %496  ;;  %v340_v31 = vmul.f32 %v4753_v29, %v4749_v16 }
 0x48d   :  { %v501_v32 = vsub.f32 %v493_v22, %v497_v30 }
 0x48e   :  { %4428 = vmatmul.msk.f32.vlgmr.msrb.gmra.mxu0 %vm89_vm1, %v340_v31 }
 0x48f   :  { %v503_v34 = vmul.f32 1.442695, %v501_v32  ;;  %4439 = vmatpush.xpose.msk.msrb.mxu0 %vm89_vm1, %v616_v33 }
 0x491   :  { %4754 = vpow2.f32 %v503_v34 }
 0x497   :  { %v4755_v35 = vpop.eup %4754 }
 0x498   :  { %v507_v36 = vsel %vm89_vm1, %v4755_v35, 0.0 }
 0x499   :  { %508 = vadd.xlane.f32.xlu1 %v507_v36  ;;  %v364_v37 = vpop.f32.mrf.mxu2 }
 0x4ab   :  { %v490_v38 = vpop.f32.mrf.mxu2 }
 0x4ac   :  { %v494_v39 = vmul.f32 0.35355338, %v490_v38 }
 0x4ae   :  { %v498_v40 = vsel %vm89_vm1, %v494_v39, -inf }
 0x4af   :  { %499 = vmax.xlane.f32.xlu0 %v498_v40 }
 0x4b2   :  { %395 = vrot.lane.b32.xlu1 %v5028_v5, %s4953_s25 }
 0x50b   :  { %v390_v50 = vpop.f32.mrf.mxu0 }
 0x50c   :  { %v509_v41 = vpop.xlane.xlu1 %508 }
 0x50d   :  { %4756 = vrcp.f32 %v509_v41 }
 0x513   :  { %v4757_v42 = vpop.eup %4756 }
 0x514   :  { %v515_v43 = vmul.f32 %v4757_v42, %v4755_v35 }
 0x516   :  { %4435 = vmatmul.msk.f32.vlgmr.msra.gmra.mxu0 %vm89_vm1, %v515_v43 }
 0x51e   :  { %4440 = vmatmul.msk.f32.vlgmr.msrb.gmra.mxu0 %vm89_vm1, %v614_v45 }
 0x522   :  { %v500_v46 = vpop.xlane.xlu0 %499 }
 0x523   :  { %v502_v47 = vsub.f32 %v494_v39, %v500_v46 }
 0x524   :  { %v396_v48 = vpop.permute.xlu1 %395 }
 0x525   :  { %v505_v49 = vmul.f32 1.442695, %v502_v47  ;;  %419 = vmatpush.msra.mxu3 %v396_v48 }
 0x526   :  { %4429 = vmatmul.msk.f32.vlgmr.msra.gmra.mxu3 %vm89_vm1, %v364_v37 }
 0x527   :  { %4758 = vpow2.f32 %v505_v49  ;;  %4441 = vmatpush.xpose.msk.msrb.mxu3 %vm89_vm1, %v644_v44 }
 0x52d   :  { %v4759_v5 = vpop.eup %4758 }
 0x52e   :  { %4430 = vmatmul.msk.f32.gmra.mxu3 %vm89_vm1, %v390_v50  ;;  %v510_v51 = vsel %vm89_vm1, %v4759_v5, 0.0 }
 0x52f   :  { %511 = vadd.xlane.f32.xlu0 %v510_v51 }
 0x536   :  { %4442 = vmatmul.msk.f32.vlgmr.msrb.gmra.mxu3 %vm89_vm1, %v642_v52 }
 0x543   :  { %693 = vrot.lane.b32.xlu0 %v5054_v17, %s4960_s10 }
 0x54b   :  { %4694 = vrot.lane.b32.xlu0 %v4693_v53, %s4953_s25 }
 0x593   :  { %v540_v54 = vpop.f32.mrf.mxu0 }
 0x59b   :  { %v638_v55 = vpop.f32.mrf.mxu0 }
 0x59c   :  { %v669_v56 = vmul.f32 0.35355338, %v638_v55 }
 0x59e   :  { %v671_v57 = vsel %vm89_vm1, %v669_v56, -inf }
 0x59f   :  { %672 = vmax.xlane.f32.xlu1 %v671_v57 }
 0x5a2   :  { %v512_v59 = vpop.xlane.xlu0 %511 }
 0x5a9   :  { %v421_v58 = vpop.f32.mrf.mxu3 }
 0x5aa   :  { %429 = vrot.lane.b32.xlu0 %v421_v58, %s4949_s1 }
 0x5b1   :  { %v424_v60 = vpop.f32.mrf.mxu3 }
 0x5b2   :  { %255 = vrot.lane.b32.xlu0 %v5124_v10, %s4949_s1 }
 0x5b5   :  { %v694_v17 = vpop.permute.xlu0 %693 }
 0x5b9   :  { %v666_v61 = vpop.f32.mrf.mxu3 }
 0x5ba   :  { %v670_v62 = vmul.f32 0.35355338, %v666_v61 }
 0x5bc   :  { %v674_v2 = vsel %vm89_vm1, %v670_v62, -inf }
 0x5bd   :  { %675 = vmax.xlane.f32.xlu2 %v674_v2  ;;  %v4695_v3 = vpop.permute.xlu0 %4694  ;;  %v869_v2 = vld [vmem:[%s6256_s4 + $0x10] sm:$0xff] }
 0x5be   :  { %v4697_v63 = vunpack.i.h.bf16 %v4695_v3  ;;  %v4696_v0 = vunpack.i.l.bf16 %v4695_v3 }
 0x5c0   :  { %595 = vmatpush.msrb.mxu2 %v4696_v0  ;;  %771 = vmatpush.msra.mxu3 %v4697_v63  ;;  %v868_v63 = vld [vmem:[%s6256_s4 + $0x8] sm:$0xff] }
 0x5c1   :  { %4437 = vmatmul.msk.f32.vlgmr.msrb.gmra.mxu2 %vm89_vm1, %v540_v54 }
 0x5d5   :  { %543 = vrot.lane.b32.xlu2 %v5059_v19, %s4957_s29 }
 0x5dd   :  { %253 = vrot.lane.b32.xlu2 %v5122_v7, %s4949_s1 }
 0x612   :  { %v673_v1 = vpop.xlane.xlu1 %672 }
 0x613   :  { %v677_v4 = vsub.f32 %v669_v56, %v673_v1 }
 0x615   :  { %v679_v6 = vmul.f32 1.442695, %v677_v4 }
 0x617   :  { %4760 = vpow2.f32 %v679_v6  ;;  %v867_v6 = vld [vmem:[%s6256_s4] sm:$0xff] }
 0x618   :  { %4762 = vrcp.f32 %v512_v59  ;;  %v4961_v59 = vmov 32.0  }
 0x61c   :  { %v430_v37 = vpop.permute.xlu0 %429 }
 0x61d   :  { %v4761_v8 = vpop.eup %4760 }
 0x61e   :  { %v683_v9 = vsel %vm89_vm1, %v4761_v8, 0.0  ;;  %v4763_v16 = vpop.eup %4762 }
 0x61f   :  { %684 = vadd.xlane.f32.xlu1 %v683_v9  ;;  %v516_v18 = vmul.f32 %v4763_v16, %v4759_v5 }
 0x624   :  { %v256_v43 = vpop.permute.xlu0 %255 }
 0x625   :  { %v260_v45 = vadd.f32 %v5051_v15, %v256_v43 }
 0x630   :  { %v676_v10 = vpop.xlane.xlu2 %675 }
 0x631   :  { %v678_v12 = vsub.f32 %v670_v62, %v676_v10 }
 0x633   :  { %v681_v13 = vmul.f32 1.442695, %v678_v12  ;;  %v871_v12 = vld [vmem:[%s6255_s6 + $0x1] sm:$0x3] }
 0x634   :  { %v874_v16 = vperm.slane %v871_v12, 1 }
 0x635   :  { %4764 = vpow2.f32 %v681_v13  ;;  %v873_v13 = vperm.slane %v871_v12, 0 }
 0x638   :  { %v544_v20 = vpop.permute.xlu2 %543 }
 0x639   :  { %564 = vmatpush.msrb.mxu1 %v544_v20 }
 0x63a   :  { %4436 = vmatmul.msk.f32.vlgmr.msrb.gmra.mxu1 %vm89_vm1, %v516_v18 }
 0x63b   :  { %v4765_v7 = vpop.eup %4764  ;;  %714 = vmatpush.msra.mxu1 %v694_v17 }
 0x63c   :  { %v686_v21 = vsel %vm89_vm1, %v4765_v7, 0.0 }
 0x63d   :  { %687 = vadd.xlane.f32.xlu1 %v686_v21 }
 0x640   :  { %v254_v35 = vpop.permute.xlu2 %253 }
 0x641   :  { %v259_v36 = vadd.f32 %v5051_v15, %v254_v35  ;;  %v5183_v15 = vld [vmem:[%s6255_s6 + $0x1] ss:$0 sm:$0xff] }
 0x643   :  { %v435_v39 = vadd.f32 %v430_v37, %v259_v36 }
 0x644   :  { %v597_v22 = vpop.f32.mrf.mxu2 }
 0x645   :  { %605 = vrot.lane.b32.xlu2 %v597_v22, %s4949_s1 }
 0x64d   :  { %431 = vrot.lane.b32.xlu2 %v424_v60, %s4949_s1 }
 0x656   :  { %719 = vrot.lane.b32.xlu1 %v5059_v19, %s4960_s10 }
 0x692   :  { %v685_v23 = vpop.xlane.xlu1 %684 }
 0x693   :  { %4766 = vrcp.f32 %v685_v23 }
 0x699   :  { %v4767_v24 = vpop.eup %4766 }
 0x69a   :  { %v691_v25 = vmul.f32 %v4767_v24, %v4761_v8 }
 0x69c   :  { %4443 = vmatmul.msk.f32.vlgmr.msra.gmra.mxu1 %vm89_vm1, %v691_v25 }
 0x69f   :  { %v606_v38 = vpop.permute.xlu2 %605 }
 0x6a0   :  { %v611_v40 = vadd.f32 %v606_v38, %v435_v39 }
 0x6a7   :  { %v432_v44 = vpop.permute.xlu2 %431 }
 0x6a8   :  { %v436_v47 = vadd.f32 %v432_v44, %v260_v45 }
 0x6b0   :  { %v688_v27 = vpop.xlane.xlu1 %687 }
 0x6b1   :  { %4768 = vrcp.f32 %v688_v27 }
 0x6b2   :  { %4770 = vrcp.f32 %v4961_v59  ;;  %v1001_v59 = vld [vmem:[%s6257_s5 + $0x50] sm:$0xff] }
 0x6b7   :  { %v566_v26 = vpop.f32.mrf.mxu1  ;;  %v4769_v28 = vpop.eup %4768 }
 0x6b8   :  { %4438 = vmatmul.msk.f32.gmra.mxu2 %vm89_vm1, %v566_v26  ;;  %v692_v29 = vmul.f32 %v4769_v28, %v4765_v7  ;;  %v4771_v60 = vpop.eup %4770 }
 0x6b9   :  { %v807_v17 = vmul.f32 32.0, %v4771_v60  ;;  %vm811_vm2 = vweird.f32 %v4771_v60 }
 0x6bb   :  { %v808_v61 = vsub.f32 1.0, %v807_v17  ;;  %v1000_v17 = vld [vmem:[%s6257_s5 + $0x48] sm:$0xff] }
 0x6bd   :  { %v809_v62 = vmul.f32 %v4771_v60, %v808_v61 }
 0x6bf   :  { %v810_v3 = vadd.f32 %v4771_v60, %v809_v62  ;;  %v999_v62 = vld [vmem:[%s6257_s5 + $0x40] sm:$0xff] }
 0x6c1   :  { %v5204_v0 = vsel %vm811_vm2, %v4771_v60, %v810_v3  ;;  %v997_v3 = vld [vmem:[%s6257_s5 + $0x30] sm:$0xff] }
 0x6c8   :  { %v720_v30 = vpop.permute.xlu1 %719 }
 0x6c9   :  { %740 = vmatpush.msra.mxu0 %v720_v30 }
 0x6ca   :  { %4444 = vmatmul.msk.f32.vlgmr.msra.gmra.mxu0 %vm89_vm1, %v692_v29 }
 0x719   :  { %v716_v31 = vpop.f32.mrf.mxu1 }
 0x71a   :  { %4445 = vmatmul.msk.f32.vlgmr.msra.gmra.mxu3 %vm89_vm1, %v716_v31 }
 0x73b   :  { %v600_v33 = vpop.f32.mrf.mxu2 }
 0x747   :  { %v742_v19 = vpop.f32.mrf.mxu0 }
 0x748   :  { %4446 = vmatmul.msk.f32.gmra.mxu3 %vm89_vm1, %v742_v19 }
 0x79d   :  { %v773_v32 = vpop.f32.mrf.mxu3 }
 0x79e   :  { %781 = vrot.lane.b32.xlu1 %v773_v32, %s4949_s1 }
 0x7a6   :  { %607 = vrot.lane.b32.xlu1 %v600_v33, %s4949_s1 }
 0x7cb   :  { %v776_v34 = vpop.f32.mrf.mxu3 }
 0x7cc   :  { %783 = vrot.lane.b32.xlu0 %v776_v34, %s4949_s1 }
 0x810   :  { %v782_v41 = vpop.permute.xlu1 %781 }
 0x811   :  { %v787_v42 = vadd.f32 %v782_v41, %v611_v40 }
 0x813   :  { %791 = vrot.lane.b32.xlu2 %v787_v42, %s4953_s25 }
 0x818   :  { %v608_v46 = vpop.permute.xlu1 %607 }
 0x819   :  { %v612_v48 = vadd.f32 %v608_v46, %v436_v47 }
 0x83e   :  { %v784_v49 = vpop.permute.xlu0 %783 }
 0x83f   :  { %v788_v5 = vadd.f32 %v784_v49, %v612_v48 }
 0x841   :  { %793 = vrot.lane.b32.xlu1 %v788_v5, %s4953_s25 }
 0x86d   :  { %v792_v50 = vpop.permute.xlu2 %791 }
 0x86e   :  { %v797_v51 = vadd.f32 %v792_v50, %v5040_v11  ;;  %v1006_v50 = vld [vmem:[%s6257_s5 + $0x78] sm:$0xff] }
 0x86f   :  { %1013 = vmatpush.msra.mxu2 %v1006_v50 }
 0x870   :  { %v800_v52 = vsel %vm56_vm0, %v797_v51, 0.0  ;;  %v815_v53 = vmul.f32 %v797_v51, %v797_v51 }
 0x871   :  { %801 = vadd.xlane.f32.xlu0 %v800_v52 }
 0x872   :  { %v817_v54 = vsel %vm56_vm0, %v815_v53, 0.0  ;;  %v1005_v53 = vld [vmem:[%s6257_s5 + $0x70] sm:$0xff] }
 0x873   :  { %818 = vadd.xlane.f32.xlu2 %v817_v54  ;;  %1014 = vmatpush.msra.mxu2 %v1005_v53 }
 0x885   :  { %862 = vrot.lane.b32.xlu0 %v5183_v15, %s4949_s1 }
 0x8b3   :  { %v794_v55 = vpop.permute.xlu1 %793 }
 0x8b4   :  { %v5188_v56 = vadd.f32 %v794_v55, %v5044_v14  ;;  %v870_v14 = vld [vmem:[%s6256_s4 + $0x18] sm:$0xff] }
 0x8b5   :  { %900 = vmatpush.msrb.mxu1 %v870_v14 }
 0x8b6   :  { %v803_v11 = vsel %vm56_vm0, %v5188_v56, 0.0  ;;  %v816_v57 = vmul.f32 %v5188_v56, %v5188_v56 }
 0x8b7   :  { %804 = vadd.xlane.f32.xlu1 %v803_v11  ;;  %901 = vmatpush.msrb.mxu1 %v869_v2  ;;  %v998_v2 = vld [vmem:[%s6257_s5 + $0x38] sm:$0xff] }
 0x8b8   :  { %v820_v58 = vsel %vm56_vm0, %v816_v57, 0.0  ;;  %v1002_v57 = vld [vmem:[%s6257_s5 + $0x58] sm:$0xff] }
 0x8b9   :  { %821 = vadd.xlane.f32.xlu2 %v820_v58  ;;  %902 = vmatpush.msrb.mxu1 %v868_v63  ;;  %v996_v63 = vld [vmem:[%s6257_s5 + $0x28] sm:$0xff] }
 0x8bb   :  { %903 = vmatpush.msrb.mxu1 %v867_v6 }
 0x8d0   :  { %875 = vrot.lane.b32.xlu1 %v873_v13, %s4950_s22 }
 0x8d1   :  { %877 = vrot.lane.b32.xlu2 %v874_v16, %s4950_s22 }
 0x8e4   :  { %v802_v1 = vpop.xlane.xlu0 %801 }
 0x8e5   :  { %v813_v4 = vmul.f32 %v5204_v0, %v802_v1  ;;  %v995_v1 = vld [vmem:[%s6257_s5 + $0x20] sm:$0xff] }
 0x8e6   :  { %v819_v8 = vpop.xlane.xlu2 %818 }
 0x8e7   :  { %v825_v9 = vmul.f32 %v813_v4, %v813_v4  ;;  %v823_v10 = vmul.f32 %v819_v8, %v5204_v0  ;;  %v831_v27 = vsub.f32 %v797_v51, %v813_v4  ;;  %v994_v8 = vld [vmem:[%s6257_s5 + $0x18] sm:$0xff] }
 0x8e9   :  { %v827_v18 = vsub.f32 %v823_v10, %v825_v9  ;;  %v993_v10 = vld [vmem:[%s6257_s5 + $0x10] sm:$0xff] }
 0x8eb   :  { %v829_v20 = vmax.f32 %v827_v18, 0.0  ;;  %v992_v18 = vld [vmem:[%s6257_s5 + $0x8] sm:$0xff] }
 0x8ed   :  { %v833_v7 = vadd.f32 1e-05, %v829_v20  ;;  %v991_v20 = vld [vmem:[%s6257_s5] sm:$0xff] }
 0x8ef   :  { %4772 = vrsqrt.f32 %v833_v7  ;;  %vm841_vm4 = vweird.f32 %v833_v7 }
 0x8f5   :  { %v4773_v21 = vpop.eup %4772 }
 0x8f6   :  { %v836_v22 = vmul.f32 %v4773_v21, %v833_v7  ;;  %vm842_vm3 = vweird.f32 %v4773_v21 }
 0x8f7   :  { %vm843_vm5 = vmor %vm841_vm4, %vm842_vm3  ;;  %v863_v30 = vpop.permute.xlu0 %862 }
 0x8f8   :  { %v837_v23 = vmul.f32 %v4773_v21, %v836_v22 }
 0x8fa   :  { %v838_v24 = vmul.f32 0.5, %v837_v23 }
 0x8fc   :  { %v839_v25 = vsub.f32 1.5, %v838_v24 }
 0x8fe   :  { %v840_v26 = vmul.f32 %v4773_v21, %v839_v25 }
 0x900   :  { %v844_v28 = vsel %vm843_vm5, %v4773_v21, %v840_v26 }
 0x901   :  { %v855_v29 = vmul.f32 %v844_v28, %v831_v27 }
 0x903   :  { %v860_v31 = vmul.f32 %v5183_v15, %v855_v29 }
 0x905   :  { %v5217_v19 = vadd.f32 %v863_v30, %v860_v31 }
 0x907   :  { %4447 = vmatmul.msk.f32.vlgmr.msrb.gmra.mxu1 %vm56_vm0, %v5217_v19 }
 0x92a   :  { %v805_v32 = vpop.xlane.xlu1 %804 }
 0x92b   :  { %v814_v33 = vmul.f32 %v5204_v0, %v805_v32 }
 0x92c   :  { %v822_v34 = vpop.xlane.xlu2 %821 }
 0x92d   :  { %v826_v35 = vmul.f32 %v814_v33, %v814_v33  ;;  %v824_v36 = vmul.f32 %v822_v34, %v5204_v0  ;;  %v832_v46 = vsub.f32 %v5188_v56, %v814_v33  ;;  %v1003_v56 = vld [vmem:[%s6257_s5 + $0x60] sm:$0xff] }
 0x92e   :  { %v5290_v34 = vld [vmem:[%s6255_s6 + $0x2] ss:$0 sm:$0xff] }
 0x92f   :  { %v828_v37 = vsub.f32 %v824_v36, %v826_v35  ;;  %1010 = vrot.lane.b32.xlu0 %v5290_v34, %s4950_s22 }
 0x931   :  { %v830_v38 = vmax.f32 %v828_v37, 0.0 }
 0x933   :  { %v834_v39 = vadd.f32 1e-05, %v830_v38 }
 0x934   :  { %v878_v51 = vpop.permute.xlu2 %877 }
 0x935   :  { %4774 = vrsqrt.f32 %v834_v39  ;;  %vm851_vm7 = vweird.f32 %v834_v39 }
 0x93b   :  { %v4775_v40 = vpop.eup %4774 }
 0x93c   :  { %v846_v41 = vmul.f32 %v4775_v40, %v834_v39  ;;  %vm852_vm6 = vweird.f32 %v4775_v40 }
 0x93d   :  { %vm853_vm8 = vmor %vm851_vm7, %vm852_vm6 }
 0x93e   :  { %v847_v42 = vmul.f32 %v4775_v40, %v846_v41 }
 0x940   :  { %v848_v43 = vmul.f32 0.5, %v847_v42 }
 0x942   :  { %v849_v44 = vsub.f32 1.5, %v848_v43  ;;  %v876_v52 = vpop.permute.xlu1 %875 }
 0x943   :  { %v5236_v54 = vsel %vm879_vm9, %v876_v52, %v878_v51 }
 0x944   :  { %v850_v45 = vmul.f32 %v4775_v40, %v849_v44 }
 0x946   :  { %v854_v47 = vsel %vm853_vm8, %v4775_v40, %v850_v45 }
 0x947   :  { %v856_v48 = vmul.f32 %v854_v47, %v832_v46 }
 0x949   :  { %v861_v49 = vmul.f32 %v5183_v15, %v856_v48  ;;  %v1004_v15 = vld [vmem:[%s6257_s5 + $0x68] sm:$0xff] }
 0x94a   :  { %1015 = vmatpush.msra.mxu2 %v1004_v15 }
 0x94b   :  { %v5225_v5 = vadd.f32 %v863_v30, %v861_v49 }
 0x94c   :  { %1016 = vmatpush.msra.mxu2 %v1003_v56 }
 0x94d   :  { %4448 = vmatmul.msk.f32.gmra.mxu1 %vm56_vm0, %v5225_v5 }
 0x94e   :  { %1017 = vmatpush.msra.mxu2 %v1002_v57 }
 0x950   :  { %1018 = vmatpush.msra.mxu2 %v1001_v59 }
 0x952   :  { %1019 = vmatpush.msra.mxu2 %v1000_v17 }
 0x954   :  { %1020 = vmatpush.msra.mxu2 %v999_v62 }
 0x956   :  { %1021 = vmatpush.msra.mxu2 %v998_v2 }
 0x958   :  { %1022 = vmatpush.msra.mxu2 %v997_v3 }
 0x95a   :  { %1023 = vmatpush.msra.mxu2 %v996_v63 }
 0x95c   :  { %1024 = vmatpush.msra.mxu2 %v995_v1 }
 0x95e   :  { %1025 = vmatpush.msra.mxu2 %v994_v8 }
 0x960   :  { %1026 = vmatpush.msra.mxu2 %v993_v10 }
 0x962   :  { %1027 = vmatpush.msra.mxu2 %v992_v18 }
 0x964   :  { %1028 = vmatpush.msra.mxu2 %v991_v20 }
 0x984   :  { %v905_v55 = vpop.f32.mrf.mxu1 }
 0x985   :  { %v5245_v11 = vadd.f32 %v905_v55, %v5236_v54 }
 0x987   :  { %v5251_v58 = vmul.f32 0.70710677, %v5245_v11  ;;  %v911_v42 = vmul.f32 0.5, %v5245_v11 }
 0x989   :  { %v915_v60 = vand.u32 2147483647, %v5251_v58  ;;  %vm981_vm14 = vcmp.ge.f32.partialorder %v5251_v58, 0.0 }
 0x98b   :  { %v917_v61 = vmul.f32 0.3275911, %v915_v60  ;;  %v969_v24 = vsub.f32 0.0, %v915_v60 }
 0x98d   :  { %v919_v14 = vadd.f32 1.0, %v917_v61  ;;  %v971_v27 = vmul.f32 %v969_v24, %v915_v60 }
 0x98f   :  { %4776 = vrcp.f32 %v919_v14  ;;  %v932_v12 = vand.u32 2147483648, %v919_v14  ;;  %v930_v16 = vand.u32 2147483647, %v919_v14  ;;  %vm926_vm11 = vweird.f32 %v919_v14 }
 0x990   :  { %v973_v30 = vmul.f32 1.442695, %v971_v27 }
 0x991   :  { %v933_v21 = vor.u32 1.1754944e-38, %v932_v12  ;;  %vm931_vm13 = vcmp.eq.f32.partialorder %v930_v16, 8.507059e+37 }
 0x992   :  { %4778 = vpow2.f32 %v973_v30 }
 0x995   :  { %v4777_v4 = vpop.eup %4776 }
 0x996   :  { %v922_v6 = vmul.f32 %v4777_v4, %v919_v14  ;;  %vm927_vm10 = vweird.f32 %v4777_v4 }
 0x997   :  { %vm928_vm12 = vmor %vm926_vm11, %vm927_vm10 }
 0x998   :  { %v923_v9 = vsub.f32 1.0, %v922_v6  ;;  %v4779_v37 = vpop.eup %4778 }
 0x99a   :  { %v924_v13 = vmul.f32 %v4777_v4, %v923_v9 }
 0x99c   :  { %v925_v7 = vadd.f32 %v4777_v4, %v924_v13 }
 0x99e   :  { %v929_v22 = vsel %vm928_vm12, %v4777_v4, %v925_v7 }
 0x99f   :  { %v934_v23 = vsel %vm931_vm13, %v933_v21, %v929_v22 }
 0x9a0   :  { %v951_v25 = vmul.f32 1.0614054, %v934_v23 }
 0x9a1   :  { %v1011_v7 = vpop.permute.xlu0 %1010 }
 0x9a2   :  { %v4449_v26 = vadd.f32 -1.4531521, %v951_v25 }
 0x9a4   :  { %v955_v28 = vmul.f32 %v4449_v26, %v934_v23 }
 0x9a6   :  { %v957_v29 = vadd.f32 1.4214138, %v955_v28 }
 0x9a8   :  { %v959_v31 = vmul.f32 %v957_v29, %v934_v23 }
 0x9aa   :  { %v4451_v32 = vadd.f32 -0.28449672, %v959_v31 }
 0x9ac   :  { %v963_v33 = vmul.f32 %v4451_v32, %v934_v23  ;;  %v5308_v32 = vld [vmem:[%s6253_s3 + $0x38] sm:$0xff] }
 0x9ad   :  { %1127 = vmatpush.msrb.mxu0 %v5308_v32 }
 0x9ae   :  { %v965_v35 = vadd.f32 0.2548296, %v963_v33  ;;  %v5313_v33 = vld [vmem:[%s6253_s3 + $0x30] sm:$0xff] }
 0x9af   :  { %1128 = vmatpush.msrb.mxu0 %v5313_v33 }
 0x9b0   :  { %v967_v36 = vmul.f32 %v965_v35, %v934_v23 }
 0x9b2   :  { %v977_v38 = vmul.f32 %v4779_v37, %v967_v36  ;;  %v5327_v36 = vld [vmem:[%s6253_s3 + $0x20] sm:$0xff] }
 0x9b4   :  { %v979_v39 = vsub.f32 1.0, %v977_v38 }
 0x9b6   :  { %v983_v40 = vsub.f32 0.0, %v979_v39 }
 0x9b8   :  { %v985_v41 = vsel %vm981_vm14, %v979_v39, %v983_v40 }
 0x9b9   :  { %v987_v43 = vadd.f32 1.0, %v985_v41 }
 0x9bb   :  { %v989_v44 = vmul.f32 %v987_v43, %v911_v42 }
 0x9bd   :  { %1029 = vmatmul.f32.vlgmr.msra.gmra.mxu2 %v989_v44 }
 0x9ca   :  { %v908_v45 = vpop.f32.mrf.mxu1 }
 0x9cb   :  { %v909_v46 = vadd.f32 %v908_v45, %v5236_v54 }
 0x9cd   :  { %v914_v47 = vmul.f32 0.70710677, %v909_v46  ;;  %v912_v16 = vmul.f32 0.5, %v909_v46 }
 0x9cf   :  { %v916_v48 = vand.u32 2147483647, %v914_v47  ;;  %vm982_vm5 = vcmp.ge.f32.partialorder %v914_v47, 0.0 }
 0x9d1   :  { %v918_v49 = vmul.f32 0.3275911, %v916_v48  ;;  %v970_v59 = vsub.f32 0.0, %v916_v48 }
 0x9d3   :  { %v920_v50 = vadd.f32 1.0, %v918_v49  ;;  %v972_v61 = vmul.f32 %v970_v59, %v916_v48 }
 0x9d5   :  { %4780 = vrcp.f32 %v920_v50  ;;  %v947_v15 = vand.u32 2147483648, %v920_v50  ;;  %v945_v56 = vand.u32 2147483647, %v920_v50  ;;  %vm941_vm2 = vweird.f32 %v920_v50 }
 0x9d6   :  { %v975_v2 = vmul.f32 1.442695, %v972_v61 }
 0x9d7   :  { %v948_v11 = vor.u32 1.1754944e-38, %v947_v15  ;;  %vm946_vm4 = vcmp.eq.f32.partialorder %v945_v56, 8.507059e+37 }
 0x9d8   :  { %4782 = vpow2.f32 %v975_v2 }
 0x9db   :  { %v4781_v51 = vpop.eup %4780 }
 0x9dc   :  { %v937_v52 = vmul.f32 %v4781_v51, %v920_v50  ;;  %vm942_vm15 = vweird.f32 %v4781_v51 }
 0x9dd   :  { %vm943_vm3 = vmor %vm941_vm2, %vm942_vm15 }
 0x9de   :  { %v938_v53 = vsub.f32 1.0, %v937_v52  ;;  %v4783_v8 = vpop.eup %4782  ;;  %v4722_v52 = vld [vmem:[%s6255_s6 + $0x3] ss:$0 sm:$0xff] }
 0x9e0   :  { %v939_v55 = vmul.f32 %v4781_v51, %v938_v53 }
 0x9e2   :  { %v940_v57 = vadd.f32 %v4781_v51, %v939_v55 }
 0x9e4   :  { %v944_v58 = vsel %vm943_vm3, %v4781_v51, %v940_v57 }
 0x9e5   :  { %v949_v54 = vsel %vm946_vm4, %v948_v11, %v944_v58 }
 0x9e6   :  { %v952_v60 = vmul.f32 1.0614054, %v949_v54 }
 0x9e8   :  { %v4450_v17 = vadd.f32 -1.4531521, %v952_v60 }
 0x9ea   :  { %v956_v62 = vmul.f32 %v4450_v17, %v949_v54 }
 0x9ec   :  { %v958_v14 = vadd.f32 1.4214138, %v956_v62 }
 0x9ee   :  { %v960_v3 = vmul.f32 %v958_v14, %v949_v54 }
 0x9f0   :  { %v4452_v63 = vadd.f32 -0.28449672, %v960_v3 }
 0x9f2   :  { %v964_v1 = vmul.f32 %v4452_v63, %v949_v54 }
 0x9f4   :  { %v966_v4 = vadd.f32 0.2548296, %v964_v1 }
 0x9f6   :  { %v968_v6 = vmul.f32 %v966_v4, %v949_v54 }
 0x9f8   :  { %v978_v9 = vmul.f32 %v4783_v8, %v968_v6 }
 0x9fa   :  { %v980_v10 = vsub.f32 1.0, %v978_v9 }
 0x9fc   :  { %v984_v12 = vsub.f32 0.0, %v980_v10 }
 0x9fe   :  { %v986_v13 = vsel %vm982_vm5, %v980_v10, %v984_v12  ;;  %v5347_v10 = vld [vmem:[%s6255_s6 + $0x4] ss:$0 sm:$0xff] }
 0x9ff   :  { %v988_v18 = vadd.f32 1.0, %v986_v13 }
 0xa01   :  { %v990_v20 = vmul.f32 %v988_v18, %v912_v16 }
 0xa03   :  { %1032 = vmatmul.f32.gmra.mxu2 %v990_v20 }
 0xa40   :  { %v1030_v21 = vpop.f32.mrf.mxu2 }
 0xa41   :  { %v1031_v22 = vadd.f32 %v1030_v21, %v1011_v7 }
 0xa43   :  { %v1036_v23 = vadd.f32 %v1031_v22, %v5217_v19 }
 0xa45   :  { %v1039_v24 = vsel %vm56_vm0, %v1036_v23, 0.0  ;;  %v1047_v25 = vmul.f32 %v1036_v23, %v1036_v23 }
 0xa46   :  { %1040 = vadd.xlane.f32.xlu0 %v1039_v24 }
 0xa47   :  { %v1049_v26 = vsel %vm56_vm0, %v1047_v25, 0.0 }
 0xa48   :  { %1050 = vadd.xlane.f32.xlu2 %v1049_v26 }
 0xa60   :  { %1089 = vrot.lane.b32.xlu2 %v5290_v34, %s4953_s25  ;;  %v5320_v34 = vld [vmem:[%s6253_s3 + $0x28] sm:$0xff] }
 0xa61   :  { %1129 = vmatpush.msrb.mxu0 %v5320_v34 }
 0xa63   :  { %1130 = vmatpush.msrb.mxu0 %v5327_v36 }
 0xa86   :  { %v1033_v27 = vpop.f32.mrf.mxu2 }
 0xa87   :  { %v1034_v28 = vadd.f32 %v1033_v27, %v1011_v7 }
 0xa89   :  { %v1037_v29 = vadd.f32 %v1034_v28, %v5225_v5 }
 0xa8b   :  { %v1042_v30 = vsel %vm56_vm0, %v1037_v29, 0.0  ;;  %v1048_v31 = vmul.f32 %v1037_v29, %v1037_v29 }
 0xa8c   :  { %1043 = vadd.xlane.f32.xlu1 %v1042_v30 }
 0xa8d   :  { %v1052_v19 = vsel %vm56_vm0, %v1048_v31, 0.0 }
 0xa8e   :  { %1053 = vadd.xlane.f32.xlu0 %v1052_v19 }
 0xab9   :  { %v1041_v5 = vpop.xlane.xlu0 %1040 }
 0xaba   :  { %v1045_v35 = vmul.f32 %v1041_v5, %v5204_v0 }
 0xabb   :  { %v1051_v37 = vpop.xlane.xlu2 %1050 }
 0xabc   :  { %v1057_v38 = vmul.f32 %v1045_v35, %v1045_v35  ;;  %v1055_v39 = vmul.f32 %v1051_v37, %v5204_v0  ;;  %v1063_v49 = vsub.f32 %v1036_v23, %v1045_v35 }
 0xabe   :  { %v1059_v40 = vsub.f32 %v1055_v39, %v1057_v38 }
 0xac0   :  { %v1061_v41 = vmax.f32 %v1059_v40, 0.0 }
 0xac2   :  { %v1065_v42 = vadd.f32 1e-05, %v1061_v41 }
 0xac3   :  { %v1090_v50 = vpop.permute.xlu2 %1089 }
 0xac4   :  { %4784 = vrsqrt.f32 %v1065_v42  ;;  %vm1073_vm7 = vweird.f32 %v1065_v42 }
 0xaca   :  { %v4785_v43 = vpop.eup %4784 }
 0xacb   :  { %v1068_v44 = vmul.f32 %v4785_v43, %v1065_v42  ;;  %vm1074_vm6 = vweird.f32 %v4785_v43 }
 0xacc   :  { %vm1075_vm8 = vmor %vm1073_vm7, %vm1074_vm6 }
 0xacd   :  { %v1069_v45 = vmul.f32 %v4785_v43, %v1068_v44 }
 0xacf   :  { %v1070_v46 = vmul.f32 0.5, %v1069_v45 }
 0xad1   :  { %v1071_v47 = vsub.f32 1.5, %v1070_v46 }
 0xad3   :  { %v1072_v48 = vmul.f32 %v4785_v43, %v1071_v47 }
 0xad5   :  { %v1076_v51 = vsel %vm1075_vm8, %v4785_v43, %v1072_v48 }
 0xad6   :  { %v1087_v53 = vmul.f32 %v1076_v51, %v1063_v49 }
 0xad8   :  { %v1092_v15 = vmul.f32 %v1090_v50, %v1087_v53 }
 0xada   :  { %v5334_v55 = vadd.f32 %v4722_v52, %v1092_v15 }
 0xadc   :  { %4458 = vmatmul.msk.f32.vlgmr.msrb.gmra.mxu0 %vm56_vm0, %v5334_v55 }
 0xaff   :  { %v1044_v56 = vpop.xlane.xlu1 %1043 }
 0xb00   :  { %v1046_v57 = vmul.f32 %v1044_v56, %v5204_v0 }
 0xb01   :  { %v1054_v11 = vpop.xlane.xlu0 %1053 }
 0xb02   :  { %v1058_v58 = vmul.f32 %v1046_v57, %v1046_v57  ;;  %v1056_v59 = vmul.f32 %v1054_v11, %v5204_v0  ;;  %v1064_v1 = vsub.f32 %v1037_v29, %v1046_v57 }
 0xb04   :  { %v1060_v54 = vsub.f32 %v1056_v59, %v1058_v58 }
 0xb06   :  { %v1062_v60 = vmax.f32 %v1060_v54, 0.0 }
 0xb08   :  { %v1066_v17 = vadd.f32 1e-05, %v1062_v60 }
 0xb0a   :  { %4786 = vrsqrt.f32 %v1066_v17  ;;  %vm1083_vm11 = vweird.f32 %v1066_v17 }
 0xb10   :  { %v4787_v61 = vpop.eup %4786 }
 0xb11   :  { %v1078_v62 = vmul.f32 %v4787_v61, %v1066_v17  ;;  %vm1084_vm10 = vweird.f32 %v4787_v61 }
 0xb12   :  { %vm1085_vm12 = vmor %vm1083_vm11, %vm1084_vm10 }
 0xb13   :  { %v1079_v14 = vmul.f32 %v4787_v61, %v1078_v62 }
 0xb15   :  { %v1080_v2 = vmul.f32 0.5, %v1079_v14 }
 0xb17   :  { %v1081_v3 = vsub.f32 1.5, %v1080_v2 }
 0xb19   :  { %v1082_v63 = vmul.f32 %v4787_v61, %v1081_v3 }
 0xb1b   :  { %v1086_v4 = vsel %vm1085_vm12, %v4787_v61, %v1082_v63 }
 0xb1c   :  { %v1088_v6 = vmul.f32 %v1086_v4, %v1064_v1 }
 0xb1e   :  { %v1093_v8 = vmul.f32 %v1090_v50, %v1088_v6 }
 0xb20   :  { %v5340_v9 = vadd.f32 %v4722_v52, %v1093_v8 }
 0xb22   :  { %4459 = vmatmul.msk.f32.gmra.mxu0 %vm56_vm0, %v5340_v9 }
 0xb59   :  { %v1132_v12 = vpop.f32.mrf.mxu0 }
 0xb5a   :  { %v5350_v13 = vadd.f32 %v5347_v10, %v1132_v12 }
 0xb5c   :  { %1139 = vrot.lane.b32.xlu1 %v5350_v13, %s4949_s1 }
 0xb9f   :  { %v1135_v16 = vpop.f32.mrf.mxu0 }
 0xba0   :  { %v5355_v18 = vadd.f32 %v5347_v10, %v1135_v16 }
 0xba2   :  { %1242 = vrot.lane.b32.xlu1 %v5355_v18, %s4950_s22  ;;  %1166 = vrot.lane.b32.xlu0 %v5355_v18, %s4949_s1 }
 0xbce   :  { %v1140_v20 = vpop.permute.xlu1 %1139 }
 0xbcf   :  { %4460 = vmatpush.xpose.msk.msrb.mxu3 %vm89_vm1, %v1140_v20 }
 0xbd2   :  { %4461 = vmatmul.msk.f32.vlgmr.msrb.gmra.mxu3 %vm89_vm1, %v5350_v13 }
 0xc14   :  { %v1243_v7 = vpop.permute.xlu1 %1242  ;;  %v1167_v21 = vpop.permute.xlu0 %1166 }
 0xc15   :  { %4462 = vmatpush.xpose.msk.msra.mxu1 %vm89_vm1, %v1167_v21  ;;  %1263 = vmatpush.msra.mxu3 %v1243_v7 }
 0xc18   :  { %4463 = vmatmul.msk.f32.vlgmr.msra.gmra.mxu1 %vm89_vm1, %v5355_v18 }
 0xc55   :  { %v1162_v22 = vpop.f32.mrf.mxu3 }
 0xc56   :  { %v1192_v23 = vmul.f32 0.35355338, %v1162_v22 }
 0xc58   :  { %v1194_v24 = vsel %vm89_vm1, %v1192_v23, -inf }
 0xc59   :  { %1195 = vmax.xlane.f32.xlu2 %v1194_v24 }
 0xc95   :  { %v1189_v25 = vpop.f32.mrf.mxu1 }
 0xc96   :  { %v1193_v26 = vmul.f32 0.35355338, %v1189_v25 }
 0xc98   :  { %v1197_v27 = vsel %vm89_vm1, %v1193_v26, -inf }
 0xc99   :  { %1198 = vmax.xlane.f32.xlu0 %v1197_v27 }
 0xcad   :  { %1216 = vrot.lane.b32.xlu0 %v5350_v13, %s4950_s22 }
 0xcb5   :  { %1312 = vrot.lane.b32.xlu0 %v5350_v13, %s4952_s24 }
 0xcbd   :  { %1340 = vrot.lane.b32.xlu0 %v5355_v18, %s4952_s24 }
 0xcc5   :  { %1488 = vrot.lane.b32.xlu0 %v5350_v13, %s4955_s27 }
 0xccc   :  { %v1196_v28 = vpop.xlane.xlu2 %1195 }
 0xccd   :  { %v1200_v29 = vsub.f32 %v1192_v23, %v1196_v28 }
 0xccf   :  { %v1202_v30 = vmul.f32 1.442695, %v1200_v29 }
 0xcd1   :  { %4788 = vpow2.f32 %v1202_v30 }
 0xcd7   :  { %v4789_v31 = vpop.eup %4788 }
 0xcd8   :  { %v1206_v19 = vsel %vm89_vm1, %v4789_v31, 0.0 }
 0xcd9   :  { %1207 = vadd.xlane.f32.xlu1 %v1206_v19 }
 0xcf2   :  { %1342 = vrot.lane.b32.xlu1 %v5355_v18, %s4951_s23 }
 0xcfa   :  { %1490 = vrot.lane.b32.xlu1 %v5350_v13, %s4954_s26 }
 0xd0c   :  { %v1199_v5 = vpop.xlane.xlu0 %1198 }
 0xd0d   :  { %v1201_v35 = vsub.f32 %v1193_v26, %v1199_v5 }
 0xd0f   :  { %v1204_v37 = vmul.f32 1.442695, %v1201_v35 }
 0xd11   :  { %4790 = vpow2.f32 %v1204_v37 }
 0xd17   :  { %v4791_v38 = vpop.eup %4790 }
 0xd18   :  { %v1209_v39 = vsel %vm89_vm1, %v4791_v38, 0.0 }
 0xd19   :  { %1210 = vadd.xlane.f32.xlu2 %v1209_v39 }
 0xd1f   :  { %v1217_v40 = vpop.permute.xlu0 %1216 }
 0xd20   :  { %1237 = vmatpush.msra.mxu0 %v1217_v40 }
 0xd27   :  { %v1313_v47 = vpop.permute.xlu0 %1312 }
 0xd2f   :  { %v1341_v50 = vpop.permute.xlu0 %1340 }
 0xd31   :  { %1314 = vrot.lane.b32.xlu2 %v5350_v13, %s4951_s23 }
 0xd37   :  { %v1489_v11 = vpop.permute.xlu0 %1488 }
 0xd39   :  { %1270 = vrot.lane.b32.xlu2 %v5327_v36, %s4953_s25 }
 0xd4c   :  { %v1208_v41 = vpop.xlane.xlu1 %1207 }
 0xd4d   :  { %4792 = vrcp.f32 %v1208_v41 }
 0xd53   :  { %v4793_v42 = vpop.eup %4792 }
 0xd54   :  { %v1214_v43 = vmul.f32 %v4793_v42, %v4789_v31 }
 0xd56   :  { %4464 = vmatmul.msk.f32.vlgmr.msra.gmra.mxu0 %vm89_vm1, %v1214_v43 }
 0xd64   :  { %v1343_v44 = vpop.permute.xlu1 %1342 }
 0xd65   :  { %4471 = vmatpush.xpose.msk.msrb.mxu3 %vm89_vm1, %v1343_v44 }
 0xd6c   :  { %v1491_v51 = vpop.permute.xlu1 %1490 }
 0xd8c   :  { %v1211_v45 = vpop.xlane.xlu2 %1210 }
 0xd8d   :  { %4794 = vrcp.f32 %v1211_v45 }
 0xd93   :  { %v4795_v46 = vpop.eup %4794 }
 0xd94   :  { %v1215_v48 = vmul.f32 %v4795_v46, %v4791_v38  ;;  %v1315_v49 = vpop.permute.xlu2 %1314 }
 0xd95   :  { %4469 = vmatpush.xpose.msk.msrb.mxu0 %vm89_vm1, %v1315_v49 }
 0xd96   :  { %4465 = vmatmul.msk.f32.vlgmr.msra.gmra.mxu3 %vm89_vm1, %v1215_v48 }
 0xd98   :  { %4470 = vmatmul.msk.f32.vlgmr.msrb.gmra.mxu0 %vm89_vm1, %v1313_v47 }
 0xd9c   :  { %v1271_v36 = vpop.permute.xlu2 %1270 }
 0xd9d   :  { %1294 = vmatpush.msrb.mxu1 %v1271_v36 }
 0xd9e   :  { %4472 = vmatmul.msk.f32.vlgmr.msrb.gmra.mxu3 %vm89_vm1, %v1341_v50 }
 0xd9f   :  { %4478 = vmatpush.xpose.msk.msra.mxu1 %vm89_vm1, %v1491_v51 }
 0xdd3   :  { %v1239_v52 = vpop.f32.mrf.mxu0 }
 0xdd4   :  { %4467 = vmatmul.msk.f32.vlgmr.msrb.gmra.mxu1 %vm89_vm1, %v1239_v52 }
 0xe15   :  { %v1337_v53 = vpop.f32.mrf.mxu0 }
 0xe16   :  { %v1368_v15 = vmul.f32 0.35355338, %v1337_v53 }
 0xe18   :  { %v1370_v56 = vsel %vm89_vm1, %v1368_v15, -inf }
 0xe19   :  { %v1265_v57 = vpop.f32.mrf.mxu3  ;;  %1371 = vmax.xlane.f32.xlu2 %v1370_v56 }
 0xe1a   :  { %4468 = vmatmul.msk.f32.gmra.mxu1 %vm89_vm1, %v1265_v57 }
 0xe21   :  { %v1365_v58 = vpop.f32.mrf.mxu3 }
 0xe22   :  { %v1369_v59 = vmul.f32 0.35355338, %v1365_v58  ;;  %4479 = vmatmul.msk.f32.vlgmr.msra.gmra.mxu1 %vm89_vm1, %v1489_v11  ;;  %v4698_v58 = vpack.i.bf16 %v5308_v32, %v5313_v33 }
 0xe24   :  { %v1373_v54 = vsel %vm89_vm1, %v1369_v59, -inf }
 0xe25   :  { %1374 = vmax.xlane.f32.xlu1 %v1373_v54 }
 0xe31   :  { %1392 = vrot.lane.b32.xlu2 %v5350_v13, %s4956_s28 }
 0xe39   :  { %1518 = vrot.lane.b32.xlu2 %v5355_v18, %s4954_s26 }
 0xe41   :  { %1568 = vrot.lane.b32.xlu2 %v5350_v13, %s4957_s29 }
 0xe49   :  { %1694 = vrot.lane.b32.xlu2 %v5355_v18, %s4959_s9 }
 0xe51   :  { %1692 = vrot.lane.b32.xlu2 %v5355_v18, %s4958_s30  ;;  %v5409_v62 = vpop.f32.mrf.mxu1 }
 0xe8c   :  { %v1372_v60 = vpop.xlane.xlu2 %1371 }
 0xe8d   :  { %v1376_v17 = vsub.f32 %v1368_v15, %v1372_v60 }
 0xe8f   :  { %v1378_v61 = vmul.f32 1.442695, %v1376_v17 }
 0xe91   :  { %4796 = vpow2.f32 %v1378_v61 }
 0xe94   :  { %v1393_v14 = vpop.permute.xlu2 %1392 }
 0xe95   :  { %1413 = vmatpush.msrb.mxu2 %v1393_v14 }
 0xe97   :  { %v4797_v2 = vpop.eup %4796  ;;  %v5412_v4 = vpop.f32.mrf.mxu1 }
 0xe98   :  { %v1375_v3 = vpop.xlane.xlu1 %1374  ;;  %v1382_v63 = vsel %vm89_vm1, %v4797_v2, 0.0 }
 0xe99   :  { %v1377_v1 = vsub.f32 %v1369_v59, %v1375_v3  ;;  %1383 = vadd.xlane.f32.xlu0 %v1382_v63 }
 0xe9b   :  { %v1380_v6 = vmul.f32 1.442695, %v1377_v1 }
 0xe9c   :  { %v1519_v8 = vpop.permute.xlu2 %1518 }
 0xe9d   :  { %4798 = vpow2.f32 %v1380_v6  ;;  %4480 = vmatpush.xpose.msk.msra.mxu2 %vm89_vm1, %v1519_v8 }
 0xe9f   :  { %v1513_v20 = vpop.f32.mrf.mxu1 }
 0xea0   :  { %v1544_v7 = vmul.f32 0.35355338, %v1513_v20 }
 0xea2   :  { %v1546_v21 = vsel %vm89_vm1, %v1544_v7, -inf }
 0xea3   :  { %v4799_v12 = vpop.eup %4798 }
 0xea4   :  { %v1385_v16 = vsel %vm89_vm1, %v4799_v12, 0.0  ;;  %v1569_v26 = vpop.permute.xlu2 %1568 }
 0xea5   :  { %1386 = vadd.xlane.f32.xlu1 %v1385_v16 }
 0xeac   :  { %v1695_v5 = vpop.permute.xlu2 %1694 }
 0xead   :  { %1418 = vrot.lane.b32.xlu0 %v5355_v18, %s4956_s28  ;;  %1547 = vmax.xlane.f32.xlu1 %v1546_v21 }
 0xeb4   :  { %v1693_v44 = vpop.permute.xlu2 %1692 }
 0xeb5   :  { %1446 = vrot.lane.b32.xlu0 %v5320_v34, %s4953_s25 }
 0xebd   :  { %1666 = vrot.lane.b32.xlu0 %v5350_v13, %s4959_s9 }
 0xec5   :  { %1664 = vrot.lane.b32.xlu0 %v5350_v13, %s4958_s30 }
 0xf0c   :  { %v1384_v22 = vpop.xlane.xlu0 %1383 }
 0xf0d   :  { %4800 = vrcp.f32 %v1384_v22 }
 0xf13   :  { %v4801_v23 = vpop.eup %4800 }
 0xf14   :  { %v1390_v24 = vmul.f32 %v4801_v23, %v4797_v2 }
 0xf16   :  { %4473 = vmatmul.msk.f32.vlgmr.msrb.gmra.mxu2 %vm89_vm1, %v1390_v24 }
 0xf18   :  { %v1387_v25 = vpop.xlane.xlu1 %1386 }
 0xf19   :  { %4802 = vrcp.f32 %v1387_v25 }
 0xf1f   :  { %v4803_v27 = vpop.eup %4802  ;;  %v1419_v28 = vpop.permute.xlu0 %1418 }
 0xf20   :  { %v1391_v29 = vmul.f32 %v4803_v27, %v4799_v12  ;;  %v1548_v30 = vpop.xlane.xlu1 %1547  ;;  %1439 = vmatpush.msra.mxu0 %v1419_v28 }
 0xf21   :  { %v1552_v34 = vsub.f32 %v1544_v7, %v1548_v30 }
 0xf22   :  { %1589 = vmatpush.msrb.mxu0 %v1569_v26 }
 0xf23   :  { %4474 = vmatmul.msk.f32.vlgmr.msra.gmra.mxu0 %vm89_vm1, %v1391_v29  ;;  %v1554_v31 = vmul.f32 1.442695, %v1552_v34 }
 0xf25   :  { %4804 = vpow2.f32 %v1554_v31 }
 0xf27   :  { %v1447_v19 = vpop.permute.xlu0 %1446 }
 0xf28   :  { %1470 = vmatpush.msra.mxu3 %v1447_v19 }
 0xf2a   :  { %4489 = vmatpush.xpose.msk.msrb.mxu3 %vm89_vm1, %v1695_v5 }
 0xf2b   :  { %v4805_v35 = vpop.eup %4804 }
 0xf2c   :  { %v1558_v37 = vsel %vm89_vm1, %v4805_v35, 0.0 }
 0xf2d   :  { %1559 = vadd.xlane.f32.xlu1 %v1558_v37 }
 0xf2f   :  { %v1667_v38 = vpop.permute.xlu0 %1666 }
 0xf30   :  { %4487 = vmatpush.xpose.msk.msra.mxu0 %vm89_vm1, %v1667_v38 }
 0xf37   :  { %v1665_v45 = vpop.permute.xlu0 %1664 }
 0xf46   :  { %1516 = vrot.lane.b32.xlu1 %v5355_v18, %s4955_s27 }
 0xf99   :  { %v1415_v39 = vpop.f32.mrf.mxu2 }
 0xf9a   :  { %4476 = vmatmul.msk.f32.vlgmr.msra.gmra.mxu3 %vm89_vm1, %v1415_v39 }
 0xfa0   :  { %v1560_v40 = vpop.xlane.xlu1 %1559  ;;  %v1441_v41 = vpop.f32.mrf.mxu0 }
 0xfa1   :  { %4806 = vrcp.f32 %v1560_v40 }
 0xfa2   :  { %4477 = vmatmul.msk.f32.gmra.mxu3 %vm89_vm1, %v1441_v41 }
 0xfa7   :  { %v4807_v42 = vpop.eup %4806 }
 0xfa8   :  { %v1566_v43 = vmul.f32 %v4807_v42, %v4805_v35 }
 0xfaa   :  { %4482 = vmatmul.msk.f32.vlgmr.msrb.gmra.mxu0 %vm89_vm1, %v1566_v43  ;;  %4490 = vmatmul.msk.f32.vlgmr.msrb.gmra.mxu3 %vm89_vm1, %v1693_v44 }
 0xfb2   :  { %4488 = vmatmul.msk.f32.vlgmr.msra.gmra.mxu0 %vm89_vm1, %v1665_v45 }
 0xfb8   :  { %v1517_v46 = vpop.permute.xlu1 %1516 }
 0xfb9   :  { %4481 = vmatmul.msk.f32.vlgmr.msra.gmra.mxu2 %vm89_vm1, %v1517_v46 }
0x101d   :  { %v1472_v47 = vpop.f32.mrf.mxu3 }
0x1025   :  { %v5438_v48 = vpop.f32.mrf.mxu3 }
0x1027   :  { %v1591_v49 = vpop.f32.mrf.mxu0 }
0x102d   :  { %v1717_v36 = vpop.f32.mrf.mxu3 }
0x102e   :  { %v1721_v50 = vmul.f32 0.35355338, %v1717_v36 }
0x102f   :  { %v1689_v51 = vpop.f32.mrf.mxu0 }
0x1030   :  { %v1720_v52 = vmul.f32 0.35355338, %v1689_v51  ;;  %v1725_v53 = vsel %vm89_vm1, %v1721_v50, -inf }
0x1031   :  { %1726 = vmax.xlane.f32.xlu2 %v1725_v53 }
0x1032   :  { %v1722_v15 = vsel %vm89_vm1, %v1720_v52, -inf }
0x1033   :  { %1723 = vmax.xlane.f32.xlu1 %v1722_v15 }
0x103c   :  { %v1541_v56 = vpop.f32.mrf.mxu2 }
0x103d   :  { %v1545_v57 = vmul.f32 0.35355338, %v1541_v56 }
0x103f   :  { %v1549_v11 = vsel %vm89_vm1, %v1545_v57, -inf }
0x1040   :  { %1550 = vmax.xlane.f32.xlu0 %v1549_v11 }
0x1049   :  { %1594 = vrot.lane.b32.xlu2 %v5355_v18, %s4957_s29 }
0x1051   :  { %4699 = vrot.lane.b32.xlu2 %v4698_v58, %s4953_s25 }
0x1059   :  { %1304 = vrot.lane.b32.xlu2 %v5409_v62, %s4949_s1 }
0x10a4   :  { %v1727_v59 = vpop.xlane.xlu2 %1726 }
0x10a5   :  { %v1729_v6 = vsub.f32 %v1721_v50, %v1727_v59 }
0x10a6   :  { %v1724_v54 = vpop.xlane.xlu1 %1723 }
0x10a7   :  { %v1728_v60 = vsub.f32 %v1720_v52, %v1724_v54  ;;  %v1732_v62 = vmul.f32 1.442695, %v1729_v6  ;;  %v4724_v54 = vld [vmem:[%s6255_s6 + $0x5] ss:$0 sm:$0xff] }
0x10a9   :  { %v1730_v17 = vmul.f32 1.442695, %v1728_v60  ;;  %v4499_v60 = vld [vmem:[%s6256_s4 + $0x30] sm:$0xff] }
0x10ab   :  { %4808 = vpow2.f32 %v1730_v17 }
0x10ac   :  { %v1595_v61 = vpop.permute.xlu2 %1594 }
0x10ad   :  { %1615 = vmatpush.msrb.mxu1 %v1595_v61  ;;  %v4498_v61 = vld [vmem:[%s6256_s4 + $0x28] sm:$0xff] }
0x10b1   :  { %v4809_v14 = vpop.eup %4808 }
0x10b2   :  { %v1734_v2 = vsel %vm89_vm1, %v4809_v14, 0.0 }
0x10b3   :  { %1735 = vadd.xlane.f32.xlu1 %v1734_v2  ;;  %v1551_v3 = vpop.xlane.xlu0 %1550 }
0x10b4   :  { %v1553_v63 = vsub.f32 %v1545_v57, %v1551_v3  ;;  %v4700_v1 = vpop.permute.xlu2 %4699  ;;  %v4497_v3 = vld [vmem:[%s6256_s4 + $0x20] sm:$0xff] }
0x10b5   :  { %v4702_v32 = vunpack.i.h.bf16 %v4700_v1  ;;  %v4701_v33 = vunpack.i.l.bf16 %v4700_v1 }
0x10b6   :  { %v1556_v8 = vmul.f32 1.442695, %v1553_v63 }
0x10b7   :  { %1646 = vmatpush.msrb.mxu2 %v4701_v33  ;;  %1822 = vmatpush.msra.mxu3 %v4702_v32 }
0x10b8   :  { %4810 = vpow2.f32 %v1556_v8  ;;  %4485 = vmatmul.msk.f32.vlgmr.msrb.gmra.mxu2 %vm89_vm1, %v1591_v49 }
0x10b9   :  { %4812 = vpow2.f32 %v1732_v62  ;;  %v4501_v62 = vld [vmem:[%s6255_s6 + $0x5] sm:$0x3] }
0x10bc   :  { %v1305_v37 = vpop.permute.xlu2 %1304 }
0x10bd   :  { %v1310_v39 = vadd.f32 %v5347_v10, %v1305_v37 }
0x10be   :  { %v4811_v12 = vpop.eup %4810 }
0x10bf   :  { %v1561_v16 = vsel %vm89_vm1, %v4811_v12, 0.0  ;;  %v4813_v20 = vpop.eup %4812 }
0x10c0   :  { %1562 = vadd.xlane.f32.xlu0 %v1561_v16  ;;  %v1737_v7 = vsel %vm89_vm1, %v4813_v20, 0.0  ;;  %v1919_v16 = vperm.slane %v4501_v62, 1 }
0x10c8   :  { %1738 = vadd.xlane.f32.xlu0 %v1737_v7 }
0x10cc   :  { %1744 = vrot.lane.b32.xlu1 %v5350_v13, %s4960_s10 }
0x10dc   :  { %1770 = vrot.lane.b32.xlu0 %v5355_v18, %s4960_s10 }
0x10e4   :  { %1480 = vrot.lane.b32.xlu0 %v1472_v47, %s4949_s1 }
0x10ec   :  { %1306 = vrot.lane.b32.xlu0 %v5412_v4, %s4949_s1 }
0x1126   :  { %v1736_v22 = vpop.xlane.xlu1 %1735 }
0x1133   :  { %v1563_v21 = vpop.xlane.xlu0 %1562 }
0x1134   :  { %4814 = vrcp.f32 %v1563_v21 }
0x1135   :  { %4816 = vrcp.f32 %v1736_v22  ;;  %v1918_v22 = vperm.slane %v4501_v62, 0 }
0x113a   :  { %v4815_v23 = vpop.eup %4814 }
0x113b   :  { %v1567_v24 = vmul.f32 %v4815_v23, %v4811_v12  ;;  %v1648_v25 = vpop.f32.mrf.mxu2  ;;  %v4817_v26 = vpop.eup %4816 }
0x113c   :  { %1656 = vrot.lane.b32.xlu1 %v1648_v25, %s4949_s1  ;;  %v1739_v18 = vpop.xlane.xlu0 %1738  ;;  %v1742_v27 = vmul.f32 %v4817_v26, %v4809_v14 }
0x113d   :  { %4483 = vmatmul.msk.f32.vlgmr.msrb.gmra.mxu1 %vm89_vm1, %v1567_v24  ;;  %4818 = vrcp.f32 %v1739_v18 }
0x113e   :  { %v1745_v13 = vpop.permute.xlu1 %1744 }
0x113f   :  { %1765 = vmatpush.msra.mxu1 %v1745_v13 }
0x1143   :  { %v4819_v4 = vpop.eup %4818 }
0x1144   :  { %1482 = vrot.lane.b32.xlu1 %v5438_v48, %s4949_s1  ;;  %v1743_v28 = vmul.f32 %v4819_v4, %v4813_v20 }
0x1145   :  { %4491 = vmatmul.msk.f32.vlgmr.msra.gmra.mxu1 %vm89_vm1, %v1742_v27 }
0x114e   :  { %v1771_v29 = vpop.permute.xlu0 %1770 }
0x114f   :  { %1791 = vmatpush.msrb.mxu0 %v1771_v29 }
0x1150   :  { %4492 = vmatmul.msk.f32.vlgmr.msrb.gmra.mxu0 %vm89_vm1, %v1743_v28 }
0x1156   :  { %v1481_v38 = vpop.permute.xlu0 %1480 }
0x1157   :  { %v1486_v41 = vadd.f32 %v1481_v38, %v1310_v39 }
0x115e   :  { %v1307_v45 = vpop.permute.xlu0 %1306 }
0x115f   :  { %v1311_v47 = vadd.f32 %v5347_v10, %v1307_v45 }
0x11ae   :  { %v1657_v40 = vpop.permute.xlu1 %1656 }
0x11af   :  { %v1662_v42 = vadd.f32 %v1657_v40, %v1486_v41 }
0x11b6   :  { %v1483_v46 = vpop.permute.xlu1 %1482 }
0x11b7   :  { %v1487_v49 = vadd.f32 %v1483_v46, %v1311_v47  ;;  %v4523_v47 = vld [vmem:[%s6257_s5 + $0xf8] sm:$0xff] }
0x11b8   :  { %2058 = vmatpush.msra.mxu2 %v4523_v47 }
0x11ba   :  { %v1617_v30 = vpop.f32.mrf.mxu1 }
0x11bb   :  { %4486 = vmatmul.msk.f32.gmra.mxu2 %vm89_vm1, %v1617_v30 }
0x11c2   :  { %v1767_v34 = vpop.f32.mrf.mxu1 }
0x11c3   :  { %4494 = vmatmul.msk.f32.vlgmr.msra.gmra.mxu3 %vm89_vm1, %v1767_v34 }
0x11cd   :  { %v1793_v31 = vpop.f32.mrf.mxu0 }
0x11ce   :  { %4495 = vmatmul.msk.f32.gmra.mxu3 %vm89_vm1, %v1793_v31 }
0x123e   :  { %v1651_v5 = vpop.f32.mrf.mxu2 }
0x1246   :  { %v1824_v19 = vpop.f32.mrf.mxu3 }
0x1247   :  { %1832 = vrot.lane.b32.xlu2 %v1824_v19, %s4949_s1 }
0x124f   :  { %1658 = vrot.lane.b32.xlu2 %v1651_v5, %s4949_s1 }
0x1251   :  { %v1827_v35 = vpop.f32.mrf.mxu3 }
0x1252   :  { %1834 = vrot.lane.b32.xlu0 %v1827_v35, %s4949_s1 }
0x12a1   :  { %v1833_v43 = vpop.permute.xlu2 %1832 }
0x12a2   :  { %v1838_v44 = vadd.f32 %v1833_v43, %v1662_v42 }
0x12a4   :  { %1842 = vrot.lane.b32.xlu1 %v1838_v44, %s4953_s25 }
0x12a9   :  { %v1659_v48 = vpop.permute.xlu2 %1658 }
0x12aa   :  { %v1663_v36 = vadd.f32 %v1659_v48, %v1487_v49 }
0x12c4   :  { %v1835_v50 = vpop.permute.xlu0 %1834 }
0x12c5   :  { %v1839_v51 = vadd.f32 %v1835_v50, %v1663_v36  ;;  %v4522_v36 = vld [vmem:[%s6257_s5 + $0xf0] sm:$0xff] }
0x12c6   :  { %2059 = vmatpush.msra.mxu2 %v4522_v36 }
0x12c7   :  { %1844 = vrot.lane.b32.xlu2 %v1839_v51, %s4953_s25  ;;  %v4521_v51 = vld [vmem:[%s6257_s5 + $0xe8] sm:$0xff] }
0x12c8   :  { %2060 = vmatpush.msra.mxu2 %v4521_v51 }
0x1316   :  { %v1843_v52 = vpop.permute.xlu1 %1842 }
0x1317   :  { %v1848_v53 = vadd.f32 %v1843_v52, %v5334_v55 }
0x1319   :  { %v1851_v15 = vsel %vm56_vm0, %v1848_v53, 0.0  ;;  %v1859_v56 = vmul.f32 %v1848_v53, %v1848_v53 }
0x131a   :  { %1852 = vadd.xlane.f32.xlu0 %v1851_v15 }
0x131b   :  { %v1861_v57 = vsel %vm56_vm0, %v1859_v56, 0.0  ;;  %v4519_v56 = vld [vmem:[%s6257_s5 + $0xd8] sm:$0xff] }
0x131c   :  { %1862 = vadd.xlane.f32.xlu1 %v1861_v57 }
0x1321   :  { %v1845_v11 = vpop.permute.xlu2 %1844 }
0x1322   :  { %v5481_v10 = vadd.f32 %v1845_v11, %v5340_v9  ;;  %v4500_v9 = vld [vmem:[%s6256_s4 + $0x38] sm:$0xff]  ;;  %v4518_v11 = vld [vmem:[%s6257_s5 + $0xd0] sm:$0xff] }
0x1323   :  { %1944 = vmatpush.msrb.mxu1 %v4500_v9  ;;  %v4515_v9 = vld [vmem:[%s6257_s5 + $0xb8] sm:$0xff] }
0x1324   :  { %v1854_v58 = vsel %vm56_vm0, %v5481_v10, 0.0  ;;  %v1860_v59 = vmul.f32 %v5481_v10, %v5481_v10 }
0x1325   :  { %1855 = vadd.xlane.f32.xlu2 %v1854_v58  ;;  %1945 = vmatpush.msrb.mxu1 %v4499_v60  ;;  %v4517_v58 = vld [vmem:[%s6257_s5 + $0xc8] sm:$0xff] }
0x1326   :  { %v1864_v55 = vsel %vm56_vm0, %v1860_v59, 0.0 }
0x1327   :  { %1865 = vadd.xlane.f32.xlu0 %v1864_v55  ;;  %1946 = vmatpush.msrb.mxu1 %v4498_v61  ;;  %v4516_v55 = vld [vmem:[%s6257_s5 + $0xc0] sm:$0xff]  ;;  %v4514_v61 = vld [vmem:[%s6257_s5 + $0xb0] sm:$0xff] }
0x1329   :  { %1947 = vmatpush.msrb.mxu1 %v4497_v3 }
0x1335   :  { %1906 = vrot.lane.b32.xlu1 %v4724_v54, %s4949_s1 }
0x133b   :  { %1922 = vrot.lane.b32.xlu0 %v1919_v16, %s4950_s22 }
0x133d   :  { %1920 = vrot.lane.b32.xlu2 %v1918_v22, %s4950_s22  ;;  %v4508_v22 = vld [vmem:[%s6257_s5 + $0x80] sm:$0xff] }
0x138d   :  { %v1853_v17 = vpop.xlane.xlu0 %1852 }
0x138e   :  { %v1857_v14 = vmul.f32 %v1853_v17, %v5204_v0 }
0x138f   :  { %v1863_v2 = vpop.xlane.xlu1 %1862 }
0x1390   :  { %v1869_v63 = vmul.f32 %v1857_v14, %v1857_v14  ;;  %v1867_v1 = vmul.f32 %v1863_v2, %v5204_v0  ;;  %v1875_v29 = vsub.f32 %v1848_v53, %v1857_v14  ;;  %v4520_v53 = vld [vmem:[%s6257_s5 + $0xe0] sm:$0xff]  ;;  %v4513_v2 = vld [vmem:[%s6257_s5 + $0xa8] sm:$0xff] }
0x1391   :  { %2061 = vmatpush.msra.mxu2 %v4520_v53 }
0x1392   :  { %v1871_v32 = vsub.f32 %v1867_v1, %v1869_v63  ;;  %v4512_v63 = vld [vmem:[%s6257_s5 + $0xa0] sm:$0xff] }
0x1393   :  { %2062 = vmatpush.msra.mxu2 %v4519_v56 }
0x1394   :  { %v1873_v33 = vmax.f32 %v1871_v32, 0.0 }
0x1395   :  { %2063 = vmatpush.msra.mxu2 %v4518_v11 }
0x1396   :  { %v1877_v6 = vadd.f32 1e-05, %v1873_v33 }
0x1397   :  { %2064 = vmatpush.msra.mxu2 %v4517_v58 }
0x1398   :  { %4820 = vrsqrt.f32 %v1877_v6  ;;  %v1856_v8 = vpop.xlane.xlu2 %1855  ;;  %vm1885_vm14 = vweird.f32 %v1877_v6 }
0x1399   :  { %v1858_v12 = vmul.f32 %v1856_v8, %v5204_v0  ;;  %2065 = vmatpush.msra.mxu2 %v4516_v55 }
0x139a   :  { %v1866_v20 = vpop.xlane.xlu0 %1865 }
0x139b   :  { %v1870_v7 = vmul.f32 %v1858_v12, %v1858_v12  ;;  %v1868_v21 = vmul.f32 %v1866_v20, %v5204_v0  ;;  %v1876_v42 = vsub.f32 %v5481_v10, %v1858_v12  ;;  %2066 = vmatpush.msra.mxu2 %v4515_v9  ;;  %v4510_v12 = vld [vmem:[%s6257_s5 + $0x90] sm:$0xff] }
0x139d   :  { %v1872_v23 = vsub.f32 %v1868_v21, %v1870_v7  ;;  %2067 = vmatpush.msra.mxu2 %v4514_v61  ;;  %v4509_v21 = vld [vmem:[%s6257_s5 + $0x88] sm:$0xff] }
0x139e   :  { %v4821_v24 = vpop.eup %4820 }
0x139f   :  { %v1880_v25 = vmul.f32 %v4821_v24, %v1877_v6  ;;  %v1874_v13 = vmax.f32 %v1872_v23, 0.0  ;;  %vm1886_vm13 = vweird.f32 %v4821_v24  ;;  %2068 = vmatpush.msra.mxu2 %v4513_v2  ;;  %v4511_v6 = vld [vmem:[%s6257_s5 + $0x98] sm:$0xff] }
0x13a0   :  { %vm1887_vm15 = vmor %vm1885_vm14, %vm1886_vm13  ;;  %v1921_v48 = vpop.permute.xlu2 %1920 }
0x13a1   :  { %v1881_v26 = vmul.f32 %v4821_v24, %v1880_v25  ;;  %v1878_v18 = vadd.f32 1e-05, %v1874_v13  ;;  %2069 = vmatpush.msra.mxu2 %v4512_v63 }
0x13a3   :  { %v1882_v27 = vmul.f32 0.5, %v1881_v26  ;;  %4822 = vrsqrt.f32 %v1878_v18  ;;  %vm1895_vm3 = vweird.f32 %v1878_v18  ;;  %2070 = vmatpush.msra.mxu2 %v4511_v6 }
0x13a5   :  { %v1883_v4 = vsub.f32 1.5, %v1882_v27  ;;  %2071 = vmatpush.msra.mxu2 %v4510_v12 }
0x13a7   :  { %v1884_v28 = vmul.f32 %v4821_v24, %v1883_v4  ;;  %v1907_v5 = vpop.permute.xlu1 %1906  ;;  %2072 = vmatpush.msra.mxu2 %v4509_v21 }
0x13a9   :  { %v4823_v30 = vpop.eup %4822  ;;  %v1888_v34 = vsel %vm1887_vm15, %v4821_v24, %v1884_v28  ;;  %2073 = vmatpush.msra.mxu2 %v4508_v22 }
0x13aa   :  { %v1890_v31 = vmul.f32 %v4823_v30, %v1878_v18  ;;  %v1899_v19 = vmul.f32 %v1888_v34, %v1875_v29  ;;  %vm1896_vm2 = vweird.f32 %v4823_v30 }
0x13ab   :  { %vm1897_vm4 = vmor %vm1895_vm3, %vm1896_vm2 }
0x13ac   :  { %v1891_v35 = vmul.f32 %v4823_v30, %v1890_v31  ;;  %v1904_v37 = vmul.f32 %v4724_v54, %v1899_v19 }
0x13ad   :  { %v1923_v49 = vpop.permute.xlu0 %1922 }
0x13ae   :  { %v1892_v38 = vmul.f32 0.5, %v1891_v35  ;;  %v5513_v39 = vadd.f32 %v1907_v5, %v1904_v37  ;;  %v1924_v50 = vsel %vm879_vm9, %v1921_v48, %v1923_v49 }
0x13b0   :  { %v1893_v40 = vsub.f32 1.5, %v1892_v38  ;;  %4502 = vmatmul.msk.f32.vlgmr.msrb.gmra.mxu1 %vm56_vm0, %v5513_v39 }
0x13b2   :  { %v1894_v41 = vmul.f32 %v4823_v30, %v1893_v40 }
0x13b4   :  { %v1898_v43 = vsel %vm1897_vm4, %v4823_v30, %v1894_v41 }
0x13b5   :  { %v1900_v44 = vmul.f32 %v1898_v43, %v1876_v42  ;;  %v4725_v42 = vld [vmem:[%s6255_s6 + $0x6] ss:$0 sm:$0xff] }
0x13b6   :  { %2055 = vrot.lane.b32.xlu1 %v4725_v42, %s4950_s22 }
0x13b7   :  { %v1905_v45 = vmul.f32 %v4724_v54, %v1900_v44 }
0x13b9   :  { %v5518_v46 = vadd.f32 %v1907_v5, %v1905_v45 }
0x13bb   :  { %4503 = vmatmul.msk.f32.gmra.mxu1 %vm56_vm0, %v5518_v46 }
0x142d   :  { %v1949_v52 = vpop.f32.mrf.mxu1 }
0x142e   :  { %v5535_v15 = vadd.f32 %v1949_v52, %v1924_v50 }
0x1430   :  { %v5541_v57 = vmul.f32 0.70710677, %v5535_v15  ;;  %v1955_v2 = vmul.f32 0.5, %v5535_v15 }
0x1432   :  { %v1959_v10 = vand.u32 2147483647, %v5541_v57  ;;  %vm2025_vm14 = vcmp.ge.f32.partialorder %v5541_v57, 0.0 }
0x1434   :  { %v1961_v59 = vmul.f32 0.3275911, %v1959_v10  ;;  %v2013_v26 = vsub.f32 0.0, %v1959_v10 }
0x1436   :  { %v1963_v54 = vadd.f32 1.0, %v1961_v59  ;;  %v2015_v29 = vmul.f32 %v2013_v26, %v1959_v10 }
0x1438   :  { %4824 = vrcp.f32 %v1963_v54  ;;  %v1952_v60 = vpop.f32.mrf.mxu1  ;;  %v1976_v16 = vand.u32 2147483648, %v1963_v54  ;;  %v1974_v7 = vand.u32 2147483647, %v1963_v54  ;;  %vm1970_vm6 = vweird.f32 %v1963_v54 }
0x1439   :  { %v5556_v17 = vadd.f32 %v1952_v60, %v1924_v50  ;;  %v2017_v37 = vmul.f32 1.442695, %v2015_v29 }
0x143a   :  { %v1977_v24 = vor.u32 1.1754944e-38, %v1976_v16  ;;  %vm1975_vm8 = vcmp.eq.f32.partialorder %v1974_v7, 8.507059e+37  ;;  %v2056_v7 = vpop.permute.xlu1 %2055 }
0x143b   :  { %v5562_v14 = vmul.f32 0.70710677, %v5556_v17  ;;  %v1956_v16 = vmul.f32 0.5, %v5556_v17 }
0x143d   :  { %v1960_v3 = vand.u32 2147483647, %v5562_v14  ;;  %vm2026_vm15 = vcmp.ge.f32.partialorder %v5562_v14, 0.0 }
0x143e   :  { %v4825_v1 = vpop.eup %4824 }
0x143f   :  { %v1966_v32 = vmul.f32 %v4825_v1, %v1963_v54  ;;  %v1962_v33 = vmul.f32 0.3275911, %v1960_v3  ;;  %vm1971_vm5 = vweird.f32 %v4825_v1  ;;  %v2014_v45 = vsub.f32 0.0, %v1960_v3 }
0x1440   :  { %vm1972_vm7 = vmor %vm1970_vm6, %vm1971_vm5 }
0x1441   :  { %v1967_v8 = vsub.f32 1.0, %v1966_v32  ;;  %v1964_v62 = vadd.f32 1.0, %v1962_v33  ;;  %v2016_v51 = vmul.f32 %v2014_v45, %v1960_v3 }
0x1443   :  { %v1968_v20 = vmul.f32 %v4825_v1, %v1967_v8  ;;  %4826 = vrcp.f32 %v1964_v62  ;;  %v1991_v31 = vand.u32 2147483648, %v1964_v62  ;;  %v1989_v5 = vand.u32 2147483647, %v1964_v62 }
0x1444   :  { %vm1985_vm11 = vweird.f32 %v1964_v62  ;;  %4828 = vpow2.f32 %v2017_v37  ;;  %v2019_v58 = vmul.f32 1.442695, %v2016_v51 }
0x1445   :  { %v1969_v23 = vadd.f32 %v4825_v1, %v1968_v20  ;;  %v1992_v41 = vor.u32 1.1754944e-38, %v1991_v31  ;;  %vm1990_vm13 = vcmp.eq.f32.partialorder %v1989_v5, 8.507059e+37 }
0x1446   :  { %4830 = vpow2.f32 %v2019_v58 }
0x1447   :  { %v1973_v25 = vsel %vm1972_vm7, %v4825_v1, %v1969_v23 }
0x1448   :  { %v1978_v13 = vsel %vm1975_vm8, %v1977_v24, %v1973_v25 }
0x1449   :  { %v4827_v18 = vpop.eup %4826  ;;  %v1995_v27 = vmul.f32 1.0614054, %v1978_v13 }
0x144a   :  { %v1981_v4 = vmul.f32 %v4827_v18, %v1964_v62  ;;  %vm1986_vm10 = vweird.f32 %v4827_v18  ;;  %v4829_v56 = vpop.eup %4828 }
0x144b   :  { %v4504_v28 = vadd.f32 -1.4531521, %v1995_v27  ;;  %vm1987_vm12 = vmor %vm1985_vm11, %vm1986_vm10  ;;  %v5606_v27 = vld [vmem:[%s6253_s3 + $0x58] sm:$0xff] }
0x144c   :  { %v1982_v30 = vsub.f32 1.0, %v1981_v4  ;;  %v4831_v33 = vpop.eup %4830  ;;  %2176 = vmatpush.msra.mxu0 %v5606_v27  ;;  %v5612_v4 = vld [vmem:[%s6253_s3 + $0x50] sm:$0xff] }
0x144d   :  { %v1999_v34 = vmul.f32 %v4504_v28, %v1978_v13 }
0x144e   :  { %v1983_v19 = vmul.f32 %v4827_v18, %v1982_v30  ;;  %2177 = vmatpush.msra.mxu0 %v5612_v4  ;;  %v5619_v30 = vld [vmem:[%s6253_s3 + $0x48] sm:$0xff] }
0x144f   :  { %v2001_v35 = vadd.f32 1.4214138, %v1999_v34 }
0x1450   :  { %v1984_v38 = vadd.f32 %v4827_v18, %v1983_v19  ;;  %2178 = vmatpush.msra.mxu0 %v5619_v30  ;;  %v5626_v19 = vld [vmem:[%s6253_s3 + $0x40] sm:$0xff] }
0x1451   :  { %v2003_v40 = vmul.f32 %v2001_v35, %v1978_v13 }
0x1452   :  { %v1988_v43 = vsel %vm1987_vm12, %v4827_v18, %v1984_v38  ;;  %2179 = vmatpush.msra.mxu0 %v5626_v19 }
0x1453   :  { %v4506_v44 = vadd.f32 -0.28449672, %v2003_v40  ;;  %v1993_v47 = vsel %vm1990_vm13, %v1992_v41, %v1988_v43 }
0x1454   :  { %v1996_v48 = vmul.f32 1.0614054, %v1993_v47 }
0x1455   :  { %v2007_v49 = vmul.f32 %v4506_v44, %v1978_v13 }
0x1456   :  { %v4505_v36 = vadd.f32 -1.4531521, %v1996_v48 }
0x1457   :  { %v2009_v50 = vadd.f32 0.2548296, %v2007_v49 }
0x1458   :  { %v2000_v52 = vmul.f32 %v4505_v36, %v1993_v47 }
0x1459   :  { %v2011_v53 = vmul.f32 %v2009_v50, %v1978_v13 }
0x145a   :  { %v2002_v11 = vadd.f32 1.4214138, %v2000_v52 }
0x145b   :  { %v2021_v10 = vmul.f32 %v4829_v56, %v2011_v53 }
0x145c   :  { %v2004_v59 = vmul.f32 %v2002_v11, %v1993_v47 }
0x145d   :  { %v2023_v55 = vsub.f32 1.0, %v2021_v10 }
0x145e   :  { %v4507_v54 = vadd.f32 -0.28449672, %v2004_v59  ;;  %v4726_v59 = vld [vmem:[%s6255_s6 + $0x7] ss:$0 sm:$0xff] }
0x145f   :  { %v2027_v9 = vsub.f32 0.0, %v2023_v55 }
0x1460   :  { %v2008_v60 = vmul.f32 %v4507_v54, %v1993_v47 }
0x1461   :  { %v2029_v61 = vsel %vm2025_vm14, %v2023_v55, %v2027_v9 }
0x1462   :  { %v2031_v63 = vadd.f32 1.0, %v2029_v61  ;;  %v2010_v1 = vadd.f32 0.2548296, %v2008_v60  ;;  %v2144_v60 = vld [vmem:[%s6258_s2] sm:$0xff] }
0x1464   :  { %v2033_v3 = vmul.f32 %v2031_v63, %v1955_v2  ;;  %v2012_v32 = vmul.f32 %v2010_v1, %v1993_v47 }
0x1466   :  { %2074 = vmatmul.f32.vlgmr.msra.gmra.mxu2 %v2033_v3  ;;  %v2022_v6 = vmul.f32 %v4831_v33, %v2012_v32 }
0x1468   :  { %v2024_v8 = vsub.f32 1.0, %v2022_v6 }
0x146a   :  { %v2028_v62 = vsub.f32 0.0, %v2024_v8 }
0x146c   :  { %v2030_v12 = vsel %vm2026_vm15, %v2024_v8, %v2028_v62  ;;  %v2145_v62 = vld [vmem:[%s6258_s2 + $0x8] sm:$0xff] }
0x146d   :  { %v2032_v20 = vadd.f32 1.0, %v2030_v12 }
0x146f   :  { %v2034_v57 = vmul.f32 %v2032_v20, %v1956_v16  ;;  %v5652_v20 = vld [vmem:[%s6255_s6 + $0x8] ss:$0 sm:$0xff] }
0x1471   :  { %2077 = vmatmul.f32.gmra.mxu2 %v2034_v57 }
0x14e9   :  { %v2075_v21 = vpop.f32.mrf.mxu2 }
0x14ea   :  { %v2076_v15 = vadd.f32 %v2075_v21, %v2056_v7 }
0x14ec   :  { %v2081_v22 = vadd.f32 %v2076_v15, %v5513_v39 }
0x14ee   :  { %v2084_v23 = vsel %vm56_vm0, %v2081_v22, 0.0  ;;  %v2092_v24 = vmul.f32 %v2081_v22, %v2081_v22 }
0x14ef   :  { %2085 = vadd.xlane.f32.xlu0 %v2084_v23 }
0x14f0   :  { %v2094_v25 = vsel %vm56_vm0, %v2092_v24, 0.0 }
0x14f1   :  { %2095 = vadd.xlane.f32.xlu2 %v2094_v25 }
0x14f4   :  { %v2078_v13 = vpop.f32.mrf.mxu2 }
0x14f5   :  { %v2079_v14 = vadd.f32 %v2078_v13, %v2056_v7 }
0x14f7   :  { %v5595_v26 = vadd.f32 %v2079_v14, %v5518_v46 }
0x14f9   :  { %v2087_v17 = vsel %vm56_vm0, %v5595_v26, 0.0  ;;  %v2093_v18 = vmul.f32 %v5595_v26, %v5595_v26 }
0x14fa   :  { %2088 = vadd.xlane.f32.xlu1 %v2087_v17 }
0x14fb   :  { %v2097_v39 = vsel %vm56_vm0, %v2093_v18, 0.0 }
0x14fc   :  { %2098 = vadd.xlane.f32.xlu0 %v2097_v39 }
0x1509   :  { %2134 = vrot.lane.b32.xlu2 %v4725_v42, %s4953_s25 }
0x1562   :  { %v2086_v46 = vpop.xlane.xlu0 %2085 }
0x1563   :  { %v2090_v28 = vmul.f32 %v2086_v46, %v5204_v0 }
0x1564   :  { %v2096_v29 = vpop.xlane.xlu2 %2095 }
0x1565   :  { %v2102_v34 = vmul.f32 %v2090_v28, %v2090_v28  ;;  %v2100_v31 = vmul.f32 %v2096_v29, %v5204_v0  ;;  %v2108_v53 = vsub.f32 %v2081_v22, %v2090_v28 }
0x1567   :  { %v2104_v5 = vsub.f32 %v2100_v31, %v2102_v34 }
0x1569   :  { %v2106_v35 = vmax.f32 %v2104_v5, 0.0 }
0x156b   :  { %v2110_v37 = vadd.f32 1e-05, %v2106_v35 }
0x156c   :  { %v2135_v11 = vpop.permute.xlu2 %2134 }
0x156d   :  { %4832 = vrsqrt.f32 %v2110_v37  ;;  %v2089_v38 = vpop.xlane.xlu1 %2088  ;;  %vm2118_vm3 = vweird.f32 %v2110_v37 }
0x156e   :  { %v2091_v40 = vmul.f32 %v2089_v38, %v5204_v0 }
0x156f   :  { %v2099_v41 = vpop.xlane.xlu0 %2098 }
0x1570   :  { %v2103_v42 = vmul.f32 %v2091_v40, %v2091_v40  ;;  %v2101_v43 = vmul.f32 %v2099_v41, %v5204_v0  ;;  %v2109_v32 = vsub.f32 %v5595_v26, %v2091_v40 }
0x1572   :  { %v2105_v44 = vsub.f32 %v2101_v43, %v2103_v42 }
0x1573   :  { %v4833_v45 = vpop.eup %4832 }
0x1574   :  { %v2113_v47 = vmul.f32 %v4833_v45, %v2110_v37  ;;  %v2107_v48 = vmax.f32 %v2105_v44, 0.0  ;;  %vm2119_vm2 = vweird.f32 %v4833_v45 }
0x1575   :  { %vm2120_vm4 = vmor %vm2118_vm3, %vm2119_vm2 }
0x1576   :  { %v2114_v49 = vmul.f32 %v4833_v45, %v2113_v47  ;;  %v2111_v36 = vadd.f32 1e-05, %v2107_v48 }
0x1578   :  { %v2115_v50 = vmul.f32 0.5, %v2114_v49  ;;  %4834 = vrsqrt.f32 %v2111_v36  ;;  %vm2128_vm6 = vweird.f32 %v2111_v36 }
0x157a   :  { %v2116_v51 = vsub.f32 1.5, %v2115_v50 }
0x157c   :  { %v2117_v52 = vmul.f32 %v4833_v45, %v2116_v51 }
0x157e   :  { %v4835_v56 = vpop.eup %4834  ;;  %v2121_v10 = vsel %vm2120_vm4, %v4833_v45, %v2117_v52 }
0x157f   :  { %v2123_v58 = vmul.f32 %v4835_v56, %v2111_v36  ;;  %v2132_v55 = vmul.f32 %v2121_v10, %v2108_v53  ;;  %vm2129_vm5 = vweird.f32 %v4835_v56 }
0x1580   :  { %vm2130_vm7 = vmor %vm2128_vm6, %vm2129_vm5 }
0x1581   :  { %v2124_v54 = vmul.f32 %v4835_v56, %v2123_v58  ;;  %v2137_v9 = vmul.f32 %v2135_v11, %v2132_v55 }
0x1583   :  { %v2125_v61 = vmul.f32 0.5, %v2124_v54  ;;  %v2142_v2 = vadd.f32 %v4726_v59, %v2137_v9 }
0x1585   :  { %v2126_v63 = vsub.f32 1.5, %v2125_v61  ;;  %v5637_v1 = vadd.f32 %v2144_v60, %v2142_v2 }
0x1587   :  { %v2127_v3 = vmul.f32 %v4835_v56, %v2126_v63  ;;  %4531 = vmatmul.msk.f32.vlgmr.msra.gmra.mxu0 %vm56_vm0, %v5637_v1 }
0x1589   :  { %v2131_v33 = vsel %vm2130_vm7, %v4835_v56, %v2127_v3 }
0x158a   :  { %v2133_v6 = vmul.f32 %v2131_v33, %v2109_v32 }
0x158c   :  { %v2138_v8 = vmul.f32 %v2135_v11, %v2133_v6 }
0x158e   :  { %v2143_v12 = vadd.f32 %v4726_v59, %v2138_v8 }
0x1590   :  { %v5645_v16 = vadd.f32 %v2145_v62, %v2143_v12 }
0x1592   :  { %4532 = vmatmul.msk.f32.gmra.mxu0 %vm56_vm0, %v5645_v16 }
0x1604   :  { %v2181_v57 = vpop.f32.mrf.mxu0 }
0x1605   :  { %v5655_v7 = vadd.f32 %v5652_v20, %v2181_v57 }
0x1607   :  { %2188 = vrot.lane.b32.xlu1 %v5655_v7, %s4949_s1 }
0x160f   :  { %2363 = vrot.lane.b32.xlu1 %v5655_v7, %s4951_s23  ;;  %v2184_v21 = vpop.f32.mrf.mxu0 }
0x1610   :  { %v5662_v15 = vadd.f32 %v5652_v20, %v2184_v21 }
0x1612   :  { %2215 = vrot.lane.b32.xlu0 %v5662_v15, %s4949_s1  ;;  %v4703_v18 = vpack.i.bf16 %v5662_v15, %v5655_v7 }
0x1679   :  { %v2189_v22 = vpop.permute.xlu1 %2188 }
0x167a   :  { %4533 = vmatpush.xpose.msk.msrb.mxu3 %vm89_vm1, %v2189_v22 }
0x167d   :  { %4534 = vmatmul.msk.f32.vlgmr.msrb.gmra.mxu3 %vm89_vm1, %v5655_v7 }
0x1684   :  { %v2216_v23 = vpop.permute.xlu0 %2215 }
0x1685   :  { %4535 = vmatpush.xpose.msk.msra.mxu1 %vm89_vm1, %v2216_v23 }
0x1688   :  { %4536 = vmatmul.msk.f32.vlgmr.msra.gmra.mxu1 %vm89_vm1, %v5662_v15 }
0x1700   :  { %v2211_v24 = vpop.f32.mrf.mxu3 }
0x1701   :  { %v2241_v25 = vmul.f32 0.35355338, %v2211_v24 }
0x1703   :  { %v2243_v13 = vsel %vm89_vm1, %v2241_v25, -inf }
0x1704   :  { %2244 = vmax.xlane.f32.xlu2 %v2243_v13 }
0x1705   :  { %v2238_v14 = vpop.f32.mrf.mxu1 }
0x1706   :  { %v2242_v26 = vmul.f32 0.35355338, %v2238_v14 }
0x1708   :  { %v2246_v17 = vsel %vm89_vm1, %v2242_v26, -inf }
0x1709   :  { %2247 = vmax.xlane.f32.xlu0 %v2246_v17 }
0x171d   :  { %4704 = vrot.lane.b32.xlu0 %v4703_v18, %s4950_s22 }
0x1725   :  { %2391 = vrot.lane.b32.xlu0 %v5662_v15, %s4951_s23 }
0x172d   :  { %2319 = vrot.lane.b32.xlu0 %v5626_v19, %s4953_s25  ;;  %v2364_v19 = vpop.permute.xlu1 %2363 }
0x1777   :  { %v2245_v39 = vpop.xlane.xlu2 %2244 }
0x1778   :  { %v2249_v46 = vsub.f32 %v2241_v25, %v2245_v39 }
0x177a   :  { %v2251_v28 = vmul.f32 1.442695, %v2249_v46 }
0x177c   :  { %4836 = vpow2.f32 %v2251_v28  ;;  %v2248_v29 = vpop.xlane.xlu0 %2247 }
0x177d   :  { %v2250_v34 = vsub.f32 %v2242_v26, %v2248_v29 }
0x177f   :  { %v2253_v31 = vmul.f32 1.442695, %v2250_v34 }
0x1781   :  { %4838 = vpow2.f32 %v2253_v31 }
0x1782   :  { %v4837_v5 = vpop.eup %4836 }
0x1783   :  { %v2255_v35 = vsel %vm89_vm1, %v4837_v5, 0.0 }
0x1784   :  { %2256 = vadd.xlane.f32.xlu1 %v2255_v35 }
0x1787   :  { %v4839_v37 = vpop.eup %4838 }
0x1788   :  { %v2258_v38 = vsel %vm89_vm1, %v4839_v37, 0.0 }
0x1789   :  { %2259 = vadd.xlane.f32.xlu2 %v2258_v38 }
0x178f   :  { %v4705_v40 = vpop.permute.xlu0 %4704 }
0x1790   :  { %v4707_v41 = vunpack.i.h.bf16 %v4705_v40  ;;  %v4706_v42 = vunpack.i.l.bf16 %v4705_v40 }
0x1792   :  { %2286 = vmatpush.msrb.mxu0 %v4706_v42  ;;  %2312 = vmatpush.msra.mxu3 %v4707_v41 }
0x1794   :  { %4542 = vmatpush.xpose.msk.msra.mxu0 %vm89_vm1, %v2364_v19 }
0x1797   :  { %v2392_v43 = vpop.permute.xlu0 %2391 }
0x1798   :  { %4544 = vmatpush.xpose.msk.msrb.mxu3 %vm89_vm1, %v2392_v43 }
0x179d   :  { %2389 = vrot.lane.b32.xlu1 %v5662_v15, %s4952_s24 }
0x179f   :  { %v2320_v44 = vpop.permute.xlu0 %2319 }
0x17a0   :  { %2343 = vmatpush.msrb.mxu1 %v2320_v44 }
0x17a1   :  { %2361 = vrot.lane.b32.xlu2 %v5655_v7, %s4952_s24 }
0x17a5   :  { %2537 = vrot.lane.b32.xlu1 %v5655_v7, %s4955_s27 }
0x17a9   :  { %2539 = vrot.lane.b32.xlu2 %v5655_v7, %s4954_s26 }
0x17f7   :  { %v2257_v45 = vpop.xlane.xlu1 %2256 }
0x17f8   :  { %4840 = vrcp.f32 %v2257_v45 }
0x17fc   :  { %v2260_v47 = vpop.xlane.xlu2 %2259 }
0x17fd   :  { %4842 = vrcp.f32 %v2260_v47 }
0x17fe   :  { %v4841_v48 = vpop.eup %4840 }
0x17ff   :  { %v2263_v49 = vmul.f32 %v4841_v48, %v4837_v5 }
0x1801   :  { %4537 = vmatmul.msk.f32.vlgmr.msrb.gmra.mxu0 %vm89_vm1, %v2263_v49 }
0x1803   :  { %v4843_v36 = vpop.eup %4842 }
0x1804   :  { %v2264_v50 = vmul.f32 %v4843_v36, %v4839_v37  ;;  %v2362_v51 = vpop.permute.xlu2 %2361 }
0x1806   :  { %4538 = vmatmul.msk.f32.vlgmr.msra.gmra.mxu3 %vm89_vm1, %v2264_v50 }
0x1809   :  { %4543 = vmatmul.msk.f32.vlgmr.msra.gmra.mxu0 %vm89_vm1, %v2362_v51 }
0x180c   :  { %v2540_v52 = vpop.permute.xlu2 %2539 }
0x180d   :  { %4551 = vmatpush.xpose.msk.msra.mxu1 %vm89_vm1, %v2540_v52 }
0x180f   :  { %v2390_v53 = vpop.permute.xlu1 %2389 }
0x1810   :  { %4545 = vmatmul.msk.f32.vlgmr.msrb.gmra.mxu3 %vm89_vm1, %v2390_v53 }
0x1817   :  { %v2538_v55 = vpop.permute.xlu1 %2537 }
0x187e   :  { %v2288_v56 = vpop.f32.mrf.mxu0 }
0x187f   :  { %4540 = vmatmul.msk.f32.vlgmr.msrb.gmra.mxu1 %vm89_vm1, %v2288_v56 }
0x1886   :  { %v2386_v11 = vpop.f32.mrf.mxu0 }
0x1887   :  { %v2417_v10 = vmul.f32 0.35355338, %v2386_v11 }
0x1889   :  { %v2314_v58 = vpop.f32.mrf.mxu3  ;;  %v2419_v59 = vsel %vm89_vm1, %v2417_v10, -inf }
0x188a   :  { %2420 = vmax.xlane.f32.xlu0 %v2419_v59  ;;  %4541 = vmatmul.msk.f32.gmra.mxu1 %vm89_vm1, %v2314_v58 }
0x1892   :  { %4552 = vmatmul.msk.f32.vlgmr.msra.gmra.mxu1 %vm89_vm1, %v2538_v55 }
0x1893   :  { %v2414_v54 = vpop.f32.mrf.mxu3 }
0x1894   :  { %v2418_v9 = vmul.f32 0.35355338, %v2414_v54 }
0x1896   :  { %v2422_v60 = vsel %vm89_vm1, %v2418_v9, -inf }
0x1897   :  { %2423 = vmax.xlane.f32.xlu2 %v2422_v60 }
0x18af   :  { %2441 = vrot.lane.b32.xlu2 %v5655_v7, %s4956_s28 }
0x18b7   :  { %2567 = vrot.lane.b32.xlu2 %v5662_v15, %s4954_s26 }
0x18bf   :  { %2495 = vrot.lane.b32.xlu2 %v5619_v30, %s4953_s25 }
0x18c7   :  { %2715 = vrot.lane.b32.xlu2 %v5655_v7, %s4959_s9 }
0x18cf   :  { %2741 = vrot.lane.b32.xlu2 %v5662_v15, %s4958_s30 }
0x18fc   :  { %v5713_v3 = vpop.f32.mrf.mxu1 }
0x18fd   :  { %v2421_v61 = vpop.xlane.xlu0 %2420 }
0x18fe   :  { %v2425_v2 = vsub.f32 %v2417_v10, %v2421_v61 }
0x1900   :  { %v2427_v63 = vmul.f32 1.442695, %v2425_v2 }
0x1902   :  { %4844 = vpow2.f32 %v2427_v63  ;;  %v4708_v63 = vpack.i.bf16 %v5606_v27, %v5612_v4 }
0x1907   :  { %v5716_v62 = vpop.f32.mrf.mxu1 }
0x1908   :  { %v4845_v32 = vpop.eup %4844 }
0x1909   :  { %v2431_v33 = vsel %vm89_vm1, %v4845_v32, 0.0 }
0x190a   :  { %v2424_v6 = vpop.xlane.xlu2 %2423  ;;  %2432 = vadd.xlane.f32.xlu1 %v2431_v33 }
0x190b   :  { %v2426_v8 = vsub.f32 %v2418_v9, %v2424_v6 }
0x190d   :  { %v2429_v30 = vmul.f32 1.442695, %v2426_v8 }
0x190f   :  { %4846 = vpow2.f32 %v2429_v30  ;;  %v2562_v22 = vpop.f32.mrf.mxu1 }
0x1910   :  { %v2593_v23 = vmul.f32 0.35355338, %v2562_v22 }
0x1912   :  { %v2442_v12 = vpop.permute.xlu2 %2441  ;;  %v2595_v25 = vsel %vm89_vm1, %v2593_v23, -inf }
0x1913   :  { %2462 = vmatpush.msrb.mxu2 %v2442_v12 }
0x1915   :  { %v4847_v57 = vpop.eup %4846 }
0x1916   :  { %v2434_v21 = vsel %vm89_vm1, %v4847_v57, 0.0 }
0x1917   :  { %2435 = vadd.xlane.f32.xlu0 %v2434_v21 }
0x191a   :  { %v2568_v24 = vpop.permute.xlu2 %2567 }
0x191b   :  { %4553 = vmatpush.xpose.msk.msra.mxu2 %vm89_vm1, %v2568_v24 }
0x191f   :  { %2596 = vmax.xlane.f32.xlu0 %v2595_v25 }
0x1922   :  { %v2496_v13 = vpop.permute.xlu2 %2495 }
0x1923   :  { %2467 = vrot.lane.b32.xlu1 %v5662_v15, %s4956_s28  ;;  %2519 = vmatpush.msra.mxu3 %v2496_v13 }
0x192a   :  { %v2716_v37 = vpop.permute.xlu2 %2715 }
0x192b   :  { %2617 = vrot.lane.b32.xlu1 %v5655_v7, %s4957_s29 }
0x1932   :  { %v2742_v48 = vpop.permute.xlu2 %2741 }
0x1933   :  { %2713 = vrot.lane.b32.xlu1 %v5655_v7, %s4958_s30  ;;  %2565 = vrot.lane.b32.xlu0 %v5662_v15, %s4955_s27 }
0x197d   :  { %v2433_v14 = vpop.xlane.xlu1 %2432 }
0x197e   :  { %4848 = vrcp.f32 %v2433_v14 }
0x1984   :  { %v4849_v26 = vpop.eup %4848 }
0x1985   :  { %v2439_v17 = vmul.f32 %v4849_v26, %v4845_v32 }
0x1987   :  { %4546 = vmatmul.msk.f32.vlgmr.msrb.gmra.mxu2 %vm89_vm1, %v2439_v17 }
0x198a   :  { %v2436_v18 = vpop.xlane.xlu0 %2435 }
0x198b   :  { %4850 = vrcp.f32 %v2436_v18 }
0x1991   :  { %v4851_v39 = vpop.eup %4850 }
0x1992   :  { %v2597_v46 = vpop.xlane.xlu0 %2596  ;;  %v2440_v29 = vmul.f32 %v4851_v39, %v4847_v57 }
0x1993   :  { %v2601_v28 = vsub.f32 %v2593_v23, %v2597_v46 }
0x1995   :  { %v2603_v34 = vmul.f32 1.442695, %v2601_v28  ;;  %v2468_v31 = vpop.permute.xlu1 %2467 }
0x1996   :  { %2488 = vmatpush.msrb.mxu0 %v2468_v31 }
0x1997   :  { %4852 = vpow2.f32 %v2603_v34  ;;  %4547 = vmatmul.msk.f32.vlgmr.msrb.gmra.mxu0 %vm89_vm1, %v2440_v29 }
0x199d   :  { %v4853_v5 = vpop.eup %4852  ;;  %v2618_v35 = vpop.permute.xlu1 %2617 }
0x199e   :  { %2638 = vmatpush.msra.mxu0 %v2618_v35  ;;  %v2607_v38 = vsel %vm89_vm1, %v4853_v5, 0.0 }
0x199f   :  { %2608 = vadd.xlane.f32.xlu0 %v2607_v38 }
0x19a0   :  { %4560 = vmatpush.xpose.msk.msrb.mxu0 %vm89_vm1, %v2716_v37 }
0x19a5   :  { %v2566_v40 = vpop.permute.xlu0 %2565  ;;  %v2714_v45 = vpop.permute.xlu1 %2713 }
0x19a6   :  { %4554 = vmatmul.msk.f32.vlgmr.msra.gmra.mxu2 %vm89_vm1, %v2566_v40 }
0x19b3   :  { %2743 = vrot.lane.b32.xlu0 %v5662_v15, %s4959_s9 }
0x1a0a   :  { %v2464_v41 = vpop.f32.mrf.mxu2 }
0x1a0b   :  { %4549 = vmatmul.msk.f32.vlgmr.msra.gmra.mxu3 %vm89_vm1, %v2464_v41 }
0x1a12   :  { %v2609_v42 = vpop.xlane.xlu0 %2608 }
0x1a13   :  { %4854 = vrcp.f32 %v2609_v42 }
0x1a14   :  { %v2490_v19 = vpop.f32.mrf.mxu0 }
0x1a15   :  { %4550 = vmatmul.msk.f32.gmra.mxu3 %vm89_vm1, %v2490_v19 }
0x1a19   :  { %v4855_v43 = vpop.eup %4854 }
0x1a1a   :  { %v2615_v44 = vmul.f32 %v4855_v43, %v4853_v5 }
0x1a1c   :  { %4555 = vmatmul.msk.f32.vlgmr.msra.gmra.mxu0 %vm89_vm1, %v2615_v44 }
0x1a24   :  { %4561 = vmatmul.msk.f32.vlgmr.msrb.gmra.mxu0 %vm89_vm1, %v2714_v45 }
0x1a25   :  { %v2744_v47 = vpop.permute.xlu0 %2743 }
0x1a26   :  { %4562 = vmatpush.xpose.msk.msrb.mxu3 %vm89_vm1, %v2744_v47 }
0x1a29   :  { %v2590_v49 = vpop.f32.mrf.mxu2  ;;  %4563 = vmatmul.msk.f32.vlgmr.msrb.gmra.mxu3 %vm89_vm1, %v2742_v48 }
0x1a2a   :  { %v2594_v36 = vmul.f32 0.35355338, %v2590_v49 }
0x1a2c   :  { %v2598_v50 = vsel %vm89_vm1, %v2594_v36, -inf }
0x1a2d   :  { %2599 = vmax.xlane.f32.xlu1 %v2598_v50 }
0x1a8e   :  { %v2521_v52 = vpop.f32.mrf.mxu3 }
0x1a98   :  { %v5743_v59 = vpop.f32.mrf.mxu3 }
0x1a99   :  { %v2640_v51 = vpop.f32.mrf.mxu0 }
0x1aa0   :  { %v2600_v53 = vpop.xlane.xlu1 %2599 }
0x1aa1   :  { %v2602_v56 = vsub.f32 %v2594_v36, %v2600_v53  ;;  %v2738_v11 = vpop.f32.mrf.mxu0 }
0x1aa2   :  { %v2769_v10 = vmul.f32 0.35355338, %v2738_v11 }
0x1aa3   :  { %v2605_v58 = vmul.f32 1.442695, %v2602_v56 }
0x1aa4   :  { %v2771_v55 = vsel %vm89_vm1, %v2769_v10, -inf }
0x1aa5   :  { %4856 = vpow2.f32 %v2605_v58  ;;  %2772 = vmax.xlane.f32.xlu0 %v2771_v55 }
0x1aab   :  { %v4857_v54 = vpop.eup %4856 }
0x1aac   :  { %v2766_v9 = vpop.f32.mrf.mxu3  ;;  %v2610_v60 = vsel %vm89_vm1, %v4857_v54, 0.0 }
0x1aad   :  { %v2770_v61 = vmul.f32 0.35355338, %v2766_v9  ;;  %2611 = vadd.xlane.f32.xlu1 %v2610_v60  ;;  %v4728_v60 = vld [vmem:[%s6255_s6 + $0x9] ss:$0 sm:$0xff] }
0x1aaf   :  { %v2774_v2 = vsel %vm89_vm1, %v2770_v61, -inf }
0x1ab0   :  { %2775 = vmax.xlane.f32.xlu2 %v2774_v2 }
0x1ac6   :  { %2793 = vrot.lane.b32.xlu1 %v5655_v7, %s4960_s10 }
0x1ac8   :  { %2643 = vrot.lane.b32.xlu2 %v5662_v15, %s4957_s29 }
0x1ace   :  { %2353 = vrot.lane.b32.xlu1 %v5713_v3, %s4949_s1 }
0x1ad0   :  { %4709 = vrot.lane.b32.xlu2 %v4708_v63, %s4953_s25  ;;  %v4571_v63 = vld [vmem:[%s6256_s4 + $0x48] sm:$0xff] }
0x1ad8   :  { %2529 = vrot.lane.b32.xlu2 %v2521_v52, %s4949_s1 }
0x1ae0   :  { %2355 = vrot.lane.b32.xlu2 %v5716_v62, %s4949_s1 }
0x1b18   :  { %v2773_v32 = vpop.xlane.xlu0 %2772 }
0x1b19   :  { %v2777_v33 = vsub.f32 %v2769_v10, %v2773_v32 }
0x1b1b   :  { %v2779_v6 = vmul.f32 1.442695, %v2777_v33 }
0x1b1d   :  { %4858 = vpow2.f32 %v2779_v6  ;;  %v4570_v6 = vld [vmem:[%s6256_s4 + $0x40] sm:$0xff] }
0x1b20   :  { %v2612_v7 = vpop.xlane.xlu1 %2611 }
0x1b21   :  { %4860 = vrcp.f32 %v2612_v7 }
0x1b23   :  { %v4859_v8 = vpop.eup %4858  ;;  %v2776_v30 = vpop.xlane.xlu2 %2775 }
0x1b24   :  { %v2778_v12 = vsub.f32 %v2770_v61, %v2776_v30  ;;  %v2783_v27 = vsel %vm89_vm1, %v4859_v8, 0.0  ;;  %v4572_v61 = vld [vmem:[%s6256_s4 + $0x50] sm:$0xff] }
0x1b25   :  { %2784 = vadd.xlane.f32.xlu0 %v2783_v27 }
0x1b26   :  { %v2781_v4 = vmul.f32 1.442695, %v2778_v12 }
0x1b27   :  { %v4861_v3 = vpop.eup %4860 }
0x1b28   :  { %4862 = vpow2.f32 %v2781_v4  ;;  %v2616_v57 = vmul.f32 %v4861_v3, %v4857_v54 }
0x1b2b   :  { %v2644_v21 = vpop.permute.xlu2 %2643 }
0x1b2c   :  { %2664 = vmatpush.msrb.mxu1 %v2644_v21 }
0x1b2d   :  { %4556 = vmatmul.msk.f32.vlgmr.msrb.gmra.mxu1 %vm89_vm1, %v2616_v57  ;;  %v4574_v57 = vld [vmem:[%s6255_s6 + $0x9] sm:$0x3] }
0x1b2e   :  { %v4863_v62 = vpop.eup %4862 }
0x1b2f   :  { %v2786_v22 = vsel %vm89_vm1, %v4863_v62, 0.0 }
0x1b30   :  { %2787 = vadd.xlane.f32.xlu0 %v2786_v22 }
0x1b33   :  { %v4710_v23 = vpop.permute.xlu2 %4709 }
0x1b34   :  { %v4712_v24 = vunpack.i.h.bf16 %v4710_v23  ;;  %v4711_v25 = vunpack.i.l.bf16 %v4710_v23 }
0x1b36   :  { %2695 = vmatpush.msrb.mxu2 %v4711_v25  ;;  %2871 = vmatpush.msra.mxu3 %v4712_v24  ;;  %v2968_v24 = vperm.slane %v4574_v57, 1 }
0x1b37   :  { %4558 = vmatmul.msk.f32.vlgmr.msrb.gmra.mxu2 %vm89_vm1, %v2640_v51 }
0x1b38   :  { %v2794_v13 = vpop.permute.xlu1 %2793 }
0x1b39   :  { %2814 = vmatpush.msra.mxu1 %v2794_v13 }
0x1b3b   :  { %v2530_v40 = vpop.permute.xlu2 %2529 }
0x1b40   :  { %v2354_v38 = vpop.permute.xlu1 %2353 }
0x1b41   :  { %v2359_v41 = vadd.f32 %v5652_v20, %v2354_v38 }
0x1b43   :  { %v2535_v19 = vadd.f32 %v2530_v40, %v2359_v41  ;;  %v2356_v47 = vpop.permute.xlu2 %2355 }
0x1b44   :  { %2819 = vrot.lane.b32.xlu0 %v5662_v15, %s4960_s10  ;;  %v2360_v49 = vadd.f32 %v5652_v20, %v2356_v47 }
0x1b98   :  { %v2785_v14 = vpop.xlane.xlu0 %2784 }
0x1b99   :  { %4864 = vrcp.f32 %v2785_v14 }
0x1b9f   :  { %v4865_v26 = vpop.eup %4864 }
0x1ba0   :  { %v2791_v17 = vmul.f32 %v4865_v26, %v4859_v8 }
0x1ba2   :  { %4564 = vmatmul.msk.f32.vlgmr.msra.gmra.mxu1 %vm89_vm1, %v2791_v17 }
0x1ba3   :  { %v2788_v18 = vpop.xlane.xlu0 %2787 }
0x1ba4   :  { %4866 = vrcp.f32 %v2788_v18 }
0x1baa   :  { %v2666_v39 = vpop.f32.mrf.mxu1  ;;  %v4867_v46 = vpop.eup %4866 }
0x1bab   :  { %4559 = vmatmul.msk.f32.gmra.mxu2 %vm89_vm1, %v2666_v39  ;;  %v2792_v28 = vmul.f32 %v4867_v46, %v4863_v62  ;;  %v2967_v62 = vperm.slane %v4574_v57, 0  ;;  %v4583_v57 = vld [vmem:[%s6257_s5 + $0x110] sm:$0xff] }
0x1bb6   :  { %v2820_v29 = vpop.permute.xlu0 %2819 }
0x1bb7   :  { %2840 = vmatpush.msra.mxu0 %v2820_v29 }
0x1bb8   :  { %4565 = vmatmul.msk.f32.vlgmr.msra.gmra.mxu0 %vm89_vm1, %v2792_v28 }
0x1bba   :  { %v2697_v34 = vpop.f32.mrf.mxu2 }
0x1bbb   :  { %2705 = vrot.lane.b32.xlu0 %v2697_v34, %s4949_s1 }
0x1bc3   :  { %2531 = vrot.lane.b32.xlu0 %v5743_v59, %s4949_s1 }
0x1c1f   :  { %v2816_v15 = vpop.f32.mrf.mxu1 }
0x1c20   :  { %4567 = vmatmul.msk.f32.vlgmr.msra.gmra.mxu3 %vm89_vm1, %v2816_v15 }
0x1c2d   :  { %v2706_v42 = vpop.permute.xlu0 %2705 }
0x1c2e   :  { %v2700_v35 = vpop.f32.mrf.mxu2  ;;  %v2711_v43 = vadd.f32 %v2706_v42, %v2535_v19 }
0x1c35   :  { %v2842_v31 = vpop.f32.mrf.mxu0  ;;  %v2532_v48 = vpop.permute.xlu0 %2531 }
0x1c36   :  { %4568 = vmatmul.msk.f32.gmra.mxu3 %vm89_vm1, %v2842_v31  ;;  %v2536_v36 = vadd.f32 %v2532_v48, %v2360_v49  ;;  %v4596_v49 = vld [vmem:[%s6257_s5 + $0x178] sm:$0xff] }
0x1c37   :  { %3107 = vmatpush.msra.mxu2 %v4596_v49 }
0x1ca3   :  { %v2873_v5 = vpop.f32.mrf.mxu3 }
0x1ca4   :  { %2881 = vrot.lane.b32.xlu1 %v2873_v5, %s4949_s1 }
0x1cac   :  { %2707 = vrot.lane.b32.xlu1 %v2700_v35, %s4949_s1 }
0x1cb9   :  { %v2876_v37 = vpop.f32.mrf.mxu3 }
0x1cba   :  { %2883 = vrot.lane.b32.xlu2 %v2876_v37, %s4949_s1 }
0x1d14   :  { %v2884_v52 = vpop.permute.xlu2 %2883 }
0x1d16   :  { %v2882_v44 = vpop.permute.xlu1 %2881 }
0x1d17   :  { %v2887_v45 = vadd.f32 %v2882_v44, %v2711_v43 }
0x1d19   :  { %2891 = vrot.lane.b32.xlu0 %v2887_v45, %s4953_s25 }
0x1d1e   :  { %v2708_v50 = vpop.permute.xlu1 %2707 }
0x1d1f   :  { %v2712_v51 = vadd.f32 %v2708_v50, %v2536_v36 }
0x1d21   :  { %v2888_v53 = vadd.f32 %v2884_v52, %v2712_v51  ;;  %v4595_v51 = vld [vmem:[%s6257_s5 + $0x170] sm:$0xff] }
0x1d22   :  { %3108 = vmatpush.msra.mxu2 %v4595_v51 }
0x1d23   :  { %2893 = vrot.lane.b32.xlu1 %v2888_v53, %s4953_s25  ;;  %v4594_v53 = vld [vmem:[%s6257_s5 + $0x168] sm:$0xff] }
0x1d24   :  { %3109 = vmatpush.msra.mxu2 %v4594_v53 }
0x1d8b   :  { %v2892_v56 = vpop.permute.xlu0 %2891 }
0x1d8c   :  { %v2897_v11 = vadd.f32 %v2892_v56, %v5637_v1 }
0x1d8e   :  { %v2900_v10 = vsel %vm56_vm0, %v2897_v11, 0.0  ;;  %v2908_v58 = vmul.f32 %v2897_v11, %v2897_v11 }
0x1d8f   :  { %2901 = vadd.xlane.f32.xlu2 %v2900_v10 }
0x1d90   :  { %v2910_v59 = vsel %vm56_vm0, %v2908_v58, 0.0  ;;  %v4592_v58 = vld [vmem:[%s6257_s5 + $0x158] sm:$0xff] }
0x1d91   :  { %2911 = vadd.xlane.f32.xlu0 %v2910_v59 }
0x1d95   :  { %v2894_v55 = vpop.permute.xlu1 %2893 }
0x1d96   :  { %v5785_v20 = vadd.f32 %v2894_v55, %v5645_v16  ;;  %v4573_v16 = vld [vmem:[%s6256_s4 + $0x58] sm:$0xff]  ;;  %v4591_v55 = vld [vmem:[%s6257_s5 + $0x150] sm:$0xff] }
0x1d97   :  { %2993 = vmatpush.msrb.mxu1 %v4573_v16 }
0x1d98   :  { %v2903_v54 = vsel %vm56_vm0, %v5785_v20, 0.0  ;;  %v2909_v9 = vmul.f32 %v5785_v20, %v5785_v20 }
0x1d99   :  { %2904 = vadd.xlane.f32.xlu1 %v2903_v54  ;;  %2994 = vmatpush.msrb.mxu1 %v4572_v61  ;;  %v4590_v54 = vld [vmem:[%s6257_s5 + $0x148] sm:$0xff]  ;;  %v4588_v61 = vld [vmem:[%s6257_s5 + $0x138] sm:$0xff] }
0x1d9a   :  { %v2913_v1 = vsel %vm56_vm0, %v2909_v9, 0.0 }
0x1d9b   :  { %2914 = vadd.xlane.f32.xlu2 %v2913_v1  ;;  %2995 = vmatpush.msrb.mxu1 %v4571_v63  ;;  %v4589_v1 = vld [vmem:[%s6257_s5 + $0x140] sm:$0xff]  ;;  %v4587_v63 = vld [vmem:[%s6257_s5 + $0x130] sm:$0xff] }
0x1d9d   :  { %2996 = vmatpush.msrb.mxu1 %v4570_v6 }
0x1da5   :  { %2955 = vrot.lane.b32.xlu0 %v4728_v60, %s4949_s1 }
0x1db2   :  { %2969 = vrot.lane.b32.xlu1 %v2967_v62, %s4950_s22 }
0x1db3   :  { %2971 = vrot.lane.b32.xlu2 %v2968_v24, %s4950_s22  ;;  %v4581_v24 = vld [vmem:[%s6257_s5 + $0x100] sm:$0xff] }
0x1e02   :  { %v2902_v2 = vpop.xlane.xlu2 %2901 }
0x1e03   :  { %v2906_v32 = vmul.f32 %v2902_v2, %v5204_v0 }
0x1e04   :  { %v2912_v33 = vpop.xlane.xlu0 %2911 }
0x1e05   :  { %v2918_v7 = vmul.f32 %v2906_v32, %v2906_v32  ;;  %v2916_v8 = vmul.f32 %v2912_v33, %v5204_v0  ;;  %v2924_v34 = vsub.f32 %v2897_v11, %v2906_v32  ;;  %v4593_v11 = vld [vmem:[%s6257_s5 + $0x160] sm:$0xff]  ;;  %v4586_v33 = vld [vmem:[%s6257_s5 + $0x128] sm:$0xff] }
0x1e06   :  { %3110 = vmatpush.msra.mxu2 %v4593_v11 }
0x1e07   :  { %v2920_v30 = vsub.f32 %v2916_v8, %v2918_v7  ;;  %v4585_v7 = vld [vmem:[%s6257_s5 + $0x120] sm:$0xff] }
0x1e08   :  { %3111 = vmatpush.msra.mxu2 %v4592_v58 }
0x1e09   :  { %v2922_v12 = vmax.f32 %v2920_v30, 0.0 }
0x1e0a   :  { %3112 = vmatpush.msra.mxu2 %v4591_v55 }
0x1e0b   :  { %v2926_v27 = vadd.f32 1e-05, %v2922_v12 }
0x1e0c   :  { %v2905_v4 = vpop.xlane.xlu1 %2904  ;;  %3113 = vmatpush.msra.mxu2 %v4590_v54 }
0x1e0d   :  { %4868 = vrsqrt.f32 %v2926_v27  ;;  %v2907_v3 = vmul.f32 %v2905_v4, %v5204_v0  ;;  %vm2934_vm10 = vweird.f32 %v2926_v27 }
0x1e0e   :  { %v2915_v21 = vpop.xlane.xlu2 %2914  ;;  %3114 = vmatpush.msra.mxu2 %v4589_v1 }
0x1e0f   :  { %v2919_v22 = vmul.f32 %v2907_v3, %v2907_v3  ;;  %v2917_v23 = vmul.f32 %v2915_v21, %v5204_v0  ;;  %v2925_v43 = vsub.f32 %v5785_v20, %v2907_v3 }
0x1e10   :  { %3115 = vmatpush.msra.mxu2 %v4588_v61 }
0x1e11   :  { %v2921_v25 = vsub.f32 %v2917_v23, %v2919_v22  ;;  %v4582_v23 = vld [vmem:[%s6257_s5 + $0x108] sm:$0xff] }
0x1e12   :  { %3116 = vmatpush.msra.mxu2 %v4587_v63 }
0x1e13   :  { %v4869_v13 = vpop.eup %4868  ;;  %v2923_v14 = vmax.f32 %v2921_v25, 0.0 }
0x1e14   :  { %v2929_v26 = vmul.f32 %v4869_v13, %v2926_v27  ;;  %vm2935_vm8 = vweird.f32 %v4869_v13  ;;  %3117 = vmatpush.msra.mxu2 %v4586_v33  ;;  %v4584_v27 = vld [vmem:[%s6257_s5 + $0x118] sm:$0xff] }
0x1e15   :  { %v2927_v17 = vadd.f32 1e-05, %v2923_v14  ;;  %vm2936_vm11 = vmor %vm2934_vm10, %vm2935_vm8 }
0x1e16   :  { %v2930_v18 = vmul.f32 %v4869_v13, %v2929_v26  ;;  %v2972_v50 = vpop.permute.xlu2 %2971  ;;  %3118 = vmatpush.msra.mxu2 %v4585_v7 }
0x1e17   :  { %4870 = vrsqrt.f32 %v2927_v17  ;;  %v2956_v37 = vpop.permute.xlu0 %2955  ;;  %vm2944_vm13 = vweird.f32 %v2927_v17 }
0x1e18   :  { %v2931_v39 = vmul.f32 0.5, %v2930_v18  ;;  %3119 = vmatpush.msra.mxu2 %v4584_v27 }
0x1e1a   :  { %v2932_v46 = vsub.f32 1.5, %v2931_v39  ;;  %3120 = vmatpush.msra.mxu2 %v4583_v57 }
0x1e1c   :  { %v2933_v28 = vmul.f32 %v4869_v13, %v2932_v46  ;;  %3121 = vmatpush.msra.mxu2 %v4582_v23 }
0x1e1d   :  { %v4871_v29 = vpop.eup %4870 }
0x1e1e   :  { %v2939_v15 = vmul.f32 %v4871_v29, %v2927_v17  ;;  %v2937_v31 = vsel %vm2936_vm11, %v4869_v13, %v2933_v28  ;;  %vm2945_vm12 = vweird.f32 %v4871_v29  ;;  %3122 = vmatpush.msra.mxu2 %v4581_v24 }
0x1e1f   :  { %v2948_v5 = vmul.f32 %v2937_v31, %v2924_v34  ;;  %vm2946_vm14 = vmor %vm2944_vm13, %vm2945_vm12 }
0x1e20   :  { %v2940_v35 = vmul.f32 %v4871_v29, %v2939_v15 }
0x1e21   :  { %v2953_v38 = vmul.f32 %v4728_v60, %v2948_v5 }
0x1e22   :  { %v2941_v40 = vmul.f32 0.5, %v2940_v35 }
0x1e23   :  { %v5817_v41 = vadd.f32 %v2956_v37, %v2953_v38 }
0x1e24   :  { %v2942_v42 = vsub.f32 1.5, %v2941_v40  ;;  %v2970_v36 = vpop.permute.xlu1 %2969 }
0x1e25   :  { %4575 = vmatmul.msk.f32.vlgmr.msrb.gmra.mxu1 %vm56_vm0, %v5817_v41  ;;  %v2973_v52 = vsel %vm879_vm9, %v2970_v36, %v2972_v50 }
0x1e26   :  { %v2943_v19 = vmul.f32 %v4871_v29, %v2942_v42 }
0x1e28   :  { %v2947_v44 = vsel %vm2946_vm14, %v4871_v29, %v2943_v19 }
0x1e29   :  { %v2949_v45 = vmul.f32 %v2947_v44, %v2925_v43  ;;  %v4729_v43 = vld [vmem:[%s6255_s6 + $0xa] ss:$0 sm:$0xff] }
0x1e2a   :  { %3104 = vrot.lane.b32.xlu0 %v4729_v43, %s4950_s22 }
0x1e2b   :  { %v2954_v47 = vmul.f32 %v4728_v60, %v2949_v45 }
0x1e2d   :  { %v5822_v48 = vadd.f32 %v2956_v37, %v2954_v47 }
0x1e2f   :  { %4576 = vmatmul.msk.f32.gmra.mxu1 %vm56_vm0, %v5822_v48 }
0x1ea2   :  { %v2998_v56 = vpop.f32.mrf.mxu1 }
0x1ea3   :  { %v5839_v10 = vadd.f32 %v2998_v56, %v2973_v52 }
0x1ea5   :  { %v5845_v59 = vmul.f32 0.70710677, %v5839_v10  ;;  %v3004_v33 = vmul.f32 0.5, %v5839_v10 }
0x1ea7   :  { %v3008_v20 = vand.u32 2147483647, %v5845_v59  ;;  %vm3074_vm10 = vcmp.ge.f32.partialorder %v5845_v59, 0.0 }
0x1ea9   :  { %v3010_v9 = vmul.f32 0.3275911, %v3008_v20  ;;  %v3062_v17 = vsub.f32 0.0, %v3008_v20 }
0x1eab   :  { %v3012_v60 = vadd.f32 1.0, %v3010_v9  ;;  %v3064_v29 = vmul.f32 %v3062_v17, %v3008_v20 }
0x1eac   :  { %v3001_v16 = vpop.f32.mrf.mxu1 }
0x1ead   :  { %4872 = vrcp.f32 %v3012_v60  ;;  %v5860_v2 = vadd.f32 %v3001_v16, %v2973_v52  ;;  %v3025_v21 = vand.u32 2147483648, %v3012_v60  ;;  %v3023_v22 = vand.u32 2147483647, %v3012_v60 }
0x1eae   :  { %vm3019_vm2 = vweird.f32 %v3012_v60  ;;  %v3066_v38 = vmul.f32 1.442695, %v3064_v29  ;;  %v5918_v29 = vld [vmem:[%s6253_s3 + $0x68] sm:$0xff] }
0x1eaf   :  { %v5866_v32 = vmul.f32 0.70710677, %v5860_v2  ;;  %v3026_v13 = vor.u32 1.1754944e-38, %v3025_v21  ;;  %vm3024_vm4 = vcmp.eq.f32.partialorder %v3023_v22, 8.507059e+37  ;;  %v3005_v21 = vmul.f32 0.5, %v5860_v2  ;;  %v3105_v22 = vpop.permute.xlu0 %3104 }
0x1eb1   :  { %v3009_v6 = vand.u32 2147483647, %v5866_v32  ;;  %vm3075_vm11 = vcmp.ge.f32.partialorder %v5866_v32, 0.0 }
0x1eb3   :  { %v4873_v8 = vpop.eup %4872  ;;  %v3011_v12 = vmul.f32 0.3275911, %v3009_v6  ;;  %v3063_v47 = vsub.f32 0.0, %v3009_v6 }
0x1eb4   :  { %v3015_v30 = vmul.f32 %v4873_v8, %v3012_v60  ;;  %vm3020_vm15 = vweird.f32 %v4873_v8 }
0x1eb5   :  { %v3013_v3 = vadd.f32 1.0, %v3011_v12  ;;  %vm3021_vm3 = vmor %vm3019_vm2, %vm3020_vm15  ;;  %v3065_v53 = vmul.f32 %v3063_v47, %v3009_v6 }
0x1eb6   :  { %v3016_v4 = vsub.f32 1.0, %v3015_v30 }
0x1eb7   :  { %4874 = vrcp.f32 %v3013_v3  ;;  %v3040_v31 = vand.u32 2147483648, %v3013_v3  ;;  %v3038_v35 = vand.u32 2147483647, %v3013_v3  ;;  %vm3034_vm6 = vweird.f32 %v3013_v3 }
0x1eb8   :  { %v3017_v62 = vmul.f32 %v4873_v8, %v3016_v4  ;;  %4876 = vpow2.f32 %v3066_v38  ;;  %v3068_v54 = vmul.f32 1.442695, %v3065_v53 }
0x1eb9   :  { %v3041_v19 = vor.u32 1.1754944e-38, %v3040_v31  ;;  %vm3039_vm8 = vcmp.eq.f32.partialorder %v3038_v35, 8.507059e+37 }
0x1eba   :  { %v3018_v25 = vadd.f32 %v4873_v8, %v3017_v62  ;;  %4878 = vpow2.f32 %v3068_v54 }
0x1ebc   :  { %v3022_v14 = vsel %vm3021_vm3, %v4873_v8, %v3018_v25 }
0x1ebd   :  { %v3027_v26 = vsel %vm3024_vm4, %v3026_v13, %v3022_v14  ;;  %v4875_v18 = vpop.eup %4874 }
0x1ebe   :  { %v3044_v39 = vmul.f32 1.0614054, %v3027_v26  ;;  %v3030_v46 = vmul.f32 %v4875_v18, %v3013_v3  ;;  %vm3035_vm5 = vweird.f32 %v4875_v18  ;;  %v4877_v58 = vpop.eup %4876 }
0x1ebf   :  { %vm3036_vm7 = vmor %vm3034_vm6, %vm3035_vm5 }
0x1ec0   :  { %v4577_v28 = vadd.f32 -1.4531521, %v3044_v39  ;;  %v3031_v34 = vsub.f32 1.0, %v3030_v46  ;;  %v4879_v12 = vpop.eup %4878 }
0x1ec2   :  { %v3048_v15 = vmul.f32 %v4577_v28, %v3027_v26  ;;  %v3032_v5 = vmul.f32 %v4875_v18, %v3031_v34 }
0x1ec4   :  { %v3050_v37 = vadd.f32 1.4214138, %v3048_v15  ;;  %v3033_v40 = vadd.f32 %v4875_v18, %v3032_v5  ;;  %v5925_v5 = vld [vmem:[%s6253_s3 + $0x60] sm:$0xff] }
0x1ec6   :  { %v3052_v42 = vmul.f32 %v3050_v37, %v3027_v26  ;;  %v3037_v44 = vsel %vm3036_vm7, %v4875_v18, %v3033_v40 }
0x1ec7   :  { %v3042_v49 = vsel %vm3039_vm8, %v3041_v19, %v3037_v44 }
0x1ec8   :  { %v4579_v45 = vadd.f32 -0.28449672, %v3052_v42  ;;  %v3045_v36 = vmul.f32 1.0614054, %v3042_v49 }
0x1eca   :  { %v3056_v50 = vmul.f32 %v4579_v45, %v3027_v26  ;;  %v4578_v51 = vadd.f32 -1.4531521, %v3045_v36 }
0x1ecc   :  { %v3058_v52 = vadd.f32 0.2548296, %v3056_v50  ;;  %v3049_v56 = vmul.f32 %v4578_v51, %v3042_v49 }
0x1ece   :  { %v3060_v11 = vmul.f32 %v3058_v52, %v3027_v26  ;;  %v3051_v55 = vadd.f32 1.4214138, %v3049_v56 }
0x1ed0   :  { %v3070_v20 = vmul.f32 %v4877_v58, %v3060_v11  ;;  %v3053_v9 = vmul.f32 %v3051_v55, %v3042_v49 }
0x1ed2   :  { %v3072_v1 = vsub.f32 1.0, %v3070_v20  ;;  %v4580_v60 = vadd.f32 -0.28449672, %v3053_v9  ;;  %v4730_v9 = vld [vmem:[%s6255_s6 + $0xb] ss:$0 sm:$0xff] }
0x1ed4   :  { %v3076_v16 = vsub.f32 0.0, %v3072_v1  ;;  %v3057_v61 = vmul.f32 %v4580_v60, %v3042_v49 }
0x1ed6   :  { %v3078_v63 = vsel %vm3074_vm10, %v3072_v1, %v3076_v16  ;;  %v3059_v8 = vadd.f32 0.2548296, %v3057_v61 }
0x1ed7   :  { %v3080_v7 = vadd.f32 1.0, %v3078_v63 }
0x1ed8   :  { %v3061_v30 = vmul.f32 %v3059_v8, %v3042_v49 }
0x1ed9   :  { %v3082_v6 = vmul.f32 %v3080_v7, %v3004_v33 }
0x1eda   :  { %v3071_v27 = vmul.f32 %v4879_v12, %v3061_v30 }
0x1edb   :  { %3123 = vmatmul.f32.vlgmr.msra.gmra.mxu2 %v3082_v6 }
0x1edc   :  { %v3073_v4 = vsub.f32 1.0, %v3071_v27 }
0x1ede   :  { %v3077_v3 = vsub.f32 0.0, %v3073_v4 }
0x1ee0   :  { %v3079_v57 = vsel %vm3075_vm11, %v3073_v4, %v3077_v3  ;;  %v5944_v4 = vld [vmem:[%s6255_s6 + $0xc] ss:$0 sm:$0xff] }
0x1ee1   :  { %v3081_v62 = vadd.f32 1.0, %v3079_v57 }
0x1ee3   :  { %v3083_v59 = vmul.f32 %v3081_v62, %v3005_v21 }
0x1ee5   :  { %3126 = vmatmul.f32.gmra.mxu2 %v3083_v59 }
0x1f5e   :  { %v3124_v23 = vpop.f32.mrf.mxu2 }
0x1f5f   :  { %v3125_v10 = vadd.f32 %v3124_v23, %v3105_v22 }
0x1f61   :  { %v3130_v24 = vadd.f32 %v3125_v10, %v5817_v41  ;;  %v5905_v41 = vld [vmem:[%s6253_s3 + $0x78] sm:$0xff] }
0x1f62   :  { %3221 = vmatpush.msrb.mxu0 %v5905_v41 }
0x1f63   :  { %v3133_v25 = vsel %vm56_vm0, %v3130_v24, 0.0  ;;  %v3141_v13 = vmul.f32 %v3130_v24, %v3130_v24 }
0x1f64   :  { %3134 = vadd.xlane.f32.xlu1 %v3133_v25 }
0x1f65   :  { %v3143_v14 = vsel %vm56_vm0, %v3141_v13, 0.0 }
0x1f66   :  { %3144 = vadd.xlane.f32.xlu0 %v3143_v14 }
0x1f68   :  { %v3127_v26 = vpop.f32.mrf.mxu2 }
0x1f69   :  { %v3128_v32 = vadd.f32 %v3127_v26, %v3105_v22 }
0x1f6b   :  { %v3131_v17 = vadd.f32 %v3128_v32, %v5822_v48  ;;  %v5911_v48 = vld [vmem:[%s6253_s3 + $0x70] sm:$0xff] }
0x1f6c   :  { %3222 = vmatpush.msrb.mxu0 %v5911_v48 }
0x1f6d   :  { %v3136_v2 = vsel %vm56_vm0, %v3131_v17, 0.0  ;;  %v3142_v18 = vmul.f32 %v3131_v17, %v3131_v17 }
0x1f6e   :  { %3137 = vadd.xlane.f32.xlu2 %v3136_v2  ;;  %3223 = vmatpush.msrb.mxu0 %v5918_v29 }
0x1f6f   :  { %v3146_v39 = vsel %vm56_vm0, %v3142_v18, 0.0 }
0x1f70   :  { %3147 = vadd.xlane.f32.xlu1 %v3146_v39  ;;  %3224 = vmatpush.msrb.mxu0 %v5925_v5 }
0x1f7a   :  { %3183 = vrot.lane.b32.xlu0 %v4729_v43, %s4953_s25 }
0x1fd7   :  { %v3135_v46 = vpop.xlane.xlu1 %3134 }
0x1fd8   :  { %v3139_v28 = vmul.f32 %v3135_v46, %v5204_v0 }
0x1fd9   :  { %v3145_v34 = vpop.xlane.xlu0 %3144 }
0x1fda   :  { %v3151_v15 = vmul.f32 %v3139_v28, %v3139_v28  ;;  %v3149_v31 = vmul.f32 %v3145_v34, %v5204_v0  ;;  %v3157_v11 = vsub.f32 %v3130_v24, %v3139_v28 }
0x1fdc   :  { %v3153_v35 = vsub.f32 %v3149_v31, %v3151_v15 }
0x1fde   :  { %v3155_v37 = vmax.f32 %v3153_v35, 0.0 }
0x1fe0   :  { %v3159_v38 = vadd.f32 1e-05, %v3155_v37 }
0x1fe1   :  { %v3138_v40 = vpop.xlane.xlu2 %3137 }
0x1fe2   :  { %4880 = vrsqrt.f32 %v3159_v38  ;;  %v3140_v42 = vmul.f32 %v3138_v40, %v5204_v0  ;;  %vm3167_vm13 = vweird.f32 %v3159_v38 }
0x1fe3   :  { %v3148_v19 = vpop.xlane.xlu1 %3147 }
0x1fe4   :  { %v3152_v43 = vmul.f32 %v3140_v42, %v3140_v42  ;;  %v3150_v44 = vmul.f32 %v3148_v19, %v5204_v0  ;;  %v3158_v8 = vsub.f32 %v3131_v17, %v3140_v42 }
0x1fe6   :  { %v3154_v45 = vsub.f32 %v3150_v44, %v3152_v43 }
0x1fe8   :  { %v4881_v47 = vpop.eup %4880  ;;  %v3156_v36 = vmax.f32 %v3154_v45, 0.0 }
0x1fe9   :  { %v3162_v49 = vmul.f32 %v4881_v47, %v3159_v38  ;;  %vm3168_vm12 = vweird.f32 %v4881_v47 }
0x1fea   :  { %v3160_v51 = vadd.f32 1e-05, %v3156_v36  ;;  %vm3169_vm14 = vmor %vm3167_vm13, %vm3168_vm12 }
0x1feb   :  { %v3163_v50 = vmul.f32 %v4881_v47, %v3162_v49 }
0x1fec   :  { %4882 = vrsqrt.f32 %v3160_v51  ;;  %v3184_v55 = vpop.permute.xlu0 %3183  ;;  %vm3177_vm2 = vweird.f32 %v3160_v51 }
0x1fed   :  { %v3164_v52 = vmul.f32 0.5, %v3163_v50 }
0x1fef   :  { %v3165_v53 = vsub.f32 1.5, %v3164_v52 }
0x1ff1   :  { %v3166_v56 = vmul.f32 %v4881_v47, %v3165_v53 }
0x1ff2   :  { %v4883_v58 = vpop.eup %4882 }
0x1ff3   :  { %v3170_v20 = vsel %vm3169_vm14, %v4881_v47, %v3166_v56  ;;  %v3172_v54 = vmul.f32 %v4883_v58, %v3160_v51  ;;  %vm3178_vm15 = vweird.f32 %v4883_v58 }
0x1ff4   :  { %v3181_v1 = vmul.f32 %v3170_v20, %v3157_v11  ;;  %vm3179_vm3 = vmor %vm3177_vm2, %vm3178_vm15 }
0x1ff5   :  { %v3173_v60 = vmul.f32 %v4883_v58, %v3172_v54 }
0x1ff6   :  { %v3186_v16 = vmul.f32 %v3184_v55, %v3181_v1 }
0x1ff7   :  { %v3174_v61 = vmul.f32 0.5, %v3173_v60 }
0x1ff8   :  { %v5933_v63 = vadd.f32 %v4730_v9, %v3186_v16 }
0x1ff9   :  { %v3175_v33 = vsub.f32 1.5, %v3174_v61 }
0x1ffa   :  { %4604 = vmatmul.msk.f32.vlgmr.msrb.gmra.mxu0 %vm56_vm0, %v5933_v63 }
0x1ffb   :  { %v3176_v7 = vmul.f32 %v4883_v58, %v3175_v33 }
0x1ffd   :  { %v3180_v6 = vsel %vm3179_vm3, %v4883_v58, %v3176_v7 }
0x1ffe   :  { %v3182_v30 = vmul.f32 %v3180_v6, %v3158_v8 }
0x2000   :  { %v3187_v12 = vmul.f32 %v3184_v55, %v3182_v30 }
0x2002   :  { %v5937_v27 = vadd.f32 %v4730_v9, %v3187_v12 }
0x2004   :  { %4605 = vmatmul.msk.f32.gmra.mxu0 %vm56_vm0, %v5937_v27 }
0x2077   :  { %v3226_v3 = vpop.f32.mrf.mxu0 }
0x2078   :  { %v5947_v57 = vadd.f32 %v5944_v4, %v3226_v3 }
0x207a   :  { %3233 = vrot.lane.b32.xlu2 %v5947_v57, %s4949_s1 }
0x2081   :  { %v3229_v21 = vpop.f32.mrf.mxu0 }
0x2082   :  { %v5952_v62 = vadd.f32 %v5944_v4, %v3229_v21 }
0x2084   :  { %3260 = vrot.lane.b32.xlu1 %v5952_v62, %s4949_s1 }
0x20d4   :  { %v3234_v59 = vpop.permute.xlu2 %3233 }
0x20d5   :  { %4606 = vmatpush.xpose.msk.msrb.mxu3 %vm89_vm1, %v3234_v59 }
0x20d8   :  { %4607 = vmatmul.msk.f32.vlgmr.msrb.gmra.mxu3 %vm89_vm1, %v5947_v57 }
0x20f6   :  { %v3261_v22 = vpop.permute.xlu1 %3260 }
0x20f7   :  { %4608 = vmatpush.xpose.msk.msra.mxu1 %vm89_vm1, %v3261_v22 }
0x20fa   :  { %4609 = vmatmul.msk.f32.vlgmr.msra.gmra.mxu1 %vm89_vm1, %v5952_v62 }
0x215b   :  { %v3256_v23 = vpop.f32.mrf.mxu3 }
0x215c   :  { %v3286_v10 = vmul.f32 0.35355338, %v3256_v23 }
0x215e   :  { %v3288_v24 = vsel %vm89_vm1, %v3286_v10, -inf }
0x215f   :  { %3289 = vmax.xlane.f32.xlu0 %v3288_v24 }
0x2173   :  { %3336 = vrot.lane.b32.xlu0 %v5952_v62, %s4950_s22 }
0x2177   :  { %v3283_v25 = vpop.f32.mrf.mxu1 }
0x2178   :  { %v3287_v13 = vmul.f32 0.35355338, %v3283_v25 }
0x217a   :  { %v3291_v14 = vsel %vm89_vm1, %v3287_v13, -inf }
0x217b   :  { %3292 = vmax.xlane.f32.xlu2 %v3291_v14 }
0x2193   :  { %3310 = vrot.lane.b32.xlu2 %v5947_v57, %s4950_s22 }
0x219b   :  { %3406 = vrot.lane.b32.xlu2 %v5947_v57, %s4952_s24 }
0x21a3   :  { %3434 = vrot.lane.b32.xlu2 %v5952_v62, %s4952_s24 }
0x21ab   :  { %3582 = vrot.lane.b32.xlu2 %v5947_v57, %s4955_s27 }
0x21d2   :  { %v3290_v26 = vpop.xlane.xlu0 %3289 }
0x21d3   :  { %v3294_v32 = vsub.f32 %v3286_v10, %v3290_v26 }
0x21d5   :  { %v3296_v17 = vmul.f32 1.442695, %v3294_v32 }
0x21d7   :  { %4884 = vpow2.f32 %v3296_v17 }
0x21dd   :  { %v4885_v2 = vpop.eup %4884 }
0x21de   :  { %v3300_v18 = vsel %vm89_vm1, %v4885_v2, 0.0 }
0x21df   :  { %3301 = vadd.xlane.f32.xlu1 %v3300_v18 }
0x21e5   :  { %v3337_v39 = vpop.permute.xlu0 %3336 }
0x21e6   :  { %3357 = vmatpush.msra.mxu3 %v3337_v39 }
0x21ee   :  { %v3293_v46 = vpop.xlane.xlu2 %3292 }
0x21ef   :  { %v3295_v28 = vsub.f32 %v3287_v13, %v3293_v46 }
0x21f1   :  { %v3298_v34 = vmul.f32 1.442695, %v3295_v28 }
0x21f3   :  { %4886 = vpow2.f32 %v3298_v34 }
0x21f6   :  { %v3311_v15 = vpop.permute.xlu2 %3310 }
0x21f7   :  { %3331 = vmatpush.msra.mxu0 %v3311_v15 }
0x21f8   :  { %3408 = vrot.lane.b32.xlu1 %v5947_v57, %s4951_s23 }
0x21f9   :  { %v4887_v31 = vpop.eup %4886 }
0x21fa   :  { %v3303_v35 = vsel %vm89_vm1, %v4887_v31, 0.0 }
0x21fb   :  { %3304 = vadd.xlane.f32.xlu0 %v3303_v35 }
0x21fe   :  { %v3407_v19 = vpop.permute.xlu2 %3406 }
0x2200   :  { %3584 = vrot.lane.b32.xlu1 %v5947_v57, %s4954_s26 }
0x220f   :  { %3436 = vrot.lane.b32.xlu0 %v5952_v62, %s4951_s23 }
0x2217   :  { %3364 = vrot.lane.b32.xlu0 %v5925_v5, %s4953_s25  ;;  %v3435_v5 = vpop.permute.xlu2 %3434 }
0x221f   :  { %v3583_v11 = vpop.permute.xlu2 %3582 }
0x2252   :  { %v3302_v37 = vpop.xlane.xlu1 %3301 }
0x2253   :  { %4888 = vrcp.f32 %v3302_v37 }
0x2259   :  { %v4889_v38 = vpop.eup %4888 }
0x225a   :  { %v3308_v40 = vmul.f32 %v4889_v38, %v4885_v2 }
0x225c   :  { %4610 = vmatmul.msk.f32.vlgmr.msra.gmra.mxu0 %vm89_vm1, %v3308_v40 }
0x226a   :  { %v3409_v42 = vpop.permute.xlu1 %3408 }
0x226b   :  { %4615 = vmatpush.xpose.msk.msrb.mxu0 %vm89_vm1, %v3409_v42 }
0x226e   :  { %4616 = vmatmul.msk.f32.vlgmr.msrb.gmra.mxu0 %vm89_vm1, %v3407_v19  ;;  %v3305_v43 = vpop.xlane.xlu0 %3304 }
0x226f   :  { %4890 = vrcp.f32 %v3305_v43 }
0x2272   :  { %v3585_v36 = vpop.permute.xlu1 %3584 }
0x2275   :  { %v4891_v44 = vpop.eup %4890 }
0x2276   :  { %v3309_v45 = vmul.f32 %v4891_v44, %v4887_v31 }
0x2278   :  { %4611 = vmatmul.msk.f32.vlgmr.msra.gmra.mxu3 %vm89_vm1, %v3309_v45 }
0x2281   :  { %v3437_v47 = vpop.permute.xlu0 %3436 }
0x2282   :  { %4617 = vmatpush.xpose.msk.msrb.mxu3 %vm89_vm1, %v3437_v47 }
0x2285   :  { %4618 = vmatmul.msk.f32.vlgmr.msrb.gmra.mxu3 %vm89_vm1, %v3435_v5 }
0x2289   :  { %v3365_v49 = vpop.permute.xlu0 %3364 }
0x228a   :  { %3388 = vmatpush.msrb.mxu1 %v3365_v49 }
0x228c   :  { %4624 = vmatpush.xpose.msk.msra.mxu1 %vm89_vm1, %v3585_v36 }
0x22d9   :  { %v3333_v50 = vpop.f32.mrf.mxu0 }
0x22da   :  { %4613 = vmatmul.msk.f32.vlgmr.msrb.gmra.mxu1 %vm89_vm1, %v3333_v50 }
0x22eb   :  { %v3431_v51 = vpop.f32.mrf.mxu0 }
0x22ec   :  { %v3462_v52 = vmul.f32 0.35355338, %v3431_v51 }
0x22ee   :  { %v3464_v53 = vsel %vm89_vm1, %v3462_v52, -inf }
0x22ef   :  { %3465 = vmax.xlane.f32.xlu0 %v3464_v53 }
0x22fb   :  { %v3359_v56 = vpop.f32.mrf.mxu3 }
0x22fc   :  { %4614 = vmatmul.msk.f32.gmra.mxu1 %vm89_vm1, %v3359_v56 }
0x2303   :  { %3486 = vrot.lane.b32.xlu0 %v5947_v57, %s4956_s28 }
0x2304   :  { %4625 = vmatmul.msk.f32.vlgmr.msra.gmra.mxu1 %vm89_vm1, %v3583_v11 }
0x2308   :  { %v3459_v58 = vpop.f32.mrf.mxu3 }
0x2309   :  { %v3463_v55 = vmul.f32 0.35355338, %v3459_v58 }
0x230b   :  { %3612 = vrot.lane.b32.xlu0 %v5952_v62, %s4954_s26  ;;  %v3467_v20 = vsel %vm89_vm1, %v3463_v55, -inf }
0x230c   :  { %3468 = vmax.xlane.f32.xlu1 %v3467_v20 }
0x2313   :  { %3610 = vrot.lane.b32.xlu0 %v5952_v62, %s4955_s27 }
0x231b   :  { %3760 = vrot.lane.b32.xlu0 %v5947_v57, %s4959_s9 }
0x2323   :  { %3758 = vrot.lane.b32.xlu0 %v5947_v57, %s4958_s30 }
0x2357   :  { %v6007_v33 = vpop.f32.mrf.mxu1 }
0x2362   :  { %v3466_v54 = vpop.xlane.xlu0 %3465 }
0x2363   :  { %v3470_v9 = vsub.f32 %v3462_v52, %v3466_v54 }
0x2365   :  { %v3472_v1 = vmul.f32 1.442695, %v3470_v9 }
0x2367   :  { %4892 = vpow2.f32 %v3472_v1  ;;  %v4713_v1 = vpack.i.bf16 %v5905_v41, %v5911_v48 }
0x236d   :  { %v4893_v60 = vpop.eup %4892 }
0x236e   :  { %v3476_v16 = vsel %vm89_vm1, %v4893_v60, 0.0 }
0x236f   :  { %3477 = vadd.xlane.f32.xlu2 %v3476_v16 }
0x2375   :  { %v3487_v61 = vpop.permute.xlu0 %3486 }
0x2376   :  { %3507 = vmatpush.msrb.mxu2 %v3487_v61 }
0x2379   :  { %v6010_v30 = vpop.f32.mrf.mxu1 }
0x237d   :  { %v3613_v7 = vpop.permute.xlu0 %3612 }
0x237e   :  { %4626 = vmatpush.xpose.msk.msra.mxu2 %vm89_vm1, %v3613_v7 }
0x237f   :  { %v3469_v8 = vpop.xlane.xlu1 %3468 }
0x2380   :  { %v3471_v6 = vsub.f32 %v3463_v55, %v3469_v8 }
0x2381   :  { %v3607_v59 = vpop.f32.mrf.mxu1 }
0x2382   :  { %v3474_v12 = vmul.f32 1.442695, %v3471_v6  ;;  %v3638_v22 = vmul.f32 0.35355338, %v3607_v59 }
0x2384   :  { %4894 = vpow2.f32 %v3474_v12  ;;  %v3640_v23 = vsel %vm89_vm1, %v3638_v22, -inf }
0x2385   :  { %v3611_v26 = vpop.permute.xlu0 %3610 }
0x2387   :  { %3512 = vrot.lane.b32.xlu2 %v5952_v62, %s4956_s28 }
0x238a   :  { %v4895_v3 = vpop.eup %4894 }
0x238b   :  { %v3479_v21 = vsel %vm89_vm1, %v4895_v3, 0.0 }
0x238c   :  { %3480 = vadd.xlane.f32.xlu1 %v3479_v21 }
0x238d   :  { %v3761_v46 = vpop.permute.xlu0 %3760 }
0x238f   :  { %3662 = vrot.lane.b32.xlu2 %v5947_v57, %s4957_s29 }
0x2394   :  { %3641 = vmax.xlane.f32.xlu1 %v3640_v23 }
0x2395   :  { %v3759_v43 = vpop.permute.xlu0 %3758 }
0x2397   :  { %3788 = vrot.lane.b32.xlu2 %v5952_v62, %s4959_s9 }
0x239f   :  { %3786 = vrot.lane.b32.xlu2 %v5952_v62, %s4958_s30 }
0x23e2   :  { %v3478_v10 = vpop.xlane.xlu2 %3477 }
0x23e3   :  { %4896 = vrcp.f32 %v3478_v10 }
0x23e9   :  { %v4897_v24 = vpop.eup %4896 }
0x23ea   :  { %v3484_v25 = vmul.f32 %v4897_v24, %v4893_v60  ;;  %v3513_v13 = vpop.permute.xlu2 %3512 }
0x23eb   :  { %3533 = vmatpush.msra.mxu0 %v3513_v13 }
0x23ec   :  { %4619 = vmatmul.msk.f32.vlgmr.msrb.gmra.mxu2 %vm89_vm1, %v3484_v25 }
0x23f2   :  { %v3663_v14 = vpop.permute.xlu2 %3662 }
0x23f3   :  { %3683 = vmatpush.msrb.mxu0 %v3663_v14 }
0x23f4   :  { %4627 = vmatmul.msk.f32.vlgmr.msra.gmra.mxu2 %vm89_vm1, %v3611_v26 }
0x23fa   :  { %v3789_v45 = vpop.permute.xlu2 %3788 }
0x23ff   :  { %v3481_v32 = vpop.xlane.xlu1 %3480 }
0x2400   :  { %4898 = vrcp.f32 %v3481_v32 }
0x2402   :  { %v3787_v47 = vpop.permute.xlu2 %3786 }
0x2406   :  { %v4899_v17 = vpop.eup %4898 }
0x2407   :  { %v3485_v2 = vmul.f32 %v4899_v17, %v4895_v3  ;;  %v3642_v18 = vpop.xlane.xlu1 %3641 }
0x2408   :  { %v3646_v39 = vsub.f32 %v3638_v22, %v3642_v18 }
0x2409   :  { %4620 = vmatmul.msk.f32.vlgmr.msra.gmra.mxu0 %vm89_vm1, %v3485_v2 }
0x240a   :  { %v3648_v28 = vmul.f32 1.442695, %v3646_v39  ;;  %4633 = vmatpush.xpose.msk.msra.mxu0 %vm89_vm1, %v3761_v46 }
0x240c   :  { %4900 = vpow2.f32 %v3648_v28 }
0x2412   :  { %v4901_v34 = vpop.eup %4900 }
0x2413   :  { %v3652_v15 = vsel %vm89_vm1, %v4901_v34, 0.0 }
0x2414   :  { %3653 = vadd.xlane.f32.xlu1 %v3652_v15 }
0x242d   :  { %3540 = vrot.lane.b32.xlu1 %v5918_v29, %s4953_s25 }
0x246f   :  { %v3509_v31 = vpop.f32.mrf.mxu2 }
0x2477   :  { %v3635_v35 = vpop.f32.mrf.mxu2 }
0x2478   :  { %v3639_v37 = vmul.f32 0.35355338, %v3635_v35 }
0x247a   :  { %v3643_v38 = vsel %vm89_vm1, %v3639_v37, -inf }
0x247b   :  { %3644 = vmax.xlane.f32.xlu1 %v3643_v38 }
0x2486   :  { %v3535_v29 = vpop.f32.mrf.mxu0 }
0x2487   :  { %v3654_v40 = vpop.xlane.xlu1 %3653 }
0x2488   :  { %4902 = vrcp.f32 %v3654_v40 }
0x248e   :  { %v4903_v42 = vpop.eup %4902 }
0x248f   :  { %v3660_v19 = vmul.f32 %v4903_v42, %v4901_v34 }
0x2491   :  { %4628 = vmatmul.msk.f32.vlgmr.msrb.gmra.mxu0 %vm89_vm1, %v3660_v19 }
0x2499   :  { %4634 = vmatmul.msk.f32.vlgmr.msra.gmra.mxu0 %vm89_vm1, %v3759_v43 }
0x249f   :  { %v3541_v44 = vpop.permute.xlu1 %3540 }
0x24a0   :  { %3564 = vmatpush.msra.mxu3 %v3541_v44 }
0x24a1   :  { %4622 = vmatmul.msk.f32.vlgmr.msra.gmra.mxu3 %vm89_vm1, %v3509_v31 }
0x24a2   :  { %4635 = vmatpush.xpose.msk.msrb.mxu3 %vm89_vm1, %v3789_v45 }
0x24a9   :  { %4623 = vmatmul.msk.f32.gmra.mxu3 %vm89_vm1, %v3535_v29 }
0x24b1   :  { %4636 = vmatmul.msk.f32.vlgmr.msrb.gmra.mxu3 %vm89_vm1, %v3787_v47 }
0x24ee   :  { %v3645_v5 = vpop.xlane.xlu1 %3644 }
0x24ef   :  { %v3647_v49 = vsub.f32 %v3639_v37, %v3645_v5 }
0x24f1   :  { %v3650_v36 = vmul.f32 1.442695, %v3647_v49 }
0x24f3   :  { %4904 = vpow2.f32 %v3650_v36 }
0x24f9   :  { %v4905_v50 = vpop.eup %4904 }
0x24fa   :  { %v3655_v51 = vsel %vm89_vm1, %v4905_v50, 0.0 }
0x24fb   :  { %3656 = vadd.xlane.f32.xlu1 %v3655_v51 }
0x250e   :  { %v3685_v52 = vpop.f32.mrf.mxu0 }
0x2516   :  { %v3783_v53 = vpop.f32.mrf.mxu0 }
0x2517   :  { %v3814_v56 = vmul.f32 0.35355338, %v3783_v53 }
0x2519   :  { %v3816_v11 = vsel %vm89_vm1, %v3814_v56, -inf }
0x251a   :  { %3817 = vmax.xlane.f32.xlu0 %v3816_v11 }
0x2524   :  { %v3566_v58 = vpop.f32.mrf.mxu3 }
0x252c   :  { %v3569_v55 = vpop.f32.mrf.mxu3 }
0x2534   :  { %v3811_v20 = vpop.f32.mrf.mxu3 }
0x2535   :  { %v3815_v54 = vmul.f32 0.35355338, %v3811_v20  ;;  %v4732_v20 = vld [vmem:[%s6255_s6 + $0xd] ss:$0 sm:$0xff] }
0x2537   :  { %v3819_v9 = vsel %vm89_vm1, %v3815_v54, -inf }
0x2538   :  { %3820 = vmax.xlane.f32.xlu2 %v3819_v9 }
0x2550   :  { %3688 = vrot.lane.b32.xlu2 %v5952_v62, %s4957_s29 }
0x2558   :  { %4714 = vrot.lane.b32.xlu2 %v4713_v1, %s4953_s25  ;;  %v4644_v1 = vld [vmem:[%s6256_s4 + $0x68] sm:$0xff] }
0x2560   :  { %3574 = vrot.lane.b32.xlu2 %v3566_v58, %s4949_s1 }
0x2568   :  { %3400 = vrot.lane.b32.xlu2 %v6010_v30, %s4949_s1 }
0x256e   :  { %v3657_v6 = vpop.xlane.xlu1 %3656 }
0x258d   :  { %v3818_v60 = vpop.xlane.xlu0 %3817 }
0x258e   :  { %v3822_v16 = vsub.f32 %v3814_v56, %v3818_v60 }
0x2590   :  { %v3824_v61 = vmul.f32 1.442695, %v3822_v16 }
0x2592   :  { %4906 = vpow2.f32 %v3824_v61  ;;  %v4643_v61 = vld [vmem:[%s6256_s4 + $0x60] sm:$0xff] }
0x2593   :  { %4908 = vrcp.f32 %v3657_v6 }
0x2598   :  { %v4907_v7 = vpop.eup %4906 }
0x2599   :  { %v3828_v8 = vsel %vm89_vm1, %v4907_v7, 0.0  ;;  %v4909_v48 = vpop.eup %4908 }
0x259a   :  { %3829 = vadd.xlane.f32.xlu0 %v3828_v8  ;;  %v3661_v21 = vmul.f32 %v4909_v48, %v4905_v50  ;;  %v4647_v48 = vld [vmem:[%s6255_s6 + $0xd] sm:$0x3] }
0x25ab   :  { %v3821_v12 = vpop.xlane.xlu2 %3820 }
0x25ac   :  { %v3823_v3 = vsub.f32 %v3815_v54, %v3821_v12  ;;  %v4645_v54 = vld [vmem:[%s6256_s4 + $0x70] sm:$0xff] }
0x25ae   :  { %v3826_v41 = vmul.f32 1.442695, %v3823_v3  ;;  %3838 = vrot.lane.b32.xlu0 %v5947_v57, %s4960_s10 }
0x25b0   :  { %4910 = vpow2.f32 %v3826_v41 }
0x25b3   :  { %v3689_v30 = vpop.permute.xlu2 %3688 }
0x25b4   :  { %3709 = vmatpush.msrb.mxu1 %v3689_v30  ;;  %v4012_v30 = vperm.slane %v4647_v48, 0 }
0x25b5   :  { %4629 = vmatmul.msk.f32.vlgmr.msrb.gmra.mxu1 %vm89_vm1, %v3661_v21 }
0x25b6   :  { %v4911_v59 = vpop.eup %4910  ;;  %3398 = vrot.lane.b32.xlu0 %v6007_v33, %s4949_s1 }
0x25b7   :  { %v3831_v22 = vsel %vm89_vm1, %v4911_v59, 0.0 }
0x25b8   :  { %3832 = vadd.xlane.f32.xlu1 %v3831_v22 }
0x25bb   :  { %v4715_v23 = vpop.permute.xlu2 %4714 }
0x25bc   :  { %v4717_v10 = vunpack.i.h.bf16 %v4715_v23  ;;  %v4716_v24 = vunpack.i.l.bf16 %v4715_v23 }
0x25be   :  { %3740 = vmatpush.msrb.mxu2 %v4716_v24  ;;  %3916 = vmatpush.msra.mxu3 %v4717_v10  ;;  %v4013_v10 = vperm.slane %v4647_v48, 1 }
0x25bf   :  { %4631 = vmatmul.msk.f32.vlgmr.msrb.gmra.mxu2 %vm89_vm1, %v3685_v52 }
0x25c3   :  { %v3575_v31 = vpop.permute.xlu2 %3574 }
0x25cb   :  { %v3401_v43 = vpop.permute.xlu2 %3400 }
0x25cc   :  { %v3405_v45 = vadd.f32 %v5944_v4, %v3401_v43 }
0x25d1   :  { %3864 = vrot.lane.b32.xlu1 %v5952_v62, %s4960_s10 }
0x260d   :  { %v3830_v57 = vpop.xlane.xlu0 %3829 }
0x260e   :  { %4912 = vrcp.f32 %v3830_v57 }
0x2614   :  { %v4913_v25 = vpop.eup %4912 }
0x2615   :  { %v3836_v13 = vmul.f32 %v4913_v25, %v4907_v7 }
0x2620   :  { %v3839_v14 = vpop.permute.xlu0 %3838 }
0x2621   :  { %3859 = vmatpush.msra.mxu1 %v3839_v14 }
0x2622   :  { %4637 = vmatmul.msk.f32.vlgmr.msra.gmra.mxu1 %vm89_vm1, %v3836_v13 }
0x2628   :  { %v3399_v15 = vpop.permute.xlu0 %3398 }
0x2629   :  { %v3404_v35 = vadd.f32 %v5944_v4, %v3399_v15 }
0x262b   :  { %v3833_v26 = vpop.xlane.xlu1 %3832  ;;  %v3580_v38 = vadd.f32 %v3575_v31, %v3404_v35 }
0x262c   :  { %4914 = vrcp.f32 %v3833_v26 }
0x2632   :  { %v3711_v33 = vpop.f32.mrf.mxu1  ;;  %v4915_v32 = vpop.eup %4914 }
0x2633   :  { %4632 = vmatmul.msk.f32.gmra.mxu2 %vm89_vm1, %v3711_v33  ;;  %v3837_v2 = vmul.f32 %v4915_v32, %v4911_v59 }
0x2642   :  { %v3742_v17 = vpop.f32.mrf.mxu2 }
0x2643   :  { %3750 = vrot.lane.b32.xlu0 %v3742_v17, %s4949_s1  ;;  %v3865_v18 = vpop.permute.xlu1 %3864 }
0x2644   :  { %3885 = vmatpush.msrb.mxu0 %v3865_v18 }
0x2645   :  { %4638 = vmatmul.msk.f32.vlgmr.msrb.gmra.mxu0 %vm89_vm1, %v3837_v2 }
0x264b   :  { %3576 = vrot.lane.b32.xlu0 %v3569_v55, %s4949_s1 }
0x269f   :  { %v3861_v62 = vpop.f32.mrf.mxu1 }
0x26a0   :  { %4640 = vmatmul.msk.f32.vlgmr.msra.gmra.mxu3 %vm89_vm1, %v3861_v62 }
0x26b5   :  { %v3751_v37 = vpop.permute.xlu0 %3750 }
0x26b6   :  { %v3745_v28 = vpop.f32.mrf.mxu2  ;;  %v3756_v40 = vadd.f32 %v3751_v37, %v3580_v38 }
0x26bd   :  { %v3577_v44 = vpop.permute.xlu0 %3576 }
0x26be   :  { %v3581_v29 = vadd.f32 %v3577_v44, %v3405_v45  ;;  %v4669_v45 = vld [vmem:[%s6257_s5 + $0x1f8] sm:$0xff] }
0x26bf   :  { %4152 = vmatpush.msra.mxu2 %v4669_v45 }
0x26c2   :  { %v3887_v39 = vpop.f32.mrf.mxu0 }
0x26c3   :  { %4641 = vmatmul.msk.f32.gmra.mxu3 %vm89_vm1, %v3887_v39 }
0x2723   :  { %v3918_v46 = vpop.f32.mrf.mxu3 }
0x2724   :  { %3926 = vrot.lane.b32.xlu1 %v3918_v46, %s4949_s1 }
0x272c   :  { %3752 = vrot.lane.b32.xlu1 %v3745_v28, %s4949_s1 }
0x2746   :  { %v3921_v34 = vpop.f32.mrf.mxu3 }
0x2747   :  { %3928 = vrot.lane.b32.xlu2 %v3921_v34, %s4949_s1 }
0x2796   :  { %v3927_v42 = vpop.permute.xlu1 %3926 }
0x2797   :  { %v3932_v19 = vadd.f32 %v3927_v42, %v3756_v40 }
0x2799   :  { %3936 = vrot.lane.b32.xlu0 %v3932_v19, %s4953_s25 }
0x279e   :  { %v3753_v47 = vpop.permute.xlu1 %3752 }
0x279f   :  { %v3757_v5 = vadd.f32 %v3753_v47, %v3581_v29 }
0x27a1   :  { %v3929_v49 = vpop.permute.xlu2 %3928 }
0x27a2   :  { %v3933_v36 = vadd.f32 %v3929_v49, %v3757_v5  ;;  %v4668_v5 = vld [vmem:[%s6257_s5 + $0x1f0] sm:$0xff] }
0x27a3   :  { %4153 = vmatpush.msra.mxu2 %v4668_v5 }
0x27a4   :  { %3938 = vrot.lane.b32.xlu1 %v3933_v36, %s4953_s25  ;;  %v4667_v36 = vld [vmem:[%s6257_s5 + $0x1e8] sm:$0xff] }
0x27a5   :  { %4154 = vmatpush.msra.mxu2 %v4667_v36 }
0x280b   :  { %v3937_v50 = vpop.permute.xlu0 %3936 }
0x280c   :  { %v3942_v51 = vadd.f32 %v3937_v50, %v5933_v63 }
0x280e   :  { %v3945_v52 = vsel %vm56_vm0, %v3942_v51, 0.0  ;;  %v3953_v53 = vmul.f32 %v3942_v51, %v3942_v51 }
0x280f   :  { %3946 = vadd.xlane.f32.xlu2 %v3945_v52 }
0x2810   :  { %v3955_v56 = vsel %vm56_vm0, %v3953_v53, 0.0  ;;  %v4665_v53 = vld [vmem:[%s6257_s5 + $0x1d8] sm:$0xff] }
0x2811   :  { %3956 = vadd.xlane.f32.xlu0 %v3955_v56 }
0x2816   :  { %v3939_v11 = vpop.permute.xlu1 %3938 }
0x2817   :  { %v6075_v4 = vadd.f32 %v3939_v11, %v5937_v27  ;;  %v4646_v27 = vld [vmem:[%s6256_s4 + $0x78] sm:$0xff]  ;;  %v4664_v11 = vld [vmem:[%s6257_s5 + $0x1d0] sm:$0xff] }
0x2818   :  { %4038 = vmatpush.msrb.mxu1 %v4646_v27  ;;  %v4661_v27 = vld [vmem:[%s6257_s5 + $0x1b8] sm:$0xff] }
0x2819   :  { %v3948_v58 = vsel %vm56_vm0, %v6075_v4, 0.0  ;;  %v3954_v55 = vmul.f32 %v6075_v4, %v6075_v4 }
0x281a   :  { %3949 = vadd.xlane.f32.xlu1 %v3948_v58  ;;  %4039 = vmatpush.msrb.mxu1 %v4645_v54  ;;  %v4663_v58 = vld [vmem:[%s6257_s5 + $0x1c8] sm:$0xff] }
0x281b   :  { %v3958_v63 = vsel %vm56_vm0, %v3954_v55, 0.0 }
0x281c   :  { %3959 = vadd.xlane.f32.xlu2 %v3958_v63  ;;  %4040 = vmatpush.msrb.mxu1 %v4644_v1  ;;  %v4662_v63 = vld [vmem:[%s6257_s5 + $0x1c0] sm:$0xff]  ;;  %v4660_v1 = vld [vmem:[%s6257_s5 + $0x1b0] sm:$0xff] }
0x281e   :  { %4041 = vmatpush.msrb.mxu1 %v4643_v61 }
0x2825   :  { %4000 = vrot.lane.b32.xlu0 %v4732_v20, %s4949_s1 }
0x2833   :  { %4014 = vrot.lane.b32.xlu1 %v4012_v30, %s4950_s22 }
0x2834   :  { %4016 = vrot.lane.b32.xlu2 %v4013_v10, %s4950_s22  ;;  %v4654_v10 = vld [vmem:[%s6257_s5 + $0x180] sm:$0xff] }
0x2882   :  { %v3947_v9 = vpop.xlane.xlu2 %3946 }
0x2883   :  { %v3951_v60 = vmul.f32 %v3947_v9, %v5204_v0 }
0x2884   :  { %v3957_v16 = vpop.xlane.xlu0 %3956 }
0x2885   :  { %v3963_v7 = vmul.f32 %v3951_v60, %v3951_v60  ;;  %v3961_v8 = vmul.f32 %v3957_v16, %v5204_v0  ;;  %v3969_v2 = vsub.f32 %v3942_v51, %v3951_v60  ;;  %v4666_v51 = vld [vmem:[%s6257_s5 + $0x1e0] sm:$0xff]  ;;  %v4659_v16 = vld [vmem:[%s6257_s5 + $0x1a8] sm:$0xff] }
0x2886   :  { %4155 = vmatpush.msra.mxu2 %v4666_v51 }
0x2887   :  { %v3965_v6 = vsub.f32 %v3961_v8, %v3963_v7  ;;  %v4658_v7 = vld [vmem:[%s6257_s5 + $0x1a0] sm:$0xff] }
0x2888   :  { %4156 = vmatpush.msra.mxu2 %v4665_v53 }
0x2889   :  { %v3967_v12 = vmax.f32 %v3965_v6, 0.0 }
0x288a   :  { %4157 = vmatpush.msra.mxu2 %v4664_v11 }
0x288b   :  { %v3971_v3 = vadd.f32 1e-05, %v3967_v12 }
0x288c   :  { %4158 = vmatpush.msra.mxu2 %v4663_v58 }
0x288d   :  { %4916 = vrsqrt.f32 %v3971_v3  ;;  %v3950_v41 = vpop.xlane.xlu1 %3949  ;;  %vm3979_vm4 = vweird.f32 %v3971_v3 }
0x288e   :  { %v3952_v21 = vmul.f32 %v3950_v41, %v5204_v0  ;;  %4159 = vmatpush.msra.mxu2 %v4662_v63 }
0x288f   :  { %v3960_v59 = vpop.xlane.xlu2 %3959 }
0x2890   :  { %v3964_v22 = vmul.f32 %v3952_v21, %v3952_v21  ;;  %v3962_v23 = vmul.f32 %v3960_v59, %v5204_v0  ;;  %v3970_v40 = vsub.f32 %v6075_v4, %v3952_v21  ;;  %4160 = vmatpush.msra.mxu2 %v4661_v27  ;;  %v4656_v21 = vld [vmem:[%s6257_s5 + $0x190] sm:$0xff] }
0x2892   :  { %v3966_v24 = vsub.f32 %v3962_v23, %v3964_v22  ;;  %4161 = vmatpush.msra.mxu2 %v4660_v1  ;;  %v4655_v23 = vld [vmem:[%s6257_s5 + $0x188] sm:$0xff] }
0x2893   :  { %v4917_v57 = vpop.eup %4916 }
0x2894   :  { %v3974_v25 = vmul.f32 %v4917_v57, %v3971_v3  ;;  %v3968_v13 = vmax.f32 %v3966_v24, 0.0  ;;  %vm3980_vm1 = vweird.f32 %v4917_v57  ;;  %4162 = vmatpush.msra.mxu2 %v4659_v16  ;;  %v4657_v3 = vld [vmem:[%s6257_s5 + $0x198] sm:$0xff] }
0x2895   :  { %vm3981_vm5 = vmor %vm3979_vm4, %vm3980_vm1 }
0x2896   :  { %v3975_v14 = vmul.f32 %v4917_v57, %v3974_v25  ;;  %v3972_v33 = vadd.f32 1e-05, %v3968_v13  ;;  %4163 = vmatpush.msra.mxu2 %v4658_v7 }
0x2897   :  { %v4001_v28 = vpop.permute.xlu0 %4000  ;;  %v4017_v29 = vpop.permute.xlu2 %4016 }
0x2898   :  { %v3976_v26 = vmul.f32 0.5, %v3975_v14  ;;  %4918 = vrsqrt.f32 %v3972_v33  ;;  %vm3989_vm7 = vweird.f32 %v3972_v33  ;;  %4164 = vmatpush.msra.mxu2 %v4657_v3 }
0x289a   :  { %v3977_v32 = vsub.f32 1.5, %v3976_v26  ;;  %4165 = vmatpush.msra.mxu2 %v4656_v21 }
0x289c   :  { %v3978_v17 = vmul.f32 %v4917_v57, %v3977_v32  ;;  %4166 = vmatpush.msra.mxu2 %v4655_v23 }
0x289e   :  { %v4919_v18 = vpop.eup %4918  ;;  %v3982_v62 = vsel %vm3981_vm5, %v4917_v57, %v3978_v17  ;;  %4167 = vmatpush.msra.mxu2 %v4654_v10 }
0x289f   :  { %v3984_v39 = vmul.f32 %v4919_v18, %v3972_v33  ;;  %v3993_v46 = vmul.f32 %v3982_v62, %v3969_v2  ;;  %vm3990_vm6 = vweird.f32 %v4919_v18 }
0x28a0   :  { %vm3991_vm8 = vmor %vm3989_vm7, %vm3990_vm6 }
0x28a1   :  { %v3985_v34 = vmul.f32 %v4919_v18, %v3984_v39  ;;  %v3998_v15 = vmul.f32 %v4732_v20, %v3993_v46 }
0x28a3   :  { %v3986_v31 = vmul.f32 0.5, %v3985_v34  ;;  %v6107_v35 = vadd.f32 %v4001_v28, %v3998_v15 }
0x28a5   :  { %v3987_v37 = vsub.f32 1.5, %v3986_v31  ;;  %4648 = vmatmul.msk.f32.vlgmr.msrb.gmra.mxu1 %vm56_vm0, %v6107_v35  ;;  %v4015_v47 = vpop.permute.xlu1 %4014 }
0x28a6   :  { %v4018_v49 = vsel %vm879_vm9, %v4015_v47, %v4017_v29 }
0x28a7   :  { %v3988_v38 = vmul.f32 %v4919_v18, %v3987_v37 }
0x28a9   :  { %v3992_v42 = vsel %vm3991_vm8, %v4919_v18, %v3988_v38 }
0x28aa   :  { %v3994_v19 = vmul.f32 %v3992_v42, %v3970_v40  ;;  %v4733_v40 = vld [vmem:[%s6255_s6 + $0xe] ss:$0 sm:$0xff] }
0x28ab   :  { %4149 = vrot.lane.b32.xlu0 %v4733_v40, %s4950_s22 }
0x28ac   :  { %v3999_v43 = vmul.f32 %v4732_v20, %v3994_v19 }
0x28ae   :  { %v6112_v44 = vadd.f32 %v4001_v28, %v3999_v43 }
0x28b0   :  { %4649 = vmatmul.msk.f32.gmra.mxu1 %vm56_vm0, %v6112_v44 }
0x2922   :  { %v4043_v50 = vpop.f32.mrf.mxu1 }
0x2923   :  { %v6129_v52 = vadd.f32 %v4043_v50, %v4018_v49 }
0x2925   :  { %v6135_v56 = vmul.f32 0.70710677, %v6129_v52  ;;  %v4049_v16 = vmul.f32 0.5, %v6129_v52 }
0x2927   :  { %v4053_v4 = vand.u32 2147483647, %v6135_v56  ;;  %vm4119_vm3 = vcmp.ge.f32.partialorder %v6135_v56, 0.0 }
0x2929   :  { %v4055_v55 = vmul.f32 0.3275911, %v4053_v4  ;;  %v4107_v14 = vsub.f32 0.0, %v4053_v4 }
0x292b   :  { %v4057_v20 = vadd.f32 1.0, %v4055_v55  ;;  %v4109_v2 = vmul.f32 %v4107_v14, %v4053_v4 }
0x292d   :  { %4920 = vrcp.f32 %v4057_v20  ;;  %v4046_v54 = vpop.f32.mrf.mxu1  ;;  %v4070_v30 = vand.u32 2147483648, %v4057_v20  ;;  %v4068_v22 = vand.u32 2147483647, %v4057_v20  ;;  %vm4064_vm10 = vweird.f32 %v4057_v20 }
0x292e   :  { %v6150_v9 = vadd.f32 %v4046_v54, %v4018_v49  ;;  %v4111_v15 = vmul.f32 1.442695, %v4109_v2 }
0x292f   :  { %v4071_v57 = vor.u32 1.1754944e-38, %v4070_v30  ;;  %vm4069_vm12 = vcmp.eq.f32.partialorder %v4068_v22, 8.507059e+37  ;;  %v4150_v22 = vpop.permute.xlu0 %4149 }
0x2930   :  { %v6156_v60 = vmul.f32 0.70710677, %v6150_v9  ;;  %v4050_v30 = vmul.f32 0.5, %v6150_v9 }
0x2932   :  { %v4054_v61 = vand.u32 2147483647, %v6156_v60  ;;  %vm4120_vm1 = vcmp.ge.f32.partialorder %v6156_v60, 0.0 }
0x2933   :  { %v4921_v8 = vpop.eup %4920 }
0x2934   :  { %v4060_v6 = vmul.f32 %v4921_v8, %v4057_v20  ;;  %v4056_v12 = vmul.f32 0.3275911, %v4054_v61  ;;  %vm4065_vm9 = vweird.f32 %v4921_v8  ;;  %v4108_v43 = vsub.f32 0.0, %v4054_v61 }
0x2935   :  { %vm4066_vm11 = vmor %vm4064_vm10, %vm4065_vm9 }
0x2936   :  { %v4061_v41 = vsub.f32 1.0, %v4060_v6  ;;  %v4058_v48 = vadd.f32 1.0, %v4056_v12  ;;  %v4110_v36 = vmul.f32 %v4108_v43, %v4054_v61 }
0x2938   :  { %v4062_v59 = vmul.f32 %v4921_v8, %v4061_v41  ;;  %4922 = vrcp.f32 %v4058_v48  ;;  %v4085_v39 = vand.u32 2147483648, %v4058_v48  ;;  %v4083_v28 = vand.u32 2147483647, %v4058_v48 }
0x2939   :  { %vm4079_vm14 = vweird.f32 %v4058_v48  ;;  %4924 = vpow2.f32 %v4111_v15  ;;  %v4113_v58 = vmul.f32 1.442695, %v4110_v36 }
0x293a   :  { %v4063_v24 = vadd.f32 %v4921_v8, %v4062_v59  ;;  %v4086_v38 = vor.u32 1.1754944e-38, %v4085_v39  ;;  %vm4084_vm2 = vcmp.eq.f32.partialorder %v4083_v28, 8.507059e+37 }
0x293b   :  { %4926 = vpow2.f32 %v4113_v58 }
0x293c   :  { %v4067_v25 = vsel %vm4066_vm11, %v4921_v8, %v4063_v24 }
0x293d   :  { %v4072_v13 = vsel %vm4069_vm12, %v4071_v57, %v4067_v25 }
0x293e   :  { %v4923_v33 = vpop.eup %4922  ;;  %v4089_v26 = vmul.f32 1.0614054, %v4072_v13 }
0x293f   :  { %v4075_v32 = vmul.f32 %v4923_v33, %v4058_v48  ;;  %vm4080_vm13 = vweird.f32 %v4923_v33  ;;  %v4925_v53 = vpop.eup %4924 }
0x2940   :  { %v4650_v17 = vadd.f32 -1.4531521, %v4089_v26  ;;  %vm4081_vm15 = vmor %vm4079_vm14, %vm4080_vm13  ;;  %v4241_v26 = vld [vmem:[%s6259_s7 + $0x18] sm:$0xff] }
0x2941   :  { %v4076_v18 = vsub.f32 1.0, %v4075_v32  ;;  %v4927_v12 = vpop.eup %4926  ;;  %4262 = vmatpush.msra.mxu0 %v4241_v26 }
0x2942   :  { %v4093_v62 = vmul.f32 %v4650_v17, %v4072_v13  ;;  %v4239_v17 = vld [vmem:[%s6259_s7 + $0x8] sm:$0xff] }
0x2943   :  { %v4077_v46 = vmul.f32 %v4923_v33, %v4076_v18 }
0x2944   :  { %v4095_v34 = vadd.f32 1.4214138, %v4093_v62  ;;  %v4238_v62 = vld [vmem:[%s6259_s7] sm:$0xff] }
0x2945   :  { %v4078_v31 = vadd.f32 %v4923_v33, %v4077_v46 }
0x2946   :  { %v4097_v37 = vmul.f32 %v4095_v34, %v4072_v13 }
0x2947   :  { %v4082_v42 = vsel %vm4081_vm15, %v4923_v33, %v4078_v31 }
0x2948   :  { %v4652_v19 = vadd.f32 -0.28449672, %v4097_v37  ;;  %v4087_v45 = vsel %vm4084_vm2, %v4086_v38, %v4082_v42 }
0x2949   :  { %v4090_v29 = vmul.f32 1.0614054, %v4087_v45 }
0x294a   :  { %v4101_v47 = vmul.f32 %v4652_v19, %v4072_v13 }
0x294b   :  { %v4651_v5 = vadd.f32 -1.4531521, %v4090_v29 }
0x294c   :  { %v4103_v49 = vadd.f32 0.2548296, %v4101_v47 }
0x294d   :  { %v4094_v50 = vmul.f32 %v4651_v5, %v4087_v45 }
0x294e   :  { %v4105_v51 = vmul.f32 %v4103_v49, %v4072_v13 }
0x294f   :  { %v4096_v11 = vadd.f32 1.4214138, %v4094_v50 }
0x2950   :  { %v4115_v4 = vmul.f32 %v4925_v53, %v4105_v51 }
0x2951   :  { %v4098_v55 = vmul.f32 %v4096_v11, %v4087_v45 }
0x2952   :  { %v4117_v63 = vsub.f32 1.0, %v4115_v4 }
0x2953   :  { %v4653_v20 = vadd.f32 -0.28449672, %v4098_v55 }
0x2954   :  { %v4121_v27 = vsub.f32 0.0, %v4117_v63 }
0x2955   :  { %v4102_v54 = vmul.f32 %v4653_v20, %v4087_v45 }
0x2956   :  { %v4123_v1 = vsel %vm4119_vm3, %v4117_v63, %v4121_v27 }
0x2957   :  { %v4125_v7 = vadd.f32 1.0, %v4123_v1  ;;  %v4104_v8 = vadd.f32 0.2548296, %v4102_v54 }
0x2959   :  { %v4127_v61 = vmul.f32 %v4125_v7, %v4049_v16  ;;  %v4106_v6 = vmul.f32 %v4104_v8, %v4087_v45 }
0x295b   :  { %4168 = vmatmul.f32.vlgmr.msra.gmra.mxu2 %v4127_v61  ;;  %v4116_v3 = vmul.f32 %v4927_v12, %v4106_v6 }
0x295d   :  { %v4118_v41 = vsub.f32 1.0, %v4116_v3  ;;  %v4735_v3 = vld [vmem:[%s6259_s7 + $0x20] ss:$0 sm:$0xff] }
0x295f   :  { %v4122_v48 = vsub.f32 0.0, %v4118_v41 }
0x2961   :  { %v4124_v21 = vsel %vm4120_vm1, %v4118_v41, %v4122_v48  ;;  %vm4357_vm1 = vcmask 130048  }
0x2962   :  { %v4126_v59 = vadd.f32 1.0, %v4124_v21 }
0x2964   :  { %v4128_v56 = vmul.f32 %v4126_v59, %v4050_v30 }
0x2966   :  { %4171 = vmatmul.f32.gmra.mxu2 %v4128_v56 }
0x29de   :  { %v4169_v23 = vpop.f32.mrf.mxu2 }
0x29df   :  { %v4170_v52 = vadd.f32 %v4169_v23, %v4150_v22 }
0x29e1   :  { %v4175_v10 = vadd.f32 %v4170_v52, %v6107_v35 }
0x29e3   :  { %v4178_v24 = vsel %vm56_vm0, %v4175_v10, 0.0  ;;  %v4186_v57 = vmul.f32 %v4175_v10, %v4175_v10 }
0x29e4   :  { %4179 = vadd.xlane.f32.xlu1 %v4178_v24 }
0x29e5   :  { %v4188_v25 = vsel %vm56_vm0, %v4186_v57, 0.0 }
0x29e6   :  { %4189 = vadd.xlane.f32.xlu0 %v4188_v25 }
0x29e9   :  { %v4172_v13 = vpop.f32.mrf.mxu2 }
0x29ea   :  { %v4173_v60 = vadd.f32 %v4172_v13, %v4150_v22 }
0x29ec   :  { %v6189_v14 = vadd.f32 %v4173_v60, %v6112_v44  ;;  %v4240_v44 = vld [vmem:[%s6259_s7 + $0x10] sm:$0xff] }
0x29ed   :  { %4263 = vmatpush.msra.mxu0 %v4240_v44 }
0x29ee   :  { %v4181_v9 = vsel %vm56_vm0, %v6189_v14, 0.0  ;;  %v4187_v33 = vmul.f32 %v6189_v14, %v6189_v14 }
0x29ef   :  { %4182 = vadd.xlane.f32.xlu2 %v4181_v9  ;;  %4264 = vmatpush.msra.mxu0 %v4239_v17 }
0x29f0   :  { %v4191_v35 = vsel %vm56_vm0, %v4187_v33, 0.0 }
0x29f1   :  { %4192 = vadd.xlane.f32.xlu1 %v4191_v35  ;;  %4265 = vmatpush.msra.mxu0 %v4238_v62 }
0x2a07   :  { %4228 = vrot.lane.b32.xlu2 %v4733_v40, %s4953_s25 }
0x2a57   :  { %v4180_v32 = vpop.xlane.xlu1 %4179 }
0x2a58   :  { %v4184_v2 = vmul.f32 %v4180_v32, %v5204_v0 }
0x2a59   :  { %v4190_v18 = vpop.xlane.xlu0 %4189 }
0x2a5a   :  { %v4196_v39 = vmul.f32 %v4184_v2, %v4184_v2  ;;  %v4194_v46 = vmul.f32 %v4190_v18, %v5204_v0  ;;  %v4202_v51 = vsub.f32 %v4175_v10, %v4184_v2 }
0x2a5c   :  { %v4198_v28 = vsub.f32 %v4194_v46, %v4196_v39 }
0x2a5e   :  { %v4200_v34 = vmax.f32 %v4198_v28, 0.0 }
0x2a60   :  { %v4204_v15 = vadd.f32 1e-05, %v4200_v34 }
0x2a62   :  { %4928 = vrsqrt.f32 %v4204_v15  ;;  %v4183_v31 = vpop.xlane.xlu2 %4182  ;;  %vm4212_vm5 = vweird.f32 %v4204_v15 }
0x2a63   :  { %v4185_v37 = vmul.f32 %v4183_v31, %v5204_v0 }
0x2a64   :  { %v4193_v38 = vpop.xlane.xlu1 %4192 }
0x2a65   :  { %v4197_v40 = vmul.f32 %v4185_v37, %v4185_v37  ;;  %v4195_v42 = vmul.f32 %v4193_v38, %v5204_v0  ;;  %v4734_v0 = vld [vmem:[%s6255_s6 + $0xf] ss:$0 sm:$0xff]  ;;  %v4203_v7 = vsub.f32 %v6189_v14, %v4185_v37 }
0x2a67   :  { %v4199_v19 = vsub.f32 %v4195_v42, %v4197_v40 }
0x2a68   :  { %v4929_v43 = vpop.eup %4928 }
0x2a69   :  { %v4207_v45 = vmul.f32 %v4929_v43, %v4204_v15  ;;  %v4201_v29 = vmax.f32 %v4199_v19, 0.0  ;;  %vm4213_vm4 = vweird.f32 %v4929_v43 }
0x2a6a   :  { %vm4214_vm6 = vmor %vm4212_vm5, %vm4213_vm4  ;;  %v4229_v11 = vpop.permute.xlu2 %4228 }
0x2a6b   :  { %v4208_v47 = vmul.f32 %v4929_v43, %v4207_v45  ;;  %v4205_v5 = vadd.f32 1e-05, %v4201_v29 }
0x2a6d   :  { %4930 = vrsqrt.f32 %v4205_v5  ;;  %v4209_v49 = vmul.f32 0.5, %v4208_v47  ;;  %vm4222_vm8 = vweird.f32 %v4205_v5 }
0x2a6f   :  { %v4210_v36 = vsub.f32 1.5, %v4209_v49 }
0x2a71   :  { %v4211_v50 = vmul.f32 %v4929_v43, %v4210_v36 }
0x2a73   :  { %v4931_v53 = vpop.eup %4930  ;;  %v4215_v4 = vsel %vm4214_vm6, %v4929_v43, %v4211_v50 }
0x2a74   :  { %v4217_v58 = vmul.f32 %v4931_v53, %v4205_v5  ;;  %v4226_v55 = vmul.f32 %v4215_v4, %v4202_v51  ;;  %vm4223_vm7 = vweird.f32 %v4931_v53 }
0x2a75   :  { %vm4224_vm9 = vmor %vm4222_vm8, %vm4223_vm7 }
0x2a76   :  { %v4218_v63 = vmul.f32 %v4931_v53, %v4217_v58  ;;  %v4231_v20 = vmul.f32 %v4229_v11, %v4226_v55 }
0x2a78   :  { %v4219_v27 = vmul.f32 0.5, %v4218_v63  ;;  %v4236_v54 = vadd.f32 %v4734_v0, %v4231_v20 }
0x2a7a   :  { %v4220_v1 = vsub.f32 1.5, %v4219_v27  ;;  %4672 = vmatmul.msk.f32.vlgmr.msra.gmra.mxu0 %vm56_vm0, %v4236_v54 }
0x2a7c   :  { %v4221_v16 = vmul.f32 %v4931_v53, %v4220_v1 }
0x2a7e   :  { %v4225_v8 = vsel %vm4224_vm9, %v4931_v53, %v4221_v16  ;;  %vm4406_vm9 = vcmask 7168  }
0x2a7f   :  { %v4227_v61 = vmul.f32 %v4225_v8, %v4203_v7 }
0x2a81   :  { %v4232_v6 = vmul.f32 %v4229_v11, %v4227_v61 }
0x2a83   :  { %v4237_v12 = vadd.f32 %v4734_v0, %v4232_v6 }
0x2a85   :  { %4673 = vmatmul.msk.f32.gmra.mxu0 %vm56_vm0, %v4237_v12  ;;  %v4736_v12 = vld [vmem:[%s6259_s7 + $0x21] ss:$0 sm:$0xff] }
0x2af7   :  { %v4267_v41 = vpop.f32.mrf.mxu0 }
0x2af8   :  { %v6222_v48 = vadd.f32 %v4735_v3, %v4267_v41 }
0x2afa   :  { %v6225_v21 = vmul.f32 0.70710677, %v6222_v48  ;;  %v4273_v8 = vmul.f32 0.5, %v6222_v48 }
0x2afc   :  { %v4277_v30 = vand.u32 2147483647, %v6225_v21  ;;  %vm4343_vm3 = vcmp.ge.f32.partialorder %v6225_v21, 0.0 }
0x2afe   :  { %v4279_v59 = vmul.f32 0.3275911, %v4277_v30  ;;  %v4331_v17 = vsub.f32 0.0, %v4277_v30 }
0x2b00   :  { %v4281_v56 = vadd.f32 1.0, %v4279_v59  ;;  %v4333_v46 = vmul.f32 %v4331_v17, %v4277_v30 }
0x2b02   :  { %4932 = vrcp.f32 %v4281_v56  ;;  %v4270_v22 = vpop.f32.mrf.mxu0  ;;  %v4294_v14 = vand.u32 2147483648, %v4281_v56  ;;  %v4292_v33 = vand.u32 2147483647, %v4281_v56  ;;  %vm4288_vm10 = vweird.f32 %v4281_v56 }
0x2b03   :  { %v6228_v23 = vadd.f32 %v4735_v3, %v4270_v22  ;;  %v4335_v40 = vmul.f32 1.442695, %v4333_v46 }
0x2b04   :  { %v4295_v26 = vor.u32 1.1754944e-38, %v4294_v14  ;;  %vm4293_vm12 = vcmp.eq.f32.partialorder %v4292_v33, 8.507059e+37  ;;  %v4737_v14 = vld [vmem:[%s6259_s7 + $0x22] ss:$0 sm:$0xff] }
0x2b05   :  { %v6231_v52 = vmul.f32 0.70710677, %v6228_v23  ;;  %v4274_v48 = vmul.f32 0.5, %v6228_v23 }
0x2b07   :  { %v4278_v10 = vand.u32 2147483647, %v6231_v52  ;;  %vm4344_vm4 = vcmp.ge.f32.partialorder %v6231_v52, 0.0 }
0x2b08   :  { %v4933_v24 = vpop.eup %4932 }
0x2b09   :  { %v4284_v57 = vmul.f32 %v4933_v24, %v4281_v56  ;;  %v4280_v25 = vmul.f32 0.3275911, %v4278_v10  ;;  %vm4289_vm0 = vweird.f32 %v4933_v24  ;;  %v4332_v5 = vsub.f32 0.0, %v4278_v10 }
0x2b0a   :  { %vm4290_vm11 = vmor %vm4288_vm10, %vm4289_vm0 }
0x2b0b   :  { %v4285_v13 = vsub.f32 1.0, %v4284_v57  ;;  %v4282_v60 = vadd.f32 1.0, %v4280_v25  ;;  %v4334_v53 = vmul.f32 %v4332_v5, %v4278_v10 }
0x2b0d   :  { %v4286_v9 = vmul.f32 %v4933_v24, %v4285_v13  ;;  %4934 = vrcp.f32 %v4282_v60  ;;  %v4309_v15 = vand.u32 2147483648, %v4282_v60  ;;  %v4307_v37 = vand.u32 2147483647, %v4282_v60 }
0x2b0e   :  { %vm4303_vm14 = vweird.f32 %v4282_v60  ;;  %4936 = vpow2.f32 %v4335_v40  ;;  %v4337_v63 = vmul.f32 1.442695, %v4334_v53 }
0x2b0f   :  { %v4287_v35 = vadd.f32 %v4933_v24, %v4286_v9  ;;  %v4310_v43 = vor.u32 1.1754944e-38, %v4309_v15  ;;  %vm4308_vm2 = vcmp.eq.f32.partialorder %v4307_v37, 8.507059e+37 }
0x2b10   :  { %4938 = vpow2.f32 %v4337_v63 }
0x2b11   :  { %v4291_v44 = vsel %vm4290_vm11, %v4933_v24, %v4287_v35 }
0x2b12   :  { %v4296_v32 = vsel %vm4293_vm12, %v4295_v26, %v4291_v44 }
0x2b13   :  { %v4935_v2 = vpop.eup %4934  ;;  %v4313_v18 = vmul.f32 1.0614054, %v4296_v32 }
0x2b14   :  { %v4299_v62 = vmul.f32 %v4935_v2, %v4282_v60  ;;  %vm4304_vm13 = vweird.f32 %v4935_v2  ;;  %v4937_v58 = vpop.eup %4936 }
0x2b15   :  { %v4674_v39 = vadd.f32 -1.4531521, %v4313_v18  ;;  %vm4305_vm15 = vmor %vm4303_vm14, %vm4304_vm13 }
0x2b16   :  { %v4300_v28 = vsub.f32 1.0, %v4299_v62  ;;  %v4939_v30 = vpop.eup %4938 }
0x2b17   :  { %v4317_v34 = vmul.f32 %v4674_v39, %v4296_v32 }
0x2b18   :  { %v4301_v31 = vmul.f32 %v4935_v2, %v4300_v28 }
0x2b19   :  { %v4319_v38 = vadd.f32 1.4214138, %v4317_v34 }
0x2b1a   :  { %v4302_v42 = vadd.f32 %v4935_v2, %v4301_v31 }
0x2b1b   :  { %v4321_v19 = vmul.f32 %v4319_v38, %v4296_v32 }
0x2b1c   :  { %v4306_v45 = vsel %vm4305_vm15, %v4935_v2, %v4302_v42 }
0x2b1d   :  { %v4676_v29 = vadd.f32 -0.28449672, %v4321_v19  ;;  %v4311_v47 = vsel %vm4308_vm2, %v4310_v43, %v4306_v45 }
0x2b1e   :  { %v4314_v49 = vmul.f32 1.0614054, %v4311_v47 }
0x2b1f   :  { %v4325_v36 = vmul.f32 %v4676_v29, %v4296_v32 }
0x2b20   :  { %v4675_v50 = vadd.f32 -1.4531521, %v4314_v49 }
0x2b21   :  { %v4327_v51 = vadd.f32 0.2548296, %v4325_v36 }
0x2b22   :  { %v4318_v11 = vmul.f32 %v4675_v50, %v4311_v47 }
0x2b23   :  { %v4329_v4 = vmul.f32 %v4327_v51, %v4296_v32 }
0x2b24   :  { %v4320_v0 = vadd.f32 1.4214138, %v4318_v11 }
0x2b25   :  { %v4339_v55 = vmul.f32 %v4937_v58, %v4329_v4 }
0x2b26   :  { %v4322_v20 = vmul.f32 %v4320_v0, %v4311_v47 }
0x2b27   :  { %v4341_v27 = vsub.f32 1.0, %v4339_v55 }
0x2b28   :  { %v4677_v54 = vadd.f32 -0.28449672, %v4322_v20 }
0x2b29   :  { %v4345_v1 = vsub.f32 0.0, %v4341_v27 }
0x2b2a   :  { %v4326_v16 = vmul.f32 %v4677_v54, %v4311_v47 }
0x2b2b   :  { %v4347_v7 = vsel %vm4343_vm3, %v4341_v27, %v4345_v1 }
0x2b2c   :  { %v4349_v61 = vadd.f32 1.0, %v4347_v7  ;;  %v4328_v6 = vadd.f32 0.2548296, %v4326_v16 }
0x2b2e   :  { %v4351_v3 = vmul.f32 %v4349_v61, %v4273_v8  ;;  %v4330_v41 = vmul.f32 %v4328_v6, %v4311_v47 }
0x2b30   :  { %v4340_v59 = vmul.f32 %v4939_v30, %v4330_v41  ;;  %v4355_v56 = vmul.f32 %v4736_v12, %v4351_v3 }
0x2b32   :  { %v4342_v22 = vsub.f32 1.0, %v4340_v59  ;;  %v4358_v10 = vsel %vm4357_vm1, %v4355_v56, 0.0 }
0x2b33   :  { %4359 = vadd.xlane.f32.xlu0 %v4358_v10 }
0x2b34   :  { %v4346_v21 = vsub.f32 0.0, %v4342_v22 }
0x2b36   :  { %v4348_v24 = vsel %vm4344_vm4, %v4342_v22, %v4346_v21 }
0x2b37   :  { %v4350_v57 = vadd.f32 1.0, %v4348_v24 }
0x2b39   :  { %v4352_v25 = vmul.f32 %v4350_v57, %v4274_v48 }
0x2b3b   :  { %v4356_v13 = vmul.f32 %v4736_v12, %v4352_v25 }
0x2b3d   :  { %v4361_v60 = vsel %vm4357_vm1, %v4356_v13, 0.0 }
0x2b3e   :  { %4362 = vadd.xlane.f32.xlu1 %v4361_v60 }
0x2ba6   :  { %v4360_v9 = vpop.xlane.xlu0 %4359 }
0x2ba7   :  { %v4366_v33 = vadd.f32 %v4737_v14, %v4360_v9 }
0x2ba9   :  { %v4368_v35 = vsub.f32 0.0, %v4366_v33 }
0x2bab   :  { %v4370_v26 = vmul.f32 1.442695, %v4368_v35 }
0x2bad   :  { %4940 = vpow2.f32 %v4370_v26 }
0x2bb1   :  { %v4363_v44 = vpop.xlane.xlu1 %4362 }
0x2bb2   :  { %v4367_v32 = vadd.f32 %v4737_v14, %v4363_v44 }
0x2bb3   :  { %v4941_v52 = vpop.eup %4940 }
0x2bb4   :  { %v4374_v17 = vadd.f32 1.0, %v4941_v52  ;;  %v4369_v2 = vsub.f32 0.0, %v4367_v32 }
0x2bb6   :  { %4942 = vrcp.f32 %v4374_v17  ;;  %v4372_v23 = vmul.f32 1.442695, %v4369_v2  ;;  %v4387_v28 = vand.u32 2147483648, %v4374_v17  ;;  %v4385_v31 = vand.u32 2147483647, %v4374_v17 }
0x2bb7   :  { %vm4381_vm6 = vweird.f32 %v4374_v17 }
0x2bb8   :  { %4944 = vpow2.f32 %v4372_v23  ;;  %v4388_v38 = vor.u32 1.1754944e-38, %v4387_v28  ;;  %vm4386_vm8 = vcmp.eq.f32.partialorder %v4385_v31, 8.507059e+37 }
0x2bbc   :  { %v4943_v18 = vpop.eup %4942 }
0x2bbd   :  { %v4377_v62 = vmul.f32 %v4943_v18, %v4374_v17  ;;  %vm4382_vm5 = vweird.f32 %v4943_v18 }
0x2bbe   :  { %v4945_v39 = vpop.eup %4944  ;;  %vm4383_vm7 = vmor %vm4381_vm6, %vm4382_vm5 }
0x2bbf   :  { %v4378_v46 = vsub.f32 1.0, %v4377_v62  ;;  %v4375_v34 = vadd.f32 1.0, %v4945_v39 }
0x2bc1   :  { %v4379_v15 = vmul.f32 %v4943_v18, %v4378_v46  ;;  %4946 = vrcp.f32 %v4375_v34  ;;  %v4402_v47 = vand.u32 2147483648, %v4375_v34  ;;  %v4400_v49 = vand.u32 2147483647, %v4375_v34 }
0x2bc2   :  { %vm4396_vm10 = vweird.f32 %v4375_v34 }
0x2bc3   :  { %v4380_v37 = vadd.f32 %v4943_v18, %v4379_v15  ;;  %v4403_v50 = vor.u32 1.1754944e-38, %v4402_v47  ;;  %vm4401_vm12 = vcmp.eq.f32.partialorder %v4400_v49, 8.507059e+37 }
0x2bc5   :  { %v4384_v40 = vsel %vm4383_vm7, %v4943_v18, %v4380_v37 }
0x2bc6   :  { %v4389_v42 = vsel %vm4386_vm8, %v4388_v38, %v4384_v40 }
0x2bc7   :  { %v4390_v19 = vmul.f32 100.0, %v4389_v42  ;;  %v4947_v43 = vpop.eup %4946 }
0x2bc8   :  { %v4392_v45 = vmul.f32 %v4947_v43, %v4375_v34  ;;  %vm4397_vm0 = vweird.f32 %v4947_v43 }
0x2bc9   :  { %4407 = vst.msk [vmem:[%s6260_s8] sm:$0xff] %vm4406_vm9, %v4390_v19  ;;  %vm4398_vm11 = vmor %vm4396_vm10, %vm4397_vm0 }
0x2bca   :  { %v4393_v29 = vsub.f32 1.0, %v4392_v45 }
0x2bcc   :  { %v4394_v5 = vmul.f32 %v4947_v43, %v4393_v29 }
0x2bce   :  { %v4395_v36 = vadd.f32 %v4947_v43, %v4394_v5 }
0x2bd0   :  { %v4399_v51 = vsel %vm4398_vm11, %v4947_v43, %v4395_v36 }
0x2bd1   :  { %v4404_v53 = vsel %vm4401_vm12, %v4403_v50, %v4399_v51 }
0x2bd2   :  { %v4405_v11 = vmul.f32 100.0, %v4404_v53 }
0x2bd4   :  { %4408 = vst.msk [vmem:[%s6260_s8 + $0x8] sm:$0xff] %vm4406_vm9, %v4405_v11 }

</bundles_post_ra>
